<compile_context>
chip_gen: v6e
topology: v6e:2x2x1
jax: 0.10.0
libtpu: 0.0.40
codegen_flags: <defaults>
</compile_context>

<pallas_src>
import functools

import jax
import jax.numpy as jnp
from jax.experimental import pallas as pl
from jax.experimental.pallas import tpu as pltpu  # noqa: F401  (TPU backend)

LAB_DIM = 128


# ----------------------------- Pallas kernels -----------------------------

def _bilstm_kernel(x_ref, h0_ref, c0_ref, wih_ref, whh_ref, b_ref,
                   out_ref, hn_ref, cn_ref):
    """Fused bidirectional LSTM over the whole sequence in one kernel call.

    x_ref   : (S*B, I)   time-major inputs, flattened over (S, B)
    h0/c0   : (B, 2H)    [fwd | bwd] initial states
    wih_ref : (I, 8H)    [fwd i,f,g,o | bwd i,f,g,o] input weights
    whh_ref : (2H, 8H)   block-diagonal recurrent weights (fwd TL, bwd BR)
    b_ref   : (1, 8H)    combined biases
    out_ref : (S, B, 2H) per-timestep [fwd | bwd] hidden states
    hn/cn   : (B, 2H)    final states
    """
    S, B, H2 = out_ref.shape
    H = H2 // 2
    G = 4 * H

    # Hoisted input projection for every timestep and both directions:
    # one (S*B, I) x (I, 8H) MXU pass, bias folded in.
    xp = (jnp.dot(x_ref[...], wih_ref[...], preferred_element_type=jnp.float32)
          + b_ref[...])                                              # (S*B, 8H)

    def cell(pre, c_prev):
        # PyTorch gate order: i, f, g, o
        i = jax.nn.sigmoid(pre[:, 0 * H:1 * H])
        f = jax.nn.sigmoid(pre[:, 1 * H:2 * H])
        g = jnp.tanh(pre[:, 2 * H:3 * H])
        o = jax.nn.sigmoid(pre[:, 3 * H:4 * H])
        c_new = f * c_prev + i * g
        return o * jnp.tanh(c_new), c_new

    h = h0_ref[...]                                                  # (B, 2H)
    c = c0_ref[...]
    hf_steps = []
    hb_steps = []
    for s in range(S):  # fully unrolled serial recurrence (S is small & static)
        # Both directions and all gates in one (B,2H)x(2H,8H) matmul.
        rec = jnp.dot(h, whh_ref[...], preferred_element_type=jnp.float32)
        pre_f = xp[s * B:(s + 1) * B, :G] + rec[:, :G]
        pre_b = xp[(S - 1 - s) * B:(S - s) * B, G:] + rec[:, G:]
        hf, cf = cell(pre_f, c[:, :H])
        hb, cb = cell(pre_b, c[:, H:])
        h = jnp.concatenate([hf, hb], axis=-1)
        c = jnp.concatenate([cf, cb], axis=-1)
        hf_steps.append(hf)
        hb_steps.append(hb)

    # Single store of the full (S, B, 2H) output slab (fwd lanes [0:H], bwd
    # lanes [H:2H], backward outputs re-reversed to natural time order).
    out_ref[...] = jnp.stack(
        [jnp.concatenate([hf_steps[t], hb_steps[S - 1 - t]], axis=-1)
         for t in range(S)], axis=0)
    hn_ref[...] = h
    cn_ref[...] = c


def bilstm(x_sbi, h0, c0, lstm_p):
    """x_sbi: (S, B, I) time-major.  Returns (out (S,B,2H), hN (B,2H), cN (B,2H))."""
    S, B, I = x_sbi.shape
    H = lstm_p['whh'].shape[0] // 2
    x_flat = x_sbi.reshape(S * B, I).astype(jnp.float32)
    return pl.pallas_call(
        _bilstm_kernel,
        out_shape=(
            jax.ShapeDtypeStruct((S, B, 2 * H), jnp.float32),
            jax.ShapeDtypeStruct((B, 2 * H), jnp.float32),
            jax.ShapeDtypeStruct((B, 2 * H), jnp.float32),
        ),
    )(x_flat, h0, c0, lstm_p['wih'], lstm_p['whh'], lstm_p['b'])


def _embal_loss_kernel(x_ref, ency_ref, bw_ref, bb_ref, hw_ref, hb_ref, oh_ref,
                       loss_ref):
    """Fused EMBAL epilogue: mean over S, two Linear+Tanh, CE + MSE -> scalar."""
    m = jnp.mean(x_ref[...], axis=0)                                 # (B, E)
    enc_y = ency_ref[...]                                            # (B, 128)
    b_x = jnp.tanh(jnp.dot(m, bw_ref[...],
                           preferred_element_type=jnp.float32) + bb_ref[...])
    ae_y = jnp.tanh(jnp.dot(enc_y, hw_ref[...],
                            preferred_element_type=jnp.float32) + hb_ref[...])
    zmax = jnp.max(ae_y, axis=-1, keepdims=True)
    lse = jnp.log(jnp.sum(jnp.exp(ae_y - zmax), axis=-1, keepdims=True)) + zmax
    ll = jnp.sum(ae_y * oh_ref[...], axis=-1, keepdims=True)
    ce = jnp.mean(lse - ll)
    d = b_x - enc_y
    loss_ref[...] = (ce + jnp.mean(d * d)).reshape(1, 1)


def embal_loss(enc_x, enc_y, b_p, h_p, onehot):
    loss = pl.pallas_call(
        _embal_loss_kernel,
        out_shape=jax.ShapeDtypeStruct((1, 1), jnp.float32),
    )(enc_x, enc_y, b_p['w'], b_p['b'], h_p['w'], h_p['b'], onehot)
    return loss[0, 0]


def _lstmal_loss_kernel(hn_ref, y_ref, gw_ref, gb_ref, hw_ref, hb_ref,
                        bw_ref, bb_ref, loss_ref, ency_ref):
    """Fused LSTMAL epilogue: g/h/b Linear+Tanh + both MSE losses; emits enc_y."""
    H = bw_ref.shape[0]
    hsum = hn_ref[:, :H] + hn_ref[:, H:]                             # h[0] + h[1]
    y = y_ref[...]
    enc_y = jnp.tanh(jnp.dot(y, gw_ref[...],
                             preferred_element_type=jnp.float32) + gb_ref[...])
    b_x = jnp.tanh(jnp.dot(hsum, bw_ref[...],
                           preferred_element_type=jnp.float32) + bb_ref[...])
    ae_y = jnp.tanh(jnp.dot(enc_y, hw_ref[...],
                            preferred_element_type=jnp.float32) + hb_ref[...])
    d1 = ae_y - y
    d2 = b_x - enc_y
    loss_ref[...] = (jnp.mean(d1 * d1) + jnp.mean(d2 * d2)).reshape(1, 1)
    ency_ref[...] = enc_y


def lstmal_loss(hN, y, g_p, h_p, b_p):
    B = y.shape[0]
    loss, enc_y = pl.pallas_call(
        _lstmal_loss_kernel,
        out_shape=(jax.ShapeDtypeStruct((1, 1), jnp.float32),
                   jax.ShapeDtypeStruct((B, LAB_DIM), jnp.float32)),
    )(hN, y, g_p['w'], g_p['b'], h_p['w'], h_p['b'], b_p['w'], b_p['b'])
    return loss[0, 0], enc_y


# ----------------------------- parameter init -----------------------------

def dense_init(key, din, dout, scale=0.1):
    kw, kb = jax.random.split(key)
    return {'w': scale * jax.random.normal(kw, (din, dout), jnp.float32),
            'b': scale * jax.random.normal(kb, (1, dout), jnp.float32)}


def lstm_init(key, inp, hid, scale=0.1):
    """Packed bidirectional-LSTM weights:
       wih (I, 8H) = [fwd i,f,g,o | bwd i,f,g,o]
       whh (2H, 8H) block-diagonal (fwd top-left, bwd bottom-right)
       b   (1, 8H)  combined biases."""
    k1, k2, k3, k4 = jax.random.split(key, 4)
    wih = scale * jax.random.normal(k1, (inp, 8 * hid), jnp.float32)
    whh_f = scale * jax.random.normal(k2, (hid, 4 * hid), jnp.float32)
    whh_b = scale * jax.random.normal(k3, (hid, 4 * hid), jnp.float32)
    z = jnp.zeros((hid, 4 * hid), jnp.float32)
    whh = jnp.concatenate([jnp.concatenate([whh_f, z], axis=1),
                           jnp.concatenate([z, whh_b], axis=1)], axis=0)
    b = scale * jax.random.normal(k4, (1, 8 * hid), jnp.float32)
    return {'wih': wih, 'whh': whh, 'b': b}


def init_model_params(key, emb_dim, l1_dim, l2_dim, class_num, vocab_size):
    ks = jax.random.split(key, 12)
    return {
        'emb': {
            'f_emb': 0.1 * jax.random.normal(ks[0], (vocab_size, emb_dim), jnp.float32),
            'g_emb': 0.1 * jax.random.normal(ks[1], (class_num, LAB_DIM), jnp.float32),
            'h': dense_init(ks[2], LAB_DIM, class_num),
            'b': dense_init(ks[3], emb_dim, LAB_DIM),
        },
        'lstm1': {
            'lstm': lstm_init(ks[4], emb_dim, l1_dim),
            'g': dense_init(ks[5], LAB_DIM, LAB_DIM),
            'h': dense_init(ks[6], LAB_DIM, LAB_DIM),
            'b': dense_init(ks[7], l1_dim, LAB_DIM),
        },
        'lstm2': {
            'lstm': lstm_init(ks[8], l1_dim * 2, l2_dim),
            'g': dense_init(ks[9], LAB_DIM, LAB_DIM),
            'h': dense_init(ks[10], LAB_DIM, LAB_DIM),
            'b': dense_init(ks[11], l2_dim, LAB_DIM),
        },
    }


# ----------------------------- forward (glue) -----------------------------

def embal_forward(p, x_bs, y, class_num):
    # Embedding lookups stay in XLA (gather); dropout = identity (eval mode).
    enc_x = jnp.take(p['f_emb'], x_bs.T, axis=0)            # (S, B, E) time-major
    enc_y = jnp.tanh(jnp.take(p['g_emb'], y, axis=0))       # (B, 128)
    onehot = jax.nn.one_hot(y, class_num, dtype=jnp.float32)
    loss = embal_loss(enc_x, enc_y, p['b'], p['h'], onehot)
    return loss, enc_x, enc_y


def lstmal_forward(p, x_sbi, y, hidden=None):
    S, B, _ = x_sbi.shape
    H = p['lstm']['whh'].shape[0] // 2
    if hidden is None:
        h0 = jnp.zeros((B, 2 * H), jnp.float32)
        c0 = jnp.zeros((B, 2 * H), jnp.float32)
    else:
        h0, c0 = hidden
    enc_x, hN, cN = bilstm(x_sbi, h0, c0, p['lstm'])        # (S,B,2H),(B,2H),(B,2H)
    loss, enc_y = lstmal_loss(hN, y, p['g'], p['h'], p['b'])
    return loss, enc_x, (hN, cN), enc_y


@functools.partial(jax.jit, static_argnums=(3,))
def model_forward(params, x, y, class_num):
    emb_loss, enc_x, enc_y = embal_forward(params['emb'], x, y, class_num)
    l1_loss, enc_x, hid, enc_y = lstmal_forward(params['lstm1'], enc_x, enc_y)
    # torch.cat of the two lstm1-output halves is a value-level no-op; skipped.
    l2_loss, _, _, _ = lstmal_forward(params['lstm2'], enc_x, enc_y, hidden=hid)
    return emb_loss + l1_loss + l2_loss


# ----------------------------- main -----------------------------

if __name__ == "__main__":
    B, S = 2, 8
    emb_dim, l1_dim, l2_dim = 32, 32, 32   # hidden handoff requires l1_dim == l2_dim
    class_num, vocab_size = 8, 50

    key = jax.random.PRNGKey(0)
    kp, kx, ky = jax.random.split(key, 3)
    params = init_model_params(kp, emb_dim, l1_dim, l2_dim, class_num, vocab_size)

    x = jax.random.randint(kx, (B, S), 0, vocab_size, dtype=jnp.int32)
    y = jax.random.randint(ky, (B,), 0, class_num, dtype=jnp.int32)

    loss = model_forward(params, x, y, class_num)
    loss = jax.block_until_ready(loss)
    assert loss.shape == () and bool(jnp.isfinite(loss))
    print("KERNEL_OK")
</pallas_src>

<mosaic_0001>
module attributes {stable_mosaic.version = 11 : i64} {
  func.func @_lstmal_loss_kernel(%arg0: memref<2x64xf32, #tpu.memory_space<vmem>>, %arg1: memref<2x128xf32, #tpu.memory_space<vmem>>, %arg2: memref<128x128xf32, #tpu.memory_space<vmem>>, %arg3: memref<1x128xf32, #tpu.memory_space<vmem>>, %arg4: memref<128x128xf32, #tpu.memory_space<vmem>>, %arg5: memref<1x128xf32, #tpu.memory_space<vmem>>, %arg6: memref<32x128xf32, #tpu.memory_space<vmem>>, %arg7: memref<1x128xf32, #tpu.memory_space<vmem>>, %arg8: memref<1x1xf32, #tpu.memory_space<vmem>>, %arg9: memref<2x128xf32, #tpu.memory_space<vmem>>) attributes {dimension_semantics = [], scalar_prefetch = 0 : i64, scratch_operands = 0 : i64, tpu.core_type = #tpu.core_type<tc>} {
    %c0 = arith.constant 0 : index
    %c0_0 = arith.constant 0 : index
    %0 = vector.load %arg0[%c0, %c0_0] : memref<2x64xf32, #tpu.memory_space<vmem>>, vector<2x32xf32>
    %c0_1 = arith.constant 0 : index
    %c32 = arith.constant 32 : index
    %1 = vector.load %arg0[%c0_1, %c32] : memref<2x64xf32, #tpu.memory_space<vmem>>, vector<2x32xf32>
    %2 = arith.addf %0, %1 : vector<2x32xf32>
    %c0_2 = arith.constant 0 : index
    %c0_3 = arith.constant 0 : index
    %3 = vector.load %arg1[%c0_2, %c0_3] : memref<2x128xf32, #tpu.memory_space<vmem>>, vector<2x128xf32>
    %c0_4 = arith.constant 0 : index
    %c0_5 = arith.constant 0 : index
    %4 = vector.load %arg2[%c0_4, %c0_5] : memref<128x128xf32, #tpu.memory_space<vmem>>, vector<128x128xf32>
    %cst = arith.constant dense<0.000000e+00> : vector<2x128xf32>
    %5 = tpu.matmul %3, %4, %cst {dimension_numbers = #tpu.dot_dimension_numbers<[1], [0], [0], [1], [0, 0, 1, 1], [], []>} : vector<2x128xf32>, vector<128x128xf32>, vector<2x128xf32> -> vector<2x128xf32>
    %c0_6 = arith.constant 0 : index
    %c0_7 = arith.constant 0 : index
    %6 = vector.load %arg3[%c0_6, %c0_7] : memref<1x128xf32, #tpu.memory_space<vmem>>, vector<1x128xf32>
    %7 = vector.broadcast %6 : vector<1x128xf32> to vector<2x128xf32>
    %8 = arith.addf %5, %7 : vector<2x128xf32>
    %9 = math.tanh %8 : vector<2x128xf32>
    %c0_8 = arith.constant 0 : index
    %c0_9 = arith.constant 0 : index
    %10 = vector.load %arg6[%c0_8, %c0_9] : memref<32x128xf32, #tpu.memory_space<vmem>>, vector<32x128xf32>
    %cst_10 = arith.constant dense<0.000000e+00> : vector<2x128xf32>
    %11 = tpu.matmul %2, %10, %cst_10 {dimension_numbers = #tpu.dot_dimension_numbers<[1], [0], [0], [1], [0, 0, 1, 1], [], []>} : vector<2x32xf32>, vector<32x128xf32>, vector<2x128xf32> -> vector<2x128xf32>
    %c0_11 = arith.constant 0 : index
    %c0_12 = arith.constant 0 : index
    %12 = vector.load %arg7[%c0_11, %c0_12] : memref<1x128xf32, #tpu.memory_space<vmem>>, vector<1x128xf32>
    %13 = vector.broadcast %12 : vector<1x128xf32> to vector<2x128xf32>
    %14 = arith.addf %11, %13 : vector<2x128xf32>
    %15 = math.tanh %14 : vector<2x128xf32>
    %c0_13 = arith.constant 0 : index
    %c0_14 = arith.constant 0 : index
    %16 = vector.load %arg4[%c0_13, %c0_14] : memref<128x128xf32, #tpu.memory_space<vmem>>, vector<128x128xf32>
    %cst_15 = arith.constant dense<0.000000e+00> : vector<2x128xf32>
    %17 = tpu.matmul %9, %16, %cst_15 {dimension_numbers = #tpu.dot_dimension_numbers<[1], [0], [0], [1], [0, 0, 1, 1], [], []>} : vector<2x128xf32>, vector<128x128xf32>, vector<2x128xf32> -> vector<2x128xf32>
    %c0_16 = arith.constant 0 : index
    %c0_17 = arith.constant 0 : index
    %18 = vector.load %arg5[%c0_16, %c0_17] : memref<1x128xf32, #tpu.memory_space<vmem>>, vector<1x128xf32>
    %19 = vector.broadcast %18 : vector<1x128xf32> to vector<2x128xf32>
    %20 = arith.addf %17, %19 : vector<2x128xf32>
    %21 = math.tanh %20 : vector<2x128xf32>
    %22 = arith.subf %21, %3 : vector<2x128xf32>
    %23 = arith.subf %15, %9 : vector<2x128xf32>
    %24 = arith.mulf %22, %22 : vector<2x128xf32>
    %25 = vector.shape_cast %24 : vector<2x128xf32> to vector<1x2x128xf32>
    %cst_18 = arith.constant dense<0.000000e+00> : vector<1xf32>
    %26 = vector.multi_reduction <add>, %25, %cst_18 [1, 2] : vector<1x2x128xf32> to vector<1xf32>
    %27 = vector.shape_cast %26 : vector<1xf32> to vector<1x1x1xf32>
    %28 = vector.extract %27[0, 0, 0] : f32 from vector<1x1x1xf32>
    %cst_19 = arith.constant 2.560000e+02 : f32
    %29 = arith.divf %28, %cst_19 : f32
    %30 = arith.mulf %23, %23 : vector<2x128xf32>
    %31 = vector.shape_cast %30 : vector<2x128xf32> to vector<1x2x128xf32>
    %cst_20 = arith.constant dense<0.000000e+00> : vector<1xf32>
    %32 = vector.multi_reduction <add>, %31, %cst_20 [1, 2] : vector<1x2x128xf32> to vector<1xf32>
    %33 = vector.shape_cast %32 : vector<1xf32> to vector<1x1x1xf32>
    %34 = vector.extract %33[0, 0, 0] : f32 from vector<1x1x1xf32>
    %cst_21 = arith.constant 2.560000e+02 : f32
    %35 = arith.divf %34, %cst_21 : f32
    %36 = arith.addf %29, %35 : f32
    %37 = vector.broadcast %36 : f32 to vector<1x1xf32>
    %c0_22 = arith.constant 0 : index
    %c0_23 = arith.constant 0 : index
    %38 = vector.load %arg8[%c0_22, %c0_23] : memref<1x1xf32, #tpu.memory_space<vmem>>, vector<1x1xf32>
    tpu.vector_store %arg8[%c0_22, %c0_23], %37 {strides = array<i32>} : memref<1x1xf32, #tpu.memory_space<vmem>>, vector<1x1xf32>,
    %c0_24 = arith.constant 0 : index
    %c0_25 = arith.constant 0 : index
    %39 = vector.load %arg9[%c0_24, %c0_25] : memref<2x128xf32, #tpu.memory_space<vmem>>, vector<2x128xf32>
    tpu.vector_store %arg9[%c0_24, %c0_25], %9 {strides = array<i32>} : memref<2x128xf32, #tpu.memory_space<vmem>>, vector<2x128xf32>,
    return
  }
}

module attributes {stable_mosaic.version = 11 : i64} {
  func.func @_bilstm_kernel(%arg0: memref<16x32xf32, #tpu.memory_space<vmem>>, %arg1: memref<2x64xf32, #tpu.memory_space<vmem>>, %arg2: memref<2x64xf32, #tpu.memory_space<vmem>>, %arg3: memref<32x256xf32, #tpu.memory_space<vmem>>, %arg4: memref<64x256xf32, #tpu.memory_space<vmem>>, %arg5: memref<1x256xf32, #tpu.memory_space<vmem>>, %arg6: memref<8x2x64xf32, #tpu.memory_space<vmem>>, %arg7: memref<2x64xf32, #tpu.memory_space<vmem>>, %arg8: memref<2x64xf32, #tpu.memory_space<vmem>>) attributes {dimension_semantics = [], scalar_prefetch = 0 : i64, scratch_operands = 0 : i64, tpu.core_type = #tpu.core_type<tc>} {
    %c0 = arith.constant 0 : index
    %c0_0 = arith.constant 0 : index
    %0 = vector.load %arg0[%c0, %c0_0] : memref<16x32xf32, #tpu.memory_space<vmem>>, vector<16x32xf32>
    %c0_1 = arith.constant 0 : index
    %c0_2 = arith.constant 0 : index
    %1 = vector.load %arg3[%c0_1, %c0_2] : memref<32x256xf32, #tpu.memory_space<vmem>>, vector<32x256xf32>
    %cst = arith.constant dense<0.000000e+00> : vector<16x256xf32>
    %2 = tpu.matmul %0, %1, %cst {dimension_numbers = #tpu.dot_dimension_numbers<[1], [0], [0], [1], [0, 0, 1, 1], [], []>} : vector<16x32xf32>, vector<32x256xf32>, vector<16x256xf32> -> vector<16x256xf32>
    %c0_3 = arith.constant 0 : index
    %c0_4 = arith.constant 0 : index
    %3 = vector.load %arg5[%c0_3, %c0_4] : memref<1x256xf32, #tpu.memory_space<vmem>>, vector<1x256xf32>
    %4 = vector.broadcast %3 : vector<1x256xf32> to vector<16x256xf32>
    %5 = arith.addf %2, %4 : vector<16x256xf32>
    %c0_5 = arith.constant 0 : index
    %c0_6 = arith.constant 0 : index
    %6 = vector.load %arg1[%c0_5, %c0_6] : memref<2x64xf32, #tpu.memory_space<vmem>>, vector<2x64xf32>
    %c0_7 = arith.constant 0 : index
    %c0_8 = arith.constant 0 : index
    %7 = vector.load %arg2[%c0_7, %c0_8] : memref<2x64xf32, #tpu.memory_space<vmem>>, vector<2x64xf32>
    %c0_9 = arith.constant 0 : index
    %c0_10 = arith.constant 0 : index
    %8 = vector.load %arg4[%c0_9, %c0_10] : memref<64x256xf32, #tpu.memory_space<vmem>>, vector<64x256xf32>
    %cst_11 = arith.constant dense<0.000000e+00> : vector<2x256xf32>
    %9 = tpu.matmul %6, %8, %cst_11 {dimension_numbers = #tpu.dot_dimension_numbers<[1], [0], [0], [1], [0, 0, 1, 1], [], []>} : vector<2x64xf32>, vector<64x256xf32>, vector<2x256xf32> -> vector<2x256xf32>
    %10 = vector.extract_strided_slice %5 {offsets = [0, 0], sizes = [2, 128], strides = [1, 1]} : vector<16x256xf32> to vector<2x128xf32>
    %11 = vector.extract_strided_slice %9 {offsets = [0, 0], sizes = [2, 128], strides = [1, 1]} : vector<2x256xf32> to vector<2x128xf32>
    %12 = arith.addf %10, %11 : vector<2x128xf32>
    %13 = vector.extract_strided_slice %5 {offsets = [14, 128], sizes = [2, 128], strides = [1, 1]} : vector<16x256xf32> to vector<2x128xf32>
    %14 = vector.extract_strided_slice %9 {offsets = [0, 128], sizes = [2, 128], strides = [1, 1]} : vector<2x256xf32> to vector<2x128xf32>
    %15 = arith.addf %13, %14 : vector<2x128xf32>
    %16 = vector.extract_strided_slice %7 {offsets = [0, 0], sizes = [2, 32], strides = [1, 1]} : vector<2x64xf32> to vector<2x32xf32>
    %17 = vector.extract_strided_slice %12 {offsets = [0, 0], sizes = [2, 32], strides = [1, 1]} : vector<2x128xf32> to vector<2x32xf32>
    %18 = arith.negf %17 : vector<2x32xf32>
    %19 = math.exp %18 : vector<2x32xf32>
    %cst_12 = arith.constant 1.000000e+00 : f32
    %20 = vector.broadcast %cst_12 : f32 to vector<2x32xf32>
    %21 = arith.addf %20, %19 : vector<2x32xf32>
    %22 = arith.divf %20, %21 : vector<2x32xf32>
    %23 = vector.extract_strided_slice %12 {offsets = [0, 32], sizes = [2, 32], strides = [1, 1]} : vector<2x128xf32> to vector<2x32xf32>
    %24 = arith.negf %23 : vector<2x32xf32>
    %25 = math.exp %24 : vector<2x32xf32>
    %cst_13 = arith.constant 1.000000e+00 : f32
    %26 = vector.broadcast %cst_13 : f32 to vector<2x32xf32>
    %27 = arith.addf %26, %25 : vector<2x32xf32>
    %28 = arith.divf %26, %27 : vector<2x32xf32>
    %29 = vector.extract_strided_slice %12 {offsets = [0, 64], sizes = [2, 32], strides = [1, 1]} : vector<2x128xf32> to vector<2x32xf32>
    %30 = math.tanh %29 : vector<2x32xf32>
    %31 = vector.extract_strided_slice %12 {offsets = [0, 96], sizes = [2, 32], strides = [1, 1]} : vector<2x128xf32> to vector<2x32xf32>
    %32 = arith.negf %31 : vector<2x32xf32>
    %33 = math.exp %32 : vector<2x32xf32>
    %cst_14 = arith.constant 1.000000e+00 : f32
    %34 = vector.broadcast %cst_14 : f32 to vector<2x32xf32>
    %35 = arith.addf %34, %33 : vector<2x32xf32>
    %36 = arith.divf %34, %35 : vector<2x32xf32>
    %37 = arith.mulf %28, %16 : vector<2x32xf32>
    %38 = arith.mulf %22, %30 : vector<2x32xf32>
    %39 = arith.addf %37, %38 : vector<2x32xf32>
    %40 = math.tanh %39 : vector<2x32xf32>
    %41 = arith.mulf %36, %40 : vector<2x32xf32>
    %42 = vector.extract_strided_slice %7 {offsets = [0, 32], sizes = [2, 32], strides = [1, 1]} : vector<2x64xf32> to vector<2x32xf32>
    %43 = vector.extract_strided_slice %15 {offsets = [0, 0], sizes = [2, 32], strides = [1, 1]} : vector<2x128xf32> to vector<2x32xf32>
    %44 = arith.negf %43 : vector<2x32xf32>
    %45 = math.exp %44 : vector<2x32xf32>
    %cst_15 = arith.constant 1.000000e+00 : f32
    %46 = vector.broadcast %cst_15 : f32 to vector<2x32xf32>
    %47 = arith.addf %46, %45 : vector<2x32xf32>
    %48 = arith.divf %46, %47 : vector<2x32xf32>
    %49 = vector.extract_strided_slice %15 {offsets = [0, 32], sizes = [2, 32], strides = [1, 1]} : vector<2x128xf32> to vector<2x32xf32>
    %50 = arith.negf %49 : vector<2x32xf32>
    %51 = math.exp %50 : vector<2x32xf32>
    %cst_16 = arith.constant 1.000000e+00 : f32
    %52 = vector.broadcast %cst_16 : f32 to vector<2x32xf32>
    %53 = arith.addf %52, %51 : vector<2x32xf32>
    %54 = arith.divf %52, %53 : vector<2x32xf32>
    %55 = vector.extract_strided_slice %15 {offsets = [0, 64], sizes = [2, 32], strides = [1, 1]} : vector<2x128xf32> to vector<2x32xf32>
    %56 = math.tanh %55 : vector<2x32xf32>
    %57 = vector.extract_strided_slice %15 {offsets = [0, 96], sizes = [2, 32], strides = [1, 1]} : vector<2x128xf32> to vector<2x32xf32>
    %58 = arith.negf %57 : vector<2x32xf32>
    %59 = math.exp %58 : vector<2x32xf32>
    %cst_17 = arith.constant 1.000000e+00 : f32
    %60 = vector.broadcast %cst_17 : f32 to vector<2x32xf32>
    %61 = arith.addf %60, %59 : vector<2x32xf32>
    %62 = arith.divf %60, %61 : vector<2x32xf32>
    %63 = arith.mulf %54, %42 : vector<2x32xf32>
    %64 = arith.mulf %48, %56 : vector<2x32xf32>
    %65 = arith.addf %63, %64 : vector<2x32xf32>
    %66 = math.tanh %65 : vector<2x32xf32>
    %67 = arith.mulf %62, %66 : vector<2x32xf32>
    %68 = tpu.concatenate %41, %67 in 1 : vector<2x32xf32>, vector<2x32xf32> -> vector<2x64xf32>
    %69 = tpu.concatenate %39, %65 in 1 : vector<2x32xf32>, vector<2x32xf32> -> vector<2x64xf32>
    %c0_18 = arith.constant 0 : index
    %c0_19 = arith.constant 0 : index
    %70 = vector.load %arg4[%c0_18, %c0_19] : memref<64x256xf32, #tpu.memory_space<vmem>>, vector<64x256xf32>
    %cst_20 = arith.constant dense<0.000000e+00> : vector<2x256xf32>
    %71 = tpu.matmul %68, %70, %cst_20 {dimension_numbers = #tpu.dot_dimension_numbers<[1], [0], [0], [1], [0, 0, 1, 1], [], []>} : vector<2x64xf32>, vector<64x256xf32>, vector<2x256xf32> -> vector<2x256xf32>
    %72 = vector.extract_strided_slice %5 {offsets = [2, 0], sizes = [2, 128], strides = [1, 1]} : vector<16x256xf32> to vector<2x128xf32>
    %73 = vector.extract_strided_slice %71 {offsets = [0, 0], sizes = [2, 128], strides = [1, 1]} : vector<2x256xf32> to vector<2x128xf32>
    %74 = arith.addf %72, %73 : vector<2x128xf32>
    %75 = vector.extract_strided_slice %5 {offsets = [12, 128], sizes = [2, 128], strides = [1, 1]} : vector<16x256xf32> to vector<2x128xf32>
    %76 = vector.extract_strided_slice %71 {offsets = [0, 128], sizes = [2, 128], strides = [1, 1]} : vector<2x256xf32> to vector<2x128xf32>
    %77 = arith.addf %75, %76 : vector<2x128xf32>
    %78 = vector.extract_strided_slice %69 {offsets = [0, 0], sizes = [2, 32], strides = [1, 1]} : vector<2x64xf32> to vector<2x32xf32>
    %79 = vector.extract_strided_slice %74 {offsets = [0, 0], sizes = [2, 32], strides = [1, 1]} : vector<2x128xf32> to vector<2x32xf32>
    %80 = arith.negf %79 : vector<2x32xf32>
    %81 = math.exp %80 : vector<2x32xf32>
    %cst_21 = arith.constant 1.000000e+00 : f32
    %82 = vector.broadcast %cst_21 : f32 to vector<2x32xf32>
    %83 = arith.addf %82, %81 : vector<2x32xf32>
    %84 = arith.divf %82, %83 : vector<2x32xf32>
    %85 = vector.extract_strided_slice %74 {offsets = [0, 32], sizes = [2, 32], strides = [1, 1]} : vector<2x128xf32> to vector<2x32xf32>
    %86 = arith.negf %85 : vector<2x32xf32>
    %87 = math.exp %86 : vector<2x32xf32>
    %cst_22 = arith.constant 1.000000e+00 : f32
    %88 = vector.broadcast %cst_22 : f32 to vector<2x32xf32>
    %89 = arith.addf %88, %87 : vector<2x32xf32>
    %90 = arith.divf %88, %89 : vector<2x32xf32>
    %91 = vector.extract_strided_slice %74 {offsets = [0, 64], sizes = [2, 32], strides = [1, 1]} : vector<2x128xf32> to vector<2x32xf32>
    %92 = math.tanh %91 : vector<2x32xf32>
    %93 = vector.extract_strided_slice %74 {offsets = [0, 96], sizes = [2, 32], strides = [1, 1]} : vector<2x128xf32> to vector<2x32xf32>
    %94 = arith.negf %93 : vector<2x32xf32>
    %95 = math.exp %94 : vector<2x32xf32>
    %cst_23 = arith.constant 1.000000e+00 : f32
    %96 = vector.broadcast %cst_23 : f32 to vector<2x32xf32>
    %97 = arith.addf %96, %95 : vector<2x32xf32>
    %98 = arith.divf %96, %97 : vector<2x32xf32>
    %99 = arith.mulf %90, %78 : vector<2x32xf32>
    %100 = arith.mulf %84, %92 : vector<2x32xf32>
    %101 = arith.addf %99, %100 : vector<2x32xf32>
    %102 = math.tanh %101 : vector<2x32xf32>
    %103 = arith.mulf %98, %102 : vector<2x32xf32>
    %104 = vector.extract_strided_slice %69 {offsets = [0, 32], sizes = [2, 32], strides = [1, 1]} : vector<2x64xf32> to vector<2x32xf32>
    %105 = vector.extract_strided_slice %77 {offsets = [0, 0], sizes = [2, 32], strides = [1, 1]} : vector<2x128xf32> to vector<2x32xf32>
    %106 = arith.negf %105 : vector<2x32xf32>
    %107 = math.exp %106 : vector<2x32xf32>
    %cst_24 = arith.constant 1.000000e+00 : f32
    %108 = vector.broadcast %cst_24 : f32 to vector<2x32xf32>
    %109 = arith.addf %108, %107 : vector<2x32xf32>
    %110 = arith.divf %108, %109 : vector<2x32xf32>
    %111 = vector.extract_strided_slice %77 {offsets = [0, 32], sizes = [2, 32], strides = [1, 1]} : vector<2x128xf32> to vector<2x32xf32>
    %112 = arith.negf %111 : vector<2x32xf32>
    %113 = math.exp %112 : vector<2x32xf32>
    %cst_25 = arith.constant 1.000000e+00 : f32
    %114 = vector.broadcast %cst_25 : f32 to vector<2x32xf32>
    %115 = arith.addf %114, %113 : vector<2x32xf32>
    %116 = arith.divf %114, %115 : vector<2x32xf32>
    %117 = vector.extract_strided_slice %77 {offsets = [0, 64], sizes = [2, 32], strides = [1, 1]} : vector<2x128xf32> to vector<2x32xf32>
    %118 = math.tanh %117 : vector<2x32xf32>
    %119 = vector.extract_strided_slice %77 {offsets = [0, 96], sizes = [2, 32], strides = [1, 1]} : vector<2x128xf32> to vector<2x32xf32>
    %120 = arith.negf %119 : vector<2x32xf32>
    %121 = math.exp %120 : vector<2x32xf32>
    %cst_26 = arith.constant 1.000000e+00 : f32
    %122 = vector.broadcast %cst_26 : f32 to vector<2x32xf32>
    %123 = arith.addf %122, %121 : vector<2x32xf32>
    %124 = arith.divf %122, %123 : vector<2x32xf32>
    %125 = arith.mulf %116, %104 : vector<2x32xf32>
    %126 = arith.mulf %110, %118 : vector<2x32xf32>
    %127 = arith.addf %125, %126 : vector<2x32xf32>
    %128 = math.tanh %127 : vector<2x32xf32>
    %129 = arith.mulf %124, %128 : vector<2x32xf32>
    %130 = tpu.concatenate %103, %129 in 1 : vector<2x32xf32>, vector<2x32xf32> -> vector<2x64xf32>
    %131 = tpu.concatenate %101, %127 in 1 : vector<2x32xf32>, vector<2x32xf32> -> vector<2x64xf32>
    %c0_27 = arith.constant 0 : index
    %c0_28 = arith.constant 0 : index
    %132 = vector.load %arg4[%c0_27, %c0_28] : memref<64x256xf32, #tpu.memory_space<vmem>>, vector<64x256xf32>
    %cst_29 = arith.constant dense<0.000000e+00> : vector<2x256xf32>
    %133 = tpu.matmul %130, %132, %cst_29 {dimension_numbers = #tpu.dot_dimension_numbers<[1], [0], [0], [1], [0, 0, 1, 1], [], []>} : vector<2x64xf32>, vector<64x256xf32>, vector<2x256xf32> -> vector<2x256xf32>
    %134 = vector.extract_strided_slice %5 {offsets = [4, 0], sizes = [2, 128], strides = [1, 1]} : vector<16x256xf32> to vector<2x128xf32>
    %135 = vector.extract_strided_slice %133 {offsets = [0, 0], sizes = [2, 128], strides = [1, 1]} : vector<2x256xf32> to vector<2x128xf32>
    %136 = arith.addf %134, %135 : vector<2x128xf32>
    %137 = vector.extract_strided_slice %5 {offsets = [10, 128], sizes = [2, 128], strides = [1, 1]} : vector<16x256xf32> to vector<2x128xf32>
    %138 = vector.extract_strided_slice %133 {offsets = [0, 128], sizes = [2, 128], strides = [1, 1]} : vector<2x256xf32> to vector<2x128xf32>
    %139 = arith.addf %137, %138 : vector<2x128xf32>
    %140 = vector.extract_strided_slice %131 {offsets = [0, 0], sizes = [2, 32], strides = [1, 1]} : vector<2x64xf32> to vector<2x32xf32>
    %141 = vector.extract_strided_slice %136 {offsets = [0, 0], sizes = [2, 32], strides = [1, 1]} : vector<2x128xf32> to vector<2x32xf32>
    %142 = arith.negf %141 : vector<2x32xf32>
    %143 = math.exp %142 : vector<2x32xf32>
    %cst_30 = arith.constant 1.000000e+00 : f32
    %144 = vector.broadcast %cst_30 : f32 to vector<2x32xf32>
    %145 = arith.addf %144, %143 : vector<2x32xf32>
    %146 = arith.divf %144, %145 : vector<2x32xf32>
    %147 = vector.extract_strided_slice %136 {offsets = [0, 32], sizes = [2, 32], strides = [1, 1]} : vector<2x128xf32> to vector<2x32xf32>
    %148 = arith.negf %147 : vector<2x32xf32>
    %149 = math.exp %148 : vector<2x32xf32>
    %cst_31 = arith.constant 1.000000e+00 : f32
    %150 = vector.broadcast %cst_31 : f32 to vector<2x32xf32>
    %151 = arith.addf %150, %149 : vector<2x32xf32>
    %152 = arith.divf %150, %151 : vector<2x32xf32>
    %153 = vector.extract_strided_slice %136 {offsets = [0, 64], sizes = [2, 32], strides = [1, 1]} : vector<2x128xf32> to vector<2x32xf32>
    %154 = math.tanh %153 : vector<2x32xf32>
    %155 = vector.extract_strided_slice %136 {offsets = [0, 96], sizes = [2, 32], strides = [1, 1]} : vector<2x128xf32> to vector<2x32xf32>
    %156 = arith.negf %155 : vector<2x32xf32>
    %157 = math.exp %156 : vector<2x32xf32>
    %cst_32 = arith.constant 1.000000e+00 : f32
    %158 = vector.broadcast %cst_32 : f32 to vector<2x32xf32>
    %159 = arith.addf %158, %157 : vector<2x32xf32>
    %160 = arith.divf %158, %159 : vector<2x32xf32>
    %161 = arith.mulf %152, %140 : vector<2x32xf32>
    %162 = arith.mulf %146, %154 : vector<2x32xf32>
    %163 = arith.addf %161, %162 : vector<2x32xf32>
    %164 = math.tanh %163 : vector<2x32xf32>
    %165 = arith.mulf %160, %164 : vector<2x32xf32>
    %166 = vector.extract_strided_slice %131 {offsets = [0, 32], sizes = [2, 32], strides = [1, 1]} : vector<2x64xf32> to vector<2x32xf32>
    %167 = vector.extract_strided_slice %139 {offsets = [0, 0], sizes = [2, 32], strides = [1, 1]} : vector<2x128xf32> to vector<2x32xf32>
    %168 = arith.negf %167 : vector<2x32xf32>
    %169 = math.exp %168 : vector<2x32xf32>
    %cst_33 = arith.constant 1.000000e+00 : f32
    %170 = vector.broadcast %cst_33 : f32 to vector<2x32xf32>
    %171 = arith.addf %170, %169 : vector<2x32xf32>
    %172 = arith.divf %170, %171 : vector<2x32xf32>
    %173 = vector.extract_strided_slice %139 {offsets = [0, 32], sizes = [2, 32], strides = [1, 1]} : vector<2x128xf32> to vector<2x32xf32>
    %174 = arith.negf %173 : vector<2x32xf32>
    %175 = math.exp %174 : vector<2x32xf32>
    %cst_34 = arith.constant 1.000000e+00 : f32
    %176 = vector.broadcast %cst_34 : f32 to vector<2x32xf32>
    %177 = arith.addf %176, %175 : vector<2x32xf32>
    %178 = arith.divf %176, %177 : vector<2x32xf32>
    %179 = vector.extract_strided_slice %139 {offsets = [0, 64], sizes = [2, 32], strides = [1, 1]} : vector<2x128xf32> to vector<2x32xf32>
    %180 = math.tanh %179 : vector<2x32xf32>
    %181 = vector.extract_strided_slice %139 {offsets = [0, 96], sizes = [2, 32], strides = [1, 1]} : vector<2x128xf32> to vector<2x32xf32>
    %182 = arith.negf %181 : vector<2x32xf32>
    %183 = math.exp %182 : vector<2x32xf32>
    %cst_35 = arith.constant 1.000000e+00 : f32
    %184 = vector.broadcast %cst_35 : f32 to vector<2x32xf32>
    %185 = arith.addf %184, %183 : vector<2x32xf32>
    %186 = arith.divf %184, %185 : vector<2x32xf32>
    %187 = arith.mulf %178, %166 : vector<2x32xf32>
    %188 = arith.mulf %172, %180 : vector<2x32xf32>
    %189 = arith.addf %187, %188 : vector<2x32xf32>
    %190 = math.tanh %189 : vector<2x32xf32>
    %191 = arith.mulf %186, %190 : vector<2x32xf32>
    %192 = tpu.concatenate %165, %191 in 1 : vector<2x32xf32>, vector<2x32xf32> -> vector<2x64xf32>
    %193 = tpu.concatenate %163, %189 in 1 : vector<2x32xf32>, vector<2x32xf32> -> vector<2x64xf32>
    %c0_36 = arith.constant 0 : index
    %c0_37 = arith.constant 0 : index
    %194 = vector.load %arg4[%c0_36, %c0_37] : memref<64x256xf32, #tpu.memory_space<vmem>>, vector<64x256xf32>
    %cst_38 = arith.constant dense<0.000000e+00> : vector<2x256xf32>
    %195 = tpu.matmul %192, %194, %cst_38 {dimension_numbers = #tpu.dot_dimension_numbers<[1], [0], [0], [1], [0, 0, 1, 1], [], []>} : vector<2x64xf32>, vector<64x256xf32>, vector<2x256xf32> -> vector<2x256xf32>
    %196 = vector.extract_strided_slice %5 {offsets = [6, 0], sizes = [2, 128], strides = [1, 1]} : vector<16x256xf32> to vector<2x128xf32>
    %197 = vector.extract_strided_slice %195 {offsets = [0, 0], sizes = [2, 128], strides = [1, 1]} : vector<2x256xf32> to vector<2x128xf32>
    %198 = arith.addf %196, %197 : vector<2x128xf32>
    %199 = vector.extract_strided_slice %5 {offsets = [8, 128], sizes = [2, 128], strides = [1, 1]} : vector<16x256xf32> to vector<2x128xf32>
    %200 = vector.extract_strided_slice %195 {offsets = [0, 128], sizes = [2, 128], strides = [1, 1]} : vector<2x256xf32> to vector<2x128xf32>
    %201 = arith.addf %199, %200 : vector<2x128xf32>
    %202 = vector.extract_strided_slice %193 {offsets = [0, 0], sizes = [2, 32], strides = [1, 1]} : vector<2x64xf32> to vector<2x32xf32>
    %203 = vector.extract_strided_slice %198 {offsets = [0, 0], sizes = [2, 32], strides = [1, 1]} : vector<2x128xf32> to vector<2x32xf32>
    %204 = arith.negf %203 : vector<2x32xf32>
    %205 = math.exp %204 : vector<2x32xf32>
    %cst_39 = arith.constant 1.000000e+00 : f32
    %206 = vector.broadcast %cst_39 : f32 to vector<2x32xf32>
    %207 = arith.addf %206, %205 : vector<2x32xf32>
    %208 = arith.divf %206, %207 : vector<2x32xf32>
    %209 = vector.extract_strided_slice %198 {offsets = [0, 32], sizes = [2, 32], strides = [1, 1]} : vector<2x128xf32> to vector<2x32xf32>
    %210 = arith.negf %209 : vector<2x32xf32>
    %211 = math.exp %210 : vector<2x32xf32>
    %cst_40 = arith.constant 1.000000e+00 : f32
    %212 = vector.broadcast %cst_40 : f32 to vector<2x32xf32>
    %213 = arith.addf %212, %211 : vector<2x32xf32>
    %214 = arith.divf %212, %213 : vector<2x32xf32>
    %215 = vector.extract_strided_slice %198 {offsets = [0, 64], sizes = [2, 32], strides = [1, 1]} : vector<2x128xf32> to vector<2x32xf32>
    %216 = math.tanh %215 : vector<2x32xf32>
    %217 = vector.extract_strided_slice %198 {offsets = [0, 96], sizes = [2, 32], strides = [1, 1]} : vector<2x128xf32> to vector<2x32xf32>
    %218 = arith.negf %217 : vector<2x32xf32>
    %219 = math.exp %218 : vector<2x32xf32>
    %cst_41 = arith.constant 1.000000e+00 : f32
    %220 = vector.broadcast %cst_41 : f32 to vector<2x32xf32>
    %221 = arith.addf %220, %219 : vector<2x32xf32>
    %222 = arith.divf %220, %221 : vector<2x32xf32>
    %223 = arith.mulf %214, %202 : vector<2x32xf32>
    %224 = arith.mulf %208, %216 : vector<2x32xf32>
    %225 = arith.addf %223, %224 : vector<2x32xf32>
    %226 = math.tanh %225 : vector<2x32xf32>
    %227 = arith.mulf %222, %226 : vector<2x32xf32>
    %228 = vector.extract_strided_slice %193 {offsets = [0, 32], sizes = [2, 32], strides = [1, 1]} : vector<2x64xf32> to vector<2x32xf32>
    %229 = vector.extract_strided_slice %201 {offsets = [0, 0], sizes = [2, 32], strides = [1, 1]} : vector<2x128xf32> to vector<2x32xf32>
    %230 = arith.negf %229 : vector<2x32xf32>
    %231 = math.exp %230 : vector<2x32xf32>
    %cst_42 = arith.constant 1.000000e+00 : f32
    %232 = vector.broadcast %cst_42 : f32 to vector<2x32xf32>
    %233 = arith.addf %232, %231 : vector<2x32xf32>
    %234 = arith.divf %232, %233 : vector<2x32xf32>
    %235 = vector.extract_strided_slice %201 {offsets = [0, 32], sizes = [2, 32], strides = [1, 1]} : vector<2x128xf32> to vector<2x32xf32>
    %236 = arith.negf %235 : vector<2x32xf32>
    %237 = math.exp %236 : vector<2x32xf32>
    %cst_43 = arith.constant 1.000000e+00 : f32
    %238 = vector.broadcast %cst_43 : f32 to vector<2x32xf32>
    %239 = arith.addf %238, %237 : vector<2x32xf32>
    %240 = arith.divf %238, %239 : vector<2x32xf32>
    %241 = vector.extract_strided_slice %201 {offsets = [0, 64], sizes = [2, 32], strides = [1, 1]} : vector<2x128xf32> to vector<2x32xf32>
    %242 = math.tanh %241 : vector<2x32xf32>
    %243 = vector.extract_strided_slice %201 {offsets = [0, 96], sizes = [2, 32], strides = [1, 1]} : vector<2x128xf32> to vector<2x32xf32>
    %244 = arith.negf %243 : vector<2x32xf32>
    %245 = math.exp %244 : vector<2x32xf32>
    %cst_44 = arith.constant 1.000000e+00 : f32
    %246 = vector.broadcast %cst_44 : f32 to vector<2x32xf32>
    %247 = arith.addf %246, %245 : vector<2x32xf32>
    %248 = arith.divf %246, %247 : vector<2x32xf32>
    %249 = arith.mulf %240, %228 : vector<2x32xf32>
    %250 = arith.mulf %234, %242 : vector<2x32xf32>
    %251 = arith.addf %249, %250 : vector<2x32xf32>
    %252 = math.tanh %251 : vector<2x32xf32>
    %253 = arith.mulf %248, %252 : vector<2x32xf32>
    %254 = tpu.concatenate %227, %253 in 1 : vector<2x32xf32>, vector<2x32xf32> -> vector<2x64xf32>
    %255 = tpu.concatenate %225, %251 in 1 : vector<2x32xf32>, vector<2x32xf32> -> vector<2x64xf32>
    %c0_45 = arith.constant 0 : index
    %c0_46 = arith.constant 0 : index
    %256 = vector.load %arg4[%c0_45, %c0_46] : memref<64x256xf32, #tpu.memory_space<vmem>>, vector<64x256xf32>
    %cst_47 = arith.constant dense<0.000000e+00> : vector<2x256xf32>
    %257 = tpu.matmul %254, %256, %cst_47 {dimension_numbers = #tpu.dot_dimension_numbers<[1], [0], [0], [1], [0, 0, 1, 1], [], []>} : vector<2x64xf32>, vector<64x256xf32>, vector<2x256xf32> -> vector<2x256xf32>
    %258 = vector.extract_strided_slice %5 {offsets = [8, 0], sizes = [2, 128], strides = [1, 1]} : vector<16x256xf32> to vector<2x128xf32>
    %259 = vector.extract_strided_slice %257 {offsets = [0, 0], sizes = [2, 128], strides = [1, 1]} : vector<2x256xf32> to vector<2x128xf32>
    %260 = arith.addf %258, %259 : vector<2x128xf32>
    %261 = vector.extract_strided_slice %5 {offsets = [6, 128], sizes = [2, 128], strides = [1, 1]} : vector<16x256xf32> to vector<2x128xf32>
    %262 = vector.extract_strided_slice %257 {offsets = [0, 128], sizes = [2, 128], strides = [1, 1]} : vector<2x256xf32> to vector<2x128xf32>
    %263 = arith.addf %261, %262 : vector<2x128xf32>
    %264 = vector.extract_strided_slice %255 {offsets = [0, 0], sizes = [2, 32], strides = [1, 1]} : vector<2x64xf32> to vector<2x32xf32>
    %265 = vector.extract_strided_slice %260 {offsets = [0, 0], sizes = [2, 32], strides = [1, 1]} : vector<2x128xf32> to vector<2x32xf32>
    %266 = arith.negf %265 : vector<2x32xf32>
    %267 = math.exp %266 : vector<2x32xf32>
    %cst_48 = arith.constant 1.000000e+00 : f32
    %268 = vector.broadcast %cst_48 : f32 to vector<2x32xf32>
    %269 = arith.addf %268, %267 : vector<2x32xf32>
    %270 = arith.divf %268, %269 : vector<2x32xf32>
    %271 = vector.extract_strided_slice %260 {offsets = [0, 32], sizes = [2, 32], strides = [1, 1]} : vector<2x128xf32> to vector<2x32xf32>
    %272 = arith.negf %271 : vector<2x32xf32>
    %273 = math.exp %272 : vector<2x32xf32>
    %cst_49 = arith.constant 1.000000e+00 : f32
    %274 = vector.broadcast %cst_49 : f32 to vector<2x32xf32>
    %275 = arith.addf %274, %273 : vector<2x32xf32>
    %276 = arith.divf %274, %275 : vector<2x32xf32>
    %277 = vector.extract_strided_slice %260 {offsets = [0, 64], sizes = [2, 32], strides = [1, 1]} : vector<2x128xf32> to vector<2x32xf32>
    %278 = math.tanh %277 : vector<2x32xf32>
    %279 = vector.extract_strided_slice %260 {offsets = [0, 96], sizes = [2, 32], strides = [1, 1]} : vector<2x128xf32> to vector<2x32xf32>
    %280 = arith.negf %279 : vector<2x32xf32>
    %281 = math.exp %280 : vector<2x32xf32>
    %cst_50 = arith.constant 1.000000e+00 : f32
    %282 = vector.broadcast %cst_50 : f32 to vector<2x32xf32>
    %283 = arith.addf %282, %281 : vector<2x32xf32>
    %284 = arith.divf %282, %283 : vector<2x32xf32>
    %285 = arith.mulf %276, %264 : vector<2x32xf32>
    %286 = arith.mulf %270, %278 : vector<2x32xf32>
    %287 = arith.addf %285, %286 : vector<2x32xf32>
    %288 = math.tanh %287 : vector<2x32xf32>
    %289 = arith.mulf %284, %288 : vector<2x32xf32>
    %290 = vector.extract_strided_slice %255 {offsets = [0, 32], sizes = [2, 32], strides = [1, 1]} : vector<2x64xf32> to vector<2x32xf32>
    %291 = vector.extract_strided_slice %263 {offsets = [0, 0], sizes = [2, 32], strides = [1, 1]} : vector<2x128xf32> to vector<2x32xf32>
    %292 = arith.negf %291 : vector<2x32xf32>
    %293 = math.exp %292 : vector<2x32xf32>
    %cst_51 = arith.constant 1.000000e+00 : f32
    %294 = vector.broadcast %cst_51 : f32 to vector<2x32xf32>
    %295 = arith.addf %294, %293 : vector<2x32xf32>
    %296 = arith.divf %294, %295 : vector<2x32xf32>
    %297 = vector.extract_strided_slice %263 {offsets = [0, 32], sizes = [2, 32], strides = [1, 1]} : vector<2x128xf32> to vector<2x32xf32>
    %298 = arith.negf %297 : vector<2x32xf32>
    %299 = math.exp %298 : vector<2x32xf32>
    %cst_52 = arith.constant 1.000000e+00 : f32
    %300 = vector.broadcast %cst_52 : f32 to vector<2x32xf32>
    %301 = arith.addf %300, %299 : vector<2x32xf32>
    %302 = arith.divf %300, %301 : vector<2x32xf32>
    %303 = vector.extract_strided_slice %263 {offsets = [0, 64], sizes = [2, 32], strides = [1, 1]} : vector<2x128xf32> to vector<2x32xf32>
    %304 = math.tanh %303 : vector<2x32xf32>
    %305 = vector.extract_strided_slice %263 {offsets = [0, 96], sizes = [2, 32], strides = [1, 1]} : vector<2x128xf32> to vector<2x32xf32>
    %306 = arith.negf %305 : vector<2x32xf32>
    %307 = math.exp %306 : vector<2x32xf32>
    %cst_53 = arith.constant 1.000000e+00 : f32
    %308 = vector.broadcast %cst_53 : f32 to vector<2x32xf32>
    %309 = arith.addf %308, %307 : vector<2x32xf32>
    %310 = arith.divf %308, %309 : vector<2x32xf32>
    %311 = arith.mulf %302, %290 : vector<2x32xf32>
    %312 = arith.mulf %296, %304 : vector<2x32xf32>
    %313 = arith.addf %311, %312 : vector<2x32xf32>
    %314 = math.tanh %313 : vector<2x32xf32>
    %315 = arith.mulf %310, %314 : vector<2x32xf32>
    %316 = tpu.concatenate %289, %315 in 1 : vector<2x32xf32>, vector<2x32xf32> -> vector<2x64xf32>
    %317 = tpu.concatenate %287, %313 in 1 : vector<2x32xf32>, vector<2x32xf32> -> vector<2x64xf32>
    %c0_54 = arith.constant 0 : index
    %c0_55 = arith.constant 0 : index
    %318 = vector.load %arg4[%c0_54, %c0_55] : memref<64x256xf32, #tpu.memory_space<vmem>>, vector<64x256xf32>
    %cst_56 = arith.constant dense<0.000000e+00> : vector<2x256xf32>
    %319 = tpu.matmul %316, %318, %cst_56 {dimension_numbers = #tpu.dot_dimension_numbers<[1], [0], [0], [1], [0, 0, 1, 1], [], []>} : vector<2x64xf32>, vector<64x256xf32>, vector<2x256xf32> -> vector<2x256xf32>
    %320 = vector.extract_strided_slice %5 {offsets = [10, 0], sizes = [2, 128], strides = [1, 1]} : vector<16x256xf32> to vector<2x128xf32>
    %321 = vector.extract_strided_slice %319 {offsets = [0, 0], sizes = [2, 128], strides = [1, 1]} : vector<2x256xf32> to vector<2x128xf32>
    %322 = arith.addf %320, %321 : vector<2x128xf32>
    %323 = vector.extract_strided_slice %5 {offsets = [4, 128], sizes = [2, 128], strides = [1, 1]} : vector<16x256xf32> to vector<2x128xf32>
    %324 = vector.extract_strided_slice %319 {offsets = [0, 128], sizes = [2, 128], strides = [1, 1]} : vector<2x256xf32> to vector<2x128xf32>
    %325 = arith.addf %323, %324 : vector<2x128xf32>
    %326 = vector.extract_strided_slice %317 {offsets = [0, 0], sizes = [2, 32], strides = [1, 1]} : vector<2x64xf32> to vector<2x32xf32>
    %327 = vector.extract_strided_slice %322 {offsets = [0, 0], sizes = [2, 32], strides = [1, 1]} : vector<2x128xf32> to vector<2x32xf32>
    %328 = arith.negf %327 : vector<2x32xf32>
    %329 = math.exp %328 : vector<2x32xf32>
    %cst_57 = arith.constant 1.000000e+00 : f32
    %330 = vector.broadcast %cst_57 : f32 to vector<2x32xf32>
    %331 = arith.addf %330, %329 : vector<2x32xf32>
    %332 = arith.divf %330, %331 : vector<2x32xf32>
    %333 = vector.extract_strided_slice %322 {offsets = [0, 32], sizes = [2, 32], strides = [1, 1]} : vector<2x128xf32> to vector<2x32xf32>
    %334 = arith.negf %333 : vector<2x32xf32>
    %335 = math.exp %334 : vector<2x32xf32>
    %cst_58 = arith.constant 1.000000e+00 : f32
    %336 = vector.broadcast %cst_58 : f32 to vector<2x32xf32>
    %337 = arith.addf %336, %335 : vector<2x32xf32>
    %338 = arith.divf %336, %337 : vector<2x32xf32>
    %339 = vector.extract_strided_slice %322 {offsets = [0, 64], sizes = [2, 32], strides = [1, 1]} : vector<2x128xf32> to vector<2x32xf32>
    %340 = math.tanh %339 : vector<2x32xf32>
    %341 = vector.extract_strided_slice %322 {offsets = [0, 96], sizes = [2, 32], strides = [1, 1]} : vector<2x128xf32> to vector<2x32xf32>
    %342 = arith.negf %341 : vector<2x32xf32>
    %343 = math.exp %342 : vector<2x32xf32>
    %cst_59 = arith.constant 1.000000e+00 : f32
    %344 = vector.broadcast %cst_59 : f32 to vector<2x32xf32>
    %345 = arith.addf %344, %343 : vector<2x32xf32>
    %346 = arith.divf %344, %345 : vector<2x32xf32>
    %347 = arith.mulf %338, %326 : vector<2x32xf32>
    %348 = arith.mulf %332, %340 : vector<2x32xf32>
    %349 = arith.addf %347, %348 : vector<2x32xf32>
    %350 = math.tanh %349 : vector<2x32xf32>
    %351 = arith.mulf %346, %350 : vector<2x32xf32>
    %352 = vector.extract_strided_slice %317 {offsets = [0, 32], sizes = [2, 32], strides = [1, 1]} : vector<2x64xf32> to vector<2x32xf32>
    %353 = vector.extract_strided_slice %325 {offsets = [0, 0], sizes = [2, 32], strides = [1, 1]} : vector<2x128xf32> to vector<2x32xf32>
    %354 = arith.negf %353 : vector<2x32xf32>
    %355 = math.exp %354 : vector<2x32xf32>
    %cst_60 = arith.constant 1.000000e+00 : f32
    %356 = vector.broadcast %cst_60 : f32 to vector<2x32xf32>
    %357 = arith.addf %356, %355 : vector<2x32xf32>
    %358 = arith.divf %356, %357 : vector<2x32xf32>
    %359 = vector.extract_strided_slice %325 {offsets = [0, 32], sizes = [2, 32], strides = [1, 1]} : vector<2x128xf32> to vector<2x32xf32>
    %360 = arith.negf %359 : vector<2x32xf32>
    %361 = math.exp %360 : vector<2x32xf32>
    %cst_61 = arith.constant 1.000000e+00 : f32
    %362 = vector.broadcast %cst_61 : f32 to vector<2x32xf32>
    %363 = arith.addf %362, %361 : vector<2x32xf32>
    %364 = arith.divf %362, %363 : vector<2x32xf32>
    %365 = vector.extract_strided_slice %325 {offsets = [0, 64], sizes = [2, 32], strides = [1, 1]} : vector<2x128xf32> to vector<2x32xf32>
    %366 = math.tanh %365 : vector<2x32xf32>
    %367 = vector.extract_strided_slice %325 {offsets = [0, 96], sizes = [2, 32], strides = [1, 1]} : vector<2x128xf32> to vector<2x32xf32>
    %368 = arith.negf %367 : vector<2x32xf32>
    %369 = math.exp %368 : vector<2x32xf32>
    %cst_62 = arith.constant 1.000000e+00 : f32
    %370 = vector.broadcast %cst_62 : f32 to vector<2x32xf32>
    %371 = arith.addf %370, %369 : vector<2x32xf32>
    %372 = arith.divf %370, %371 : vector<2x32xf32>
    %373 = arith.mulf %364, %352 : vector<2x32xf32>
    %374 = arith.mulf %358, %366 : vector<2x32xf32>
    %375 = arith.addf %373, %374 : vector<2x32xf32>
    %376 = math.tanh %375 : vector<2x32xf32>
    %377 = arith.mulf %372, %376 : vector<2x32xf32>
    %378 = tpu.concatenate %351, %377 in 1 : vector<2x32xf32>, vector<2x32xf32> -> vector<2x64xf32>
    %379 = tpu.concatenate %349, %375 in 1 : vector<2x32xf32>, vector<2x32xf32> -> vector<2x64xf32>
    %c0_63 = arith.constant 0 : index
    %c0_64 = arith.constant 0 : index
    %380 = vector.load %arg4[%c0_63, %c0_64] : memref<64x256xf32, #tpu.memory_space<vmem>>, vector<64x256xf32>
    %cst_65 = arith.constant dense<0.000000e+00> : vector<2x256xf32>
    %381 = tpu.matmul %378, %380, %cst_65 {dimension_numbers = #tpu.dot_dimension_numbers<[1], [0], [0], [1], [0, 0, 1, 1], [], []>} : vector<2x64xf32>, vector<64x256xf32>, vector<2x256xf32> -> vector<2x256xf32>
    %382 = vector.extract_strided_slice %5 {offsets = [12, 0], sizes = [2, 128], strides = [1, 1]} : vector<16x256xf32> to vector<2x128xf32>
    %383 = vector.extract_strided_slice %381 {offsets = [0, 0], sizes = [2, 128], strides = [1, 1]} : vector<2x256xf32> to vector<2x128xf32>
    %384 = arith.addf %382, %383 : vector<2x128xf32>
    %385 = vector.extract_strided_slice %5 {offsets = [2, 128], sizes = [2, 128], strides = [1, 1]} : vector<16x256xf32> to vector<2x128xf32>
    %386 = vector.extract_strided_slice %381 {offsets = [0, 128], sizes = [2, 128], strides = [1, 1]} : vector<2x256xf32> to vector<2x128xf32>
    %387 = arith.addf %385, %386 : vector<2x128xf32>
    %388 = vector.extract_strided_slice %379 {offsets = [0, 0], sizes = [2, 32], strides = [1, 1]} : vector<2x64xf32> to vector<2x32xf32>
    %389 = vector.extract_strided_slice %384 {offsets = [0, 0], sizes = [2, 32], strides = [1, 1]} : vector<2x128xf32> to vector<2x32xf32>
    %390 = arith.negf %389 : vector<2x32xf32>
    %391 = math.exp %390 : vector<2x32xf32>
    %cst_66 = arith.constant 1.000000e+00 : f32
    %392 = vector.broadcast %cst_66 : f32 to vector<2x32xf32>
    %393 = arith.addf %392, %391 : vector<2x32xf32>
    %394 = arith.divf %392, %393 : vector<2x32xf32>
    %395 = vector.extract_strided_slice %384 {offsets = [0, 32], sizes = [2, 32], strides = [1, 1]} : vector<2x128xf32> to vector<2x32xf32>
    %396 = arith.negf %395 : vector<2x32xf32>
    %397 = math.exp %396 : vector<2x32xf32>
    %cst_67 = arith.constant 1.000000e+00 : f32
    %398 = vector.broadcast %cst_67 : f32 to vector<2x32xf32>
    %399 = arith.addf %398, %397 : vector<2x32xf32>
    %400 = arith.divf %398, %399 : vector<2x32xf32>
    %401 = vector.extract_strided_slice %384 {offsets = [0, 64], sizes = [2, 32], strides = [1, 1]} : vector<2x128xf32> to vector<2x32xf32>
    %402 = math.tanh %401 : vector<2x32xf32>
    %403 = vector.extract_strided_slice %384 {offsets = [0, 96], sizes = [2, 32], strides = [1, 1]} : vector<2x128xf32> to vector<2x32xf32>
    %404 = arith.negf %403 : vector<2x32xf32>
    %405 = math.exp %404 : vector<2x32xf32>
    %cst_68 = arith.constant 1.000000e+00 : f32
    %406 = vector.broadcast %cst_68 : f32 to vector<2x32xf32>
    %407 = arith.addf %406, %405 : vector<2x32xf32>
    %408 = arith.divf %406, %407 : vector<2x32xf32>
    %409 = arith.mulf %400, %388 : vector<2x32xf32>
    %410 = arith.mulf %394, %402 : vector<2x32xf32>
    %411 = arith.addf %409, %410 : vector<2x32xf32>
    %412 = math.tanh %411 : vector<2x32xf32>
    %413 = arith.mulf %408, %412 : vector<2x32xf32>
    %414 = vector.extract_strided_slice %379 {offsets = [0, 32], sizes = [2, 32], strides = [1, 1]} : vector<2x64xf32> to vector<2x32xf32>
    %415 = vector.extract_strided_slice %387 {offsets = [0, 0], sizes = [2, 32], strides = [1, 1]} : vector<2x128xf32> to vector<2x32xf32>
    %416 = arith.negf %415 : vector<2x32xf32>
    %417 = math.exp %416 : vector<2x32xf32>
    %cst_69 = arith.constant 1.000000e+00 : f32
    %418 = vector.broadcast %cst_69 : f32 to vector<2x32xf32>
    %419 = arith.addf %418, %417 : vector<2x32xf32>
    %420 = arith.divf %418, %419 : vector<2x32xf32>
    %421 = vector.extract_strided_slice %387 {offsets = [0, 32], sizes = [2, 32], strides = [1, 1]} : vector<2x128xf32> to vector<2x32xf32>
    %422 = arith.negf %421 : vector<2x32xf32>
    %423 = math.exp %422 : vector<2x32xf32>
    %cst_70 = arith.constant 1.000000e+00 : f32
    %424 = vector.broadcast %cst_70 : f32 to vector<2x32xf32>
    %425 = arith.addf %424, %423 : vector<2x32xf32>
    %426 = arith.divf %424, %425 : vector<2x32xf32>
    %427 = vector.extract_strided_slice %387 {offsets = [0, 64], sizes = [2, 32], strides = [1, 1]} : vector<2x128xf32> to vector<2x32xf32>
    %428 = math.tanh %427 : vector<2x32xf32>
    %429 = vector.extract_strided_slice %387 {offsets = [0, 96], sizes = [2, 32], strides = [1, 1]} : vector<2x128xf32> to vector<2x32xf32>
    %430 = arith.negf %429 : vector<2x32xf32>
    %431 = math.exp %430 : vector<2x32xf32>
    %cst_71 = arith.constant 1.000000e+00 : f32
    %432 = vector.broadcast %cst_71 : f32 to vector<2x32xf32>
    %433 = arith.addf %432, %431 : vector<2x32xf32>
    %434 = arith.divf %432, %433 : vector<2x32xf32>
    %435 = arith.mulf %426, %414 : vector<2x32xf32>
    %436 = arith.mulf %420, %428 : vector<2x32xf32>
    %437 = arith.addf %435, %436 : vector<2x32xf32>
    %438 = math.tanh %437 : vector<2x32xf32>
    %439 = arith.mulf %434, %438 : vector<2x32xf32>
    %440 = tpu.concatenate %413, %439 in 1 : vector<2x32xf32>, vector<2x32xf32> -> vector<2x64xf32>
    %441 = tpu.concatenate %411, %437 in 1 : vector<2x32xf32>, vector<2x32xf32> -> vector<2x64xf32>
    %c0_72 = arith.constant 0 : index
    %c0_73 = arith.constant 0 : index
    %442 = vector.load %arg4[%c0_72, %c0_73] : memref<64x256xf32, #tpu.memory_space<vmem>>, vector<64x256xf32>
    %cst_74 = arith.constant dense<0.000000e+00> : vector<2x256xf32>
    %443 = tpu.matmul %440, %442, %cst_74 {dimension_numbers = #tpu.dot_dimension_numbers<[1], [0], [0], [1], [0, 0, 1, 1], [], []>} : vector<2x64xf32>, vector<64x256xf32>, vector<2x256xf32> -> vector<2x256xf32>
    %444 = vector.extract_strided_slice %5 {offsets = [14, 0], sizes = [2, 128], strides = [1, 1]} : vector<16x256xf32> to vector<2x128xf32>
    %445 = vector.extract_strided_slice %443 {offsets = [0, 0], sizes = [2, 128], strides = [1, 1]} : vector<2x256xf32> to vector<2x128xf32>
    %446 = arith.addf %444, %445 : vector<2x128xf32>
    %447 = vector.extract_strided_slice %5 {offsets = [0, 128], sizes = [2, 128], strides = [1, 1]} : vector<16x256xf32> to vector<2x128xf32>
    %448 = vector.extract_strided_slice %443 {offsets = [0, 128], sizes = [2, 128], strides = [1, 1]} : vector<2x256xf32> to vector<2x128xf32>
    %449 = arith.addf %447, %448 : vector<2x128xf32>
    %450 = vector.extract_strided_slice %441 {offsets = [0, 0], sizes = [2, 32], strides = [1, 1]} : vector<2x64xf32> to vector<2x32xf32>
    %451 = vector.extract_strided_slice %446 {offsets = [0, 0], sizes = [2, 32], strides = [1, 1]} : vector<2x128xf32> to vector<2x32xf32>
    %452 = arith.negf %451 : vector<2x32xf32>
    %453 = math.exp %452 : vector<2x32xf32>
    %cst_75 = arith.constant 1.000000e+00 : f32
    %454 = vector.broadcast %cst_75 : f32 to vector<2x32xf32>
    %455 = arith.addf %454, %453 : vector<2x32xf32>
    %456 = arith.divf %454, %455 : vector<2x32xf32>
    %457 = vector.extract_strided_slice %446 {offsets = [0, 32], sizes = [2, 32], strides = [1, 1]} : vector<2x128xf32> to vector<2x32xf32>
    %458 = arith.negf %457 : vector<2x32xf32>
    %459 = math.exp %458 : vector<2x32xf32>
    %cst_76 = arith.constant 1.000000e+00 : f32
    %460 = vector.broadcast %cst_76 : f32 to vector<2x32xf32>
    %461 = arith.addf %460, %459 : vector<2x32xf32>
    %462 = arith.divf %460, %461 : vector<2x32xf32>
    %463 = vector.extract_strided_slice %446 {offsets = [0, 64], sizes = [2, 32], strides = [1, 1]} : vector<2x128xf32> to vector<2x32xf32>
    %464 = math.tanh %463 : vector<2x32xf32>
    %465 = vector.extract_strided_slice %446 {offsets = [0, 96], sizes = [2, 32], strides = [1, 1]} : vector<2x128xf32> to vector<2x32xf32>
    %466 = arith.negf %465 : vector<2x32xf32>
    %467 = math.exp %466 : vector<2x32xf32>
    %cst_77 = arith.constant 1.000000e+00 : f32
    %468 = vector.broadcast %cst_77 : f32 to vector<2x32xf32>
    %469 = arith.addf %468, %467 : vector<2x32xf32>
    %470 = arith.divf %468, %469 : vector<2x32xf32>
    %471 = arith.mulf %462, %450 : vector<2x32xf32>
    %472 = arith.mulf %456, %464 : vector<2x32xf32>
    %473 = arith.addf %471, %472 : vector<2x32xf32>
    %474 = math.tanh %473 : vector<2x32xf32>
    %475 = arith.mulf %470, %474 : vector<2x32xf32>
    %476 = vector.extract_strided_slice %441 {offsets = [0, 32], sizes = [2, 32], strides = [1, 1]} : vector<2x64xf32> to vector<2x32xf32>
    %477 = vector.extract_strided_slice %449 {offsets = [0, 0], sizes = [2, 32], strides = [1, 1]} : vector<2x128xf32> to vector<2x32xf32>
    %478 = arith.negf %477 : vector<2x32xf32>
    %479 = math.exp %478 : vector<2x32xf32>
    %cst_78 = arith.constant 1.000000e+00 : f32
    %480 = vector.broadcast %cst_78 : f32 to vector<2x32xf32>
    %481 = arith.addf %480, %479 : vector<2x32xf32>
    %482 = arith.divf %480, %481 : vector<2x32xf32>
    %483 = vector.extract_strided_slice %449 {offsets = [0, 32], sizes = [2, 32], strides = [1, 1]} : vector<2x128xf32> to vector<2x32xf32>
    %484 = arith.negf %483 : vector<2x32xf32>
    %485 = math.exp %484 : vector<2x32xf32>
    %cst_79 = arith.constant 1.000000e+00 : f32
    %486 = vector.broadcast %cst_79 : f32 to vector<2x32xf32>
    %487 = arith.addf %486, %485 : vector<2x32xf32>
    %488 = arith.divf %486, %487 : vector<2x32xf32>
    %489 = vector.extract_strided_slice %449 {offsets = [0, 64], sizes = [2, 32], strides = [1, 1]} : vector<2x128xf32> to vector<2x32xf32>
    %490 = math.tanh %489 : vector<2x32xf32>
    %491 = vector.extract_strided_slice %449 {offsets = [0, 96], sizes = [2, 32], strides = [1, 1]} : vector<2x128xf32> to vector<2x32xf32>
    %492 = arith.negf %491 : vector<2x32xf32>
    %493 = math.exp %492 : vector<2x32xf32>
    %cst_80 = arith.constant 1.000000e+00 : f32
    %494 = vector.broadcast %cst_80 : f32 to vector<2x32xf32>
    %495 = arith.addf %494, %493 : vector<2x32xf32>
    %496 = arith.divf %494, %495 : vector<2x32xf32>
    %497 = arith.mulf %488, %476 : vector<2x32xf32>
    %498 = arith.mulf %482, %490 : vector<2x32xf32>
    %499 = arith.addf %497, %498 : vector<2x32xf32>
    %500 = math.tanh %499 : vector<2x32xf32>
    %501 = arith.mulf %496, %500 : vector<2x32xf32>
    %502 = tpu.concatenate %475, %501 in 1 : vector<2x32xf32>, vector<2x32xf32> -> vector<2x64xf32>
    %503 = tpu.concatenate %473, %499 in 1 : vector<2x32xf32>, vector<2x32xf32> -> vector<2x64xf32>
    %504 = tpu.concatenate %41, %501 in 1 : vector<2x32xf32>, vector<2x32xf32> -> vector<2x64xf32>
    %505 = tpu.concatenate %103, %439 in 1 : vector<2x32xf32>, vector<2x32xf32> -> vector<2x64xf32>
    %506 = tpu.concatenate %165, %377 in 1 : vector<2x32xf32>, vector<2x32xf32> -> vector<2x64xf32>
    %507 = tpu.concatenate %227, %315 in 1 : vector<2x32xf32>, vector<2x32xf32> -> vector<2x64xf32>
    %508 = tpu.concatenate %289, %253 in 1 : vector<2x32xf32>, vector<2x32xf32> -> vector<2x64xf32>
    %509 = tpu.concatenate %351, %191 in 1 : vector<2x32xf32>, vector<2x32xf32> -> vector<2x64xf32>
    %510 = tpu.concatenate %413, %129 in 1 : vector<2x32xf32>, vector<2x32xf32> -> vector<2x64xf32>
    %511 = tpu.concatenate %475, %67 in 1 : vector<2x32xf32>, vector<2x32xf32> -> vector<2x64xf32>
    %512 = vector.shape_cast %504 : vector<2x64xf32> to vector<1x2x64xf32>
    %513 = vector.shape_cast %505 : vector<2x64xf32> to vector<1x2x64xf32>
    %514 = vector.shape_cast %506 : vector<2x64xf32> to vector<1x2x64xf32>
    %515 = vector.shape_cast %507 : vector<2x64xf32> to vector<1x2x64xf32>
    %516 = vector.shape_cast %508 : vector<2x64xf32> to vector<1x2x64xf32>
    %517 = vector.shape_cast %509 : vector<2x64xf32> to vector<1x2x64xf32>
    %518 = vector.shape_cast %510 : vector<2x64xf32> to vector<1x2x64xf32>
    %519 = vector.shape_cast %511 : vector<2x64xf32> to vector<1x2x64xf32>
    %520 = tpu.concatenate %512, %513, %514, %515, %516, %517, %518, %519 in 0 : vector<1x2x64xf32>, vector<1x2x64xf32>, vector<1x2x64xf32>, vector<1x2x64xf32>, vector<1x2x64xf32>, vector<1x2x64xf32>, vector<1x2x64xf32>, vector<1x2x64xf32> -> vector<8x2x64xf32>
    %c0_81 = arith.constant 0 : index
    %c0_82 = arith.constant 0 : index
    %c0_83 = arith.constant 0 : index
    %521 = vector.load %arg6[%c0_81, %c0_82, %c0_83] : memref<8x2x64xf32, #tpu.memory_space<vmem>>, vector<8x2x64xf32>
    tpu.vector_store %arg6[%c0_81, %c0_82, %c0_83], %520 {strides = array<i32>} : memref<8x2x64xf32, #tpu.memory_space<vmem>>, vector<8x2x64xf32>,
    %c0_84 = arith.constant 0 : index
    %c0_85 = arith.constant 0 : index
    %522 = vector.load %arg7[%c0_84, %c0_85] : memref<2x64xf32, #tpu.memory_space<vmem>>, vector<2x64xf32>
    tpu.vector_store %arg7[%c0_84, %c0_85], %502 {strides = array<i32>} : memref<2x64xf32, #tpu.memory_space<vmem>>, vector<2x64xf32>,
    %c0_86 = arith.constant 0 : index
    %c0_87 = arith.constant 0 : index
    %523 = vector.load %arg8[%c0_86, %c0_87] : memref<2x64xf32, #tpu.memory_space<vmem>>, vector<2x64xf32>
    tpu.vector_store %arg8[%c0_86, %c0_87], %503 {strides = array<i32>} : memref<2x64xf32, #tpu.memory_space<vmem>>, vector<2x64xf32>,
    return
  }
}

module attributes {stable_mosaic.version = 11 : i64} {
  func.func @_lstmal_loss_kernel(%arg0: memref<2x64xf32, #tpu.memory_space<vmem>>, %arg1: memref<2x128xf32, #tpu.memory_space<vmem>>, %arg2: memref<128x128xf32, #tpu.memory_space<vmem>>, %arg3: memref<1x128xf32, #tpu.memory_space<vmem>>, %arg4: memref<128x128xf32, #tpu.memory_space<vmem>>, %arg5: memref<1x128xf32, #tpu.memory_space<vmem>>, %arg6: memref<32x128xf32, #tpu.memory_space<vmem>>, %arg7: memref<1x128xf32, #tpu.memory_space<vmem>>, %arg8: memref<1x1xf32, #tpu.memory_space<vmem>>, %arg9: memref<2x128xf32, #tpu.memory_space<vmem>>) attributes {dimension_semantics = [], scalar_prefetch = 0 : i64, scratch_operands = 0 : i64, tpu.core_type = #tpu.core_type<tc>} {
    %c0 = arith.constant 0 : index
    %c0_0 = arith.constant 0 : index
    %0 = vector.load %arg0[%c0, %c0_0] : memref<2x64xf32, #tpu.memory_space<vmem>>, vector<2x32xf32>
    %c0_1 = arith.constant 0 : index
    %c32 = arith.constant 32 : index
    %1 = vector.load %arg0[%c0_1, %c32] : memref<2x64xf32, #tpu.memory_space<vmem>>, vector<2x32xf32>
    %2 = arith.addf %0, %1 : vector<2x32xf32>
    %c0_2 = arith.constant 0 : index
    %c0_3 = arith.constant 0 : index
    %3 = vector.load %arg1[%c0_2, %c0_3] : memref<2x128xf32, #tpu.memory_space<vmem>>, vector<2x128xf32>
    %c0_4 = arith.constant 0 : index
    %c0_5 = arith.constant 0 : index
    %4 = vector.load %arg2[%c0_4, %c0_5] : memref<128x128xf32, #tpu.memory_space<vmem>>, vector<128x128xf32>
    %cst = arith.constant dense<0.000000e+00> : vector<2x128xf32>
    %5 = tpu.matmul %3, %4, %cst {dimension_numbers = #tpu.dot_dimension_numbers<[1], [0], [0], [1], [0, 0, 1, 1], [], []>} : vector<2x128xf32>, vector<128x128xf32>, vector<2x128xf32> -> vector<2x128xf32>
    %c0_6 = arith.constant 0 : index
    %c0_7 = arith.constant 0 : index
    %6 = vector.load %arg3[%c0_6, %c0_7] : memref<1x128xf32, #tpu.memory_space<vmem>>, vector<1x128xf32>
    %7 = vector.broadcast %6 : vector<1x128xf32> to vector<2x128xf32>
    %8 = arith.addf %5, %7 : vector<2x128xf32>
    %9 = math.tanh %8 : vector<2x128xf32>
    %c0_8 = arith.constant 0 : index
    %c0_9 = arith.constant 0 : index
    %10 = vector.load %arg6[%c0_8, %c0_9] : memref<32x128xf32, #tpu.memory_space<vmem>>, vector<32x128xf32>
    %cst_10 = arith.constant dense<0.000000e+00> : vector<2x128xf32>
    %11 = tpu.matmul %2, %10, %cst_10 {dimension_numbers = #tpu.dot_dimension_numbers<[1], [0], [0], [1], [0, 0, 1, 1], [], []>} : vector<2x32xf32>, vector<32x128xf32>, vector<2x128xf32> -> vector<2x128xf32>
    %c0_11 = arith.constant 0 : index
    %c0_12 = arith.constant 0 : index
    %12 = vector.load %arg7[%c0_11, %c0_12] : memref<1x128xf32, #tpu.memory_space<vmem>>, vector<1x128xf32>
    %13 = vector.broadcast %12 : vector<1x128xf32> to vector<2x128xf32>
    %14 = arith.addf %11, %13 : vector<2x128xf32>
    %15 = math.tanh %14 : vector<2x128xf32>
    %c0_13 = arith.constant 0 : index
    %c0_14 = arith.constant 0 : index
    %16 = vector.load %arg4[%c0_13, %c0_14] : memref<128x128xf32, #tpu.memory_space<vmem>>, vector<128x128xf32>
    %cst_15 = arith.constant dense<0.000000e+00> : vector<2x128xf32>
    %17 = tpu.matmul %9, %16, %cst_15 {dimension_numbers = #tpu.dot_dimension_numbers<[1], [0], [0], [1], [0, 0, 1, 1], [], []>} : vector<2x128xf32>, vector<128x128xf32>, vector<2x128xf32> -> vector<2x128xf32>
    %c0_16 = arith.constant 0 : index
    %c0_17 = arith.constant 0 : index
    %18 = vector.load %arg5[%c0_16, %c0_17] : memref<1x128xf32, #tpu.memory_space<vmem>>, vector<1x128xf32>
    %19 = vector.broadcast %18 : vector<1x128xf32> to vector<2x128xf32>
    %20 = arith.addf %17, %19 : vector<2x128xf32>
    %21 = math.tanh %20 : vector<2x128xf32>
    %22 = arith.subf %21, %3 : vector<2x128xf32>
    %23 = arith.subf %15, %9 : vector<2x128xf32>
    %24 = arith.mulf %22, %22 : vector<2x128xf32>
    %25 = vector.shape_cast %24 : vector<2x128xf32> to vector<1x2x128xf32>
    %cst_18 = arith.constant dense<0.000000e+00> : vector<1xf32>
    %26 = vector.multi_reduction <add>, %25, %cst_18 [1, 2] : vector<1x2x128xf32> to vector<1xf32>
    %27 = vector.shape_cast %26 : vector<1xf32> to vector<1x1x1xf32>
    %28 = vector.extract %27[0, 0, 0] : f32 from vector<1x1x1xf32>
    %cst_19 = arith.constant 2.560000e+02 : f32
    %29 = arith.divf %28, %cst_19 : f32
    %30 = arith.mulf %23, %23 : vector<2x128xf32>
    %31 = vector.shape_cast %30 : vector<2x128xf32> to vector<1x2x128xf32>
    %cst_20 = arith.constant dense<0.000000e+00> : vector<1xf32>
    %32 = vector.multi_reduction <add>, %31, %cst_20 [1, 2] : vector<1x2x128xf32> to vector<1xf32>
    %33 = vector.shape_cast %32 : vector<1xf32> to vector<1x1x1xf32>
    %34 = vector.extract %33[0, 0, 0] : f32 from vector<1x1x1xf32>
    %cst_21 = arith.constant 2.560000e+02 : f32
    %35 = arith.divf %34, %cst_21 : f32
    %36 = arith.addf %29, %35 : f32
    %37 = vector.broadcast %36 : f32 to vector<1x1xf32>
    %c0_22 = arith.constant 0 : index
    %c0_23 = arith.constant 0 : index
    %38 = vector.load %arg8[%c0_22, %c0_23] : memref<1x1xf32, #tpu.memory_space<vmem>>, vector<1x1xf32>
    tpu.vector_store %arg8[%c0_22, %c0_23], %37 {strides = array<i32>} : memref<1x1xf32, #tpu.memory_space<vmem>>, vector<1x1xf32>,
    %c0_24 = arith.constant 0 : index
    %c0_25 = arith.constant 0 : index
    %39 = vector.load %arg9[%c0_24, %c0_25] : memref<2x128xf32, #tpu.memory_space<vmem>>, vector<2x128xf32>
    tpu.vector_store %arg9[%c0_24, %c0_25], %9 {strides = array<i32>} : memref<2x128xf32, #tpu.memory_space<vmem>>, vector<2x128xf32>,
    return
  }
}

module attributes {stable_mosaic.version = 11 : i64} {
  func.func @_bilstm_kernel(%arg0: memref<16x64xf32, #tpu.memory_space<vmem>>, %arg1: memref<2x64xf32, #tpu.memory_space<vmem>>, %arg2: memref<2x64xf32, #tpu.memory_space<vmem>>, %arg3: memref<64x256xf32, #tpu.memory_space<vmem>>, %arg4: memref<64x256xf32, #tpu.memory_space<vmem>>, %arg5: memref<1x256xf32, #tpu.memory_space<vmem>>, %arg6: memref<8x2x64xf32, #tpu.memory_space<vmem>>, %arg7: memref<2x64xf32, #tpu.memory_space<vmem>>, %arg8: memref<2x64xf32, #tpu.memory_space<vmem>>) attributes {dimension_semantics = [], scalar_prefetch = 0 : i64, scratch_operands = 0 : i64, tpu.core_type = #tpu.core_type<tc>} {
    %c0 = arith.constant 0 : index
    %c0_0 = arith.constant 0 : index
    %0 = vector.load %arg0[%c0, %c0_0] : memref<16x64xf32, #tpu.memory_space<vmem>>, vector<16x64xf32>
    %c0_1 = arith.constant 0 : index
    %c0_2 = arith.constant 0 : index
    %1 = vector.load %arg3[%c0_1, %c0_2] : memref<64x256xf32, #tpu.memory_space<vmem>>, vector<64x256xf32>
    %cst = arith.constant dense<0.000000e+00> : vector<16x256xf32>
    %2 = tpu.matmul %0, %1, %cst {dimension_numbers = #tpu.dot_dimension_numbers<[1], [0], [0], [1], [0, 0, 1, 1], [], []>} : vector<16x64xf32>, vector<64x256xf32>, vector<16x256xf32> -> vector<16x256xf32>
    %c0_3 = arith.constant 0 : index
    %c0_4 = arith.constant 0 : index
    %3 = vector.load %arg5[%c0_3, %c0_4] : memref<1x256xf32, #tpu.memory_space<vmem>>, vector<1x256xf32>
    %4 = vector.broadcast %3 : vector<1x256xf32> to vector<16x256xf32>
    %5 = arith.addf %2, %4 : vector<16x256xf32>
    %c0_5 = arith.constant 0 : index
    %c0_6 = arith.constant 0 : index
    %6 = vector.load %arg1[%c0_5, %c0_6] : memref<2x64xf32, #tpu.memory_space<vmem>>, vector<2x64xf32>
    %c0_7 = arith.constant 0 : index
    %c0_8 = arith.constant 0 : index
    %7 = vector.load %arg2[%c0_7, %c0_8] : memref<2x64xf32, #tpu.memory_space<vmem>>, vector<2x64xf32>
    %c0_9 = arith.constant 0 : index
    %c0_10 = arith.constant 0 : index
    %8 = vector.load %arg4[%c0_9, %c0_10] : memref<64x256xf32, #tpu.memory_space<vmem>>, vector<64x256xf32>
    %cst_11 = arith.constant dense<0.000000e+00> : vector<2x256xf32>
    %9 = tpu.matmul %6, %8, %cst_11 {dimension_numbers = #tpu.dot_dimension_numbers<[1], [0], [0], [1], [0, 0, 1, 1], [], []>} : vector<2x64xf32>, vector<64x256xf32>, vector<2x256xf32> -> vector<2x256xf32>
    %10 = vector.extract_strided_slice %5 {offsets = [0, 0], sizes = [2, 128], strides = [1, 1]} : vector<16x256xf32> to vector<2x128xf32>
    %11 = vector.extract_strided_slice %9 {offsets = [0, 0], sizes = [2, 128], strides = [1, 1]} : vector<2x256xf32> to vector<2x128xf32>
    %12 = arith.addf %10, %11 : vector<2x128xf32>
    %13 = vector.extract_strided_slice %5 {offsets = [14, 128], sizes = [2, 128], strides = [1, 1]} : vector<16x256xf32> to vector<2x128xf32>
    %14 = vector.extract_strided_slice %9 {offsets = [0, 128], sizes = [2, 128], strides = [1, 1]} : vector<2x256xf32> to vector<2x128xf32>
    %15 = arith.addf %13, %14 : vector<2x128xf32>
    %16 = vector.extract_strided_slice %7 {offsets = [0, 0], sizes = [2, 32], strides = [1, 1]} : vector<2x64xf32> to vector<2x32xf32>
    %17 = vector.extract_strided_slice %12 {offsets = [0, 0], sizes = [2, 32], strides = [1, 1]} : vector<2x128xf32> to vector<2x32xf32>
    %18 = arith.negf %17 : vector<2x32xf32>
    %19 = math.exp %18 : vector<2x32xf32>
    %cst_12 = arith.constant 1.000000e+00 : f32
    %20 = vector.broadcast %cst_12 : f32 to vector<2x32xf32>
    %21 = arith.addf %20, %19 : vector<2x32xf32>
    %22 = arith.divf %20, %21 : vector<2x32xf32>
    %23 = vector.extract_strided_slice %12 {offsets = [0, 32], sizes = [2, 32], strides = [1, 1]} : vector<2x128xf32> to vector<2x32xf32>
    %24 = arith.negf %23 : vector<2x32xf32>
    %25 = math.exp %24 : vector<2x32xf32>
    %cst_13 = arith.constant 1.000000e+00 : f32
    %26 = vector.broadcast %cst_13 : f32 to vector<2x32xf32>
    %27 = arith.addf %26, %25 : vector<2x32xf32>
    %28 = arith.divf %26, %27 : vector<2x32xf32>
    %29 = vector.extract_strided_slice %12 {offsets = [0, 64], sizes = [2, 32], strides = [1, 1]} : vector<2x128xf32> to vector<2x32xf32>
    %30 = math.tanh %29 : vector<2x32xf32>
    %31 = vector.extract_strided_slice %12 {offsets = [0, 96], sizes = [2, 32], strides = [1, 1]} : vector<2x128xf32> to vector<2x32xf32>
    %32 = arith.negf %31 : vector<2x32xf32>
    %33 = math.exp %32 : vector<2x32xf32>
    %cst_14 = arith.constant 1.000000e+00 : f32
    %34 = vector.broadcast %cst_14 : f32 to vector<2x32xf32>
    %35 = arith.addf %34, %33 : vector<2x32xf32>
    %36 = arith.divf %34, %35 : vector<2x32xf32>
    %37 = arith.mulf %28, %16 : vector<2x32xf32>
    %38 = arith.mulf %22, %30 : vector<2x32xf32>
    %39 = arith.addf %37, %38 : vector<2x32xf32>
    %40 = math.tanh %39 : vector<2x32xf32>
    %41 = arith.mulf %36, %40 : vector<2x32xf32>
    %42 = vector.extract_strided_slice %7 {offsets = [0, 32], sizes = [2, 32], strides = [1, 1]} : vector<2x64xf32> to vector<2x32xf32>
    %43 = vector.extract_strided_slice %15 {offsets = [0, 0], sizes = [2, 32], strides = [1, 1]} : vector<2x128xf32> to vector<2x32xf32>
    %44 = arith.negf %43 : vector<2x32xf32>
    %45 = math.exp %44 : vector<2x32xf32>
    %cst_15 = arith.constant 1.000000e+00 : f32
    %46 = vector.broadcast %cst_15 : f32 to vector<2x32xf32>
    %47 = arith.addf %46, %45 : vector<2x32xf32>
    %48 = arith.divf %46, %47 : vector<2x32xf32>
    %49 = vector.extract_strided_slice %15 {offsets = [0, 32], sizes = [2, 32], strides = [1, 1]} : vector<2x128xf32> to vector<2x32xf32>
    %50 = arith.negf %49 : vector<2x32xf32>
    %51 = math.exp %50 : vector<2x32xf32>
    %cst_16 = arith.constant 1.000000e+00 : f32
    %52 = vector.broadcast %cst_16 : f32 to vector<2x32xf32>
    %53 = arith.addf %52, %51 : vector<2x32xf32>
    %54 = arith.divf %52, %53 : vector<2x32xf32>
    %55 = vector.extract_strided_slice %15 {offsets = [0, 64], sizes = [2, 32], strides = [1, 1]} : vector<2x128xf32> to vector<2x32xf32>
    %56 = math.tanh %55 : vector<2x32xf32>
    %57 = vector.extract_strided_slice %15 {offsets = [0, 96], sizes = [2, 32], strides = [1, 1]} : vector<2x128xf32> to vector<2x32xf32>
    %58 = arith.negf %57 : vector<2x32xf32>
    %59 = math.exp %58 : vector<2x32xf32>
    %cst_17 = arith.constant 1.000000e+00 : f32
    %60 = vector.broadcast %cst_17 : f32 to vector<2x32xf32>
    %61 = arith.addf %60, %59 : vector<2x32xf32>
    %62 = arith.divf %60, %61 : vector<2x32xf32>
    %63 = arith.mulf %54, %42 : vector<2x32xf32>
    %64 = arith.mulf %48, %56 : vector<2x32xf32>
    %65 = arith.addf %63, %64 : vector<2x32xf32>
    %66 = math.tanh %65 : vector<2x32xf32>
    %67 = arith.mulf %62, %66 : vector<2x32xf32>
    %68 = tpu.concatenate %41, %67 in 1 : vector<2x32xf32>, vector<2x32xf32> -> vector<2x64xf32>
    %69 = tpu.concatenate %39, %65 in 1 : vector<2x32xf32>, vector<2x32xf32> -> vector<2x64xf32>
    %c0_18 = arith.constant 0 : index
    %c0_19 = arith.constant 0 : index
    %70 = vector.load %arg4[%c0_18, %c0_19] : memref<64x256xf32, #tpu.memory_space<vmem>>, vector<64x256xf32>
    %cst_20 = arith.constant dense<0.000000e+00> : vector<2x256xf32>
    %71 = tpu.matmul %68, %70, %cst_20 {dimension_numbers = #tpu.dot_dimension_numbers<[1], [0], [0], [1], [0, 0, 1, 1], [], []>} : vector<2x64xf32>, vector<64x256xf32>, vector<2x256xf32> -> vector<2x256xf32>
    %72 = vector.extract_strided_slice %5 {offsets = [2, 0], sizes = [2, 128], strides = [1, 1]} : vector<16x256xf32> to vector<2x128xf32>
    %73 = vector.extract_strided_slice %71 {offsets = [0, 0], sizes = [2, 128], strides = [1, 1]} : vector<2x256xf32> to vector<2x128xf32>
    %74 = arith.addf %72, %73 : vector<2x128xf32>
    %75 = vector.extract_strided_slice %5 {offsets = [12, 128], sizes = [2, 128], strides = [1, 1]} : vector<16x256xf32> to vector<2x128xf32>
    %76 = vector.extract_strided_slice %71 {offsets = [0, 128], sizes = [2, 128], strides = [1, 1]} : vector<2x256xf32> to vector<2x128xf32>
    %77 = arith.addf %75, %76 : vector<2x128xf32>
    %78 = vector.extract_strided_slice %69 {offsets = [0, 0], sizes = [2, 32], strides = [1, 1]} : vector<2x64xf32> to vector<2x32xf32>
    %79 = vector.extract_strided_slice %74 {offsets = [0, 0], sizes = [2, 32], strides = [1, 1]} : vector<2x128xf32> to vector<2x32xf32>
    %80 = arith.negf %79 : vector<2x32xf32>
    %81 = math.exp %80 : vector<2x32xf32>
    %cst_21 = arith.constant 1.000000e+00 : f32
    %82 = vector.broadcast %cst_21 : f32 to vector<2x32xf32>
    %83 = arith.addf %82, %81 : vector<2x32xf32>
    %84 = arith.divf %82, %83 : vector<2x32xf32>
    %85 = vector.extract_strided_slice %74 {offsets = [0, 32], sizes = [2, 32], strides = [1, 1]} : vector<2x128xf32> to vector<2x32xf32>
    %86 = arith.negf %85 : vector<2x32xf32>
    %87 = math.exp %86 : vector<2x32xf32>
    %cst_22 = arith.constant 1.000000e+00 : f32
    %88 = vector.broadcast %cst_22 : f32 to vector<2x32xf32>
    %89 = arith.addf %88, %87 : vector<2x32xf32>
    %90 = arith.divf %88, %89 : vector<2x32xf32>
    %91 = vector.extract_strided_slice %74 {offsets = [0, 64], sizes = [2, 32], strides = [1, 1]} : vector<2x128xf32> to vector<2x32xf32>
    %92 = math.tanh %91 : vector<2x32xf32>
    %93 = vector.extract_strided_slice %74 {offsets = [0, 96], sizes = [2, 32], strides = [1, 1]} : vector<2x128xf32> to vector<2x32xf32>
    %94 = arith.negf %93 : vector<2x32xf32>
    %95 = math.exp %94 : vector<2x32xf32>
    %cst_23 = arith.constant 1.000000e+00 : f32
    %96 = vector.broadcast %cst_23 : f32 to vector<2x32xf32>
    %97 = arith.addf %96, %95 : vector<2x32xf32>
    %98 = arith.divf %96, %97 : vector<2x32xf32>
    %99 = arith.mulf %90, %78 : vector<2x32xf32>
    %100 = arith.mulf %84, %92 : vector<2x32xf32>
    %101 = arith.addf %99, %100 : vector<2x32xf32>
    %102 = math.tanh %101 : vector<2x32xf32>
    %103 = arith.mulf %98, %102 : vector<2x32xf32>
    %104 = vector.extract_strided_slice %69 {offsets = [0, 32], sizes = [2, 32], strides = [1, 1]} : vector<2x64xf32> to vector<2x32xf32>
    %105 = vector.extract_strided_slice %77 {offsets = [0, 0], sizes = [2, 32], strides = [1, 1]} : vector<2x128xf32> to vector<2x32xf32>
    %106 = arith.negf %105 : vector<2x32xf32>
    %107 = math.exp %106 : vector<2x32xf32>
    %cst_24 = arith.constant 1.000000e+00 : f32
    %108 = vector.broadcast %cst_24 : f32 to vector<2x32xf32>
    %109 = arith.addf %108, %107 : vector<2x32xf32>
    %110 = arith.divf %108, %109 : vector<2x32xf32>
    %111 = vector.extract_strided_slice %77 {offsets = [0, 32], sizes = [2, 32], strides = [1, 1]} : vector<2x128xf32> to vector<2x32xf32>
    %112 = arith.negf %111 : vector<2x32xf32>
    %113 = math.exp %112 : vector<2x32xf32>
    %cst_25 = arith.constant 1.000000e+00 : f32
    %114 = vector.broadcast %cst_25 : f32 to vector<2x32xf32>
    %115 = arith.addf %114, %113 : vector<2x32xf32>
    %116 = arith.divf %114, %115 : vector<2x32xf32>
    %117 = vector.extract_strided_slice %77 {offsets = [0, 64], sizes = [2, 32], strides = [1, 1]} : vector<2x128xf32> to vector<2x32xf32>
    %118 = math.tanh %117 : vector<2x32xf32>
    %119 = vector.extract_strided_slice %77 {offsets = [0, 96], sizes = [2, 32], strides = [1, 1]} : vector<2x128xf32> to vector<2x32xf32>
    %120 = arith.negf %119 : vector<2x32xf32>
    %121 = math.exp %120 : vector<2x32xf32>
    %cst_26 = arith.constant 1.000000e+00 : f32
    %122 = vector.broadcast %cst_26 : f32 to vector<2x32xf32>
    %123 = arith.addf %122, %121 : vector<2x32xf32>
    %124 = arith.divf %122, %123 : vector<2x32xf32>
    %125 = arith.mulf %116, %104 : vector<2x32xf32>
    %126 = arith.mulf %110, %118 : vector<2x32xf32>
    %127 = arith.addf %125, %126 : vector<2x32xf32>
    %128 = math.tanh %127 : vector<2x32xf32>
    %129 = arith.mulf %124, %128 : vector<2x32xf32>
    %130 = tpu.concatenate %103, %129 in 1 : vector<2x32xf32>, vector<2x32xf32> -> vector<2x64xf32>
    %131 = tpu.concatenate %101, %127 in 1 : vector<2x32xf32>, vector<2x32xf32> -> vector<2x64xf32>
    %c0_27 = arith.constant 0 : index
    %c0_28 = arith.constant 0 : index
    %132 = vector.load %arg4[%c0_27, %c0_28] : memref<64x256xf32, #tpu.memory_space<vmem>>, vector<64x256xf32>
    %cst_29 = arith.constant dense<0.000000e+00> : vector<2x256xf32>
    %133 = tpu.matmul %130, %132, %cst_29 {dimension_numbers = #tpu.dot_dimension_numbers<[1], [0], [0], [1], [0, 0, 1, 1], [], []>} : vector<2x64xf32>, vector<64x256xf32>, vector<2x256xf32> -> vector<2x256xf32>
    %134 = vector.extract_strided_slice %5 {offsets = [4, 0], sizes = [2, 128], strides = [1, 1]} : vector<16x256xf32> to vector<2x128xf32>
    %135 = vector.extract_strided_slice %133 {offsets = [0, 0], sizes = [2, 128], strides = [1, 1]} : vector<2x256xf32> to vector<2x128xf32>
    %136 = arith.addf %134, %135 : vector<2x128xf32>
    %137 = vector.extract_strided_slice %5 {offsets = [10, 128], sizes = [2, 128], strides = [1, 1]} : vector<16x256xf32> to vector<2x128xf32>
    %138 = vector.extract_strided_slice %133 {offsets = [0, 128], sizes = [2, 128], strides = [1, 1]} : vector<2x256xf32> to vector<2x128xf32>
    %139 = arith.addf %137, %138 : vector<2x128xf32>
    %140 = vector.extract_strided_slice %131 {offsets = [0, 0], sizes = [2, 32], strides = [1, 1]} : vector<2x64xf32> to vector<2x32xf32>
    %141 = vector.extract_strided_slice %136 {offsets = [0, 0], sizes = [2, 32], strides = [1, 1]} : vector<2x128xf32> to vector<2x32xf32>
    %142 = arith.negf %141 : vector<2x32xf32>
    %143 = math.exp %142 : vector<2x32xf32>
    %cst_30 = arith.constant 1.000000e+00 : f32
    %144 = vector.broadcast %cst_30 : f32 to vector<2x32xf32>
    %145 = arith.addf %144, %143 : vector<2x32xf32>
    %146 = arith.divf %144, %145 : vector<2x32xf32>
    %147 = vector.extract_strided_slice %136 {offsets = [0, 32], sizes = [2, 32], strides = [1, 1]} : vector<2x128xf32> to vector<2x32xf32>
    %148 = arith.negf %147 : vector<2x32xf32>
    %149 = math.exp %148 : vector<2x32xf32>
    %cst_31 = arith.constant 1.000000e+00 : f32
    %150 = vector.broadcast %cst_31 : f32 to vector<2x32xf32>
    %151 = arith.addf %150, %149 : vector<2x32xf32>
    %152 = arith.divf %150, %151 : vector<2x32xf32>
    %153 = vector.extract_strided_slice %136 {offsets = [0, 64], sizes = [2, 32], strides = [1, 1]} : vector<2x128xf32> to vector<2x32xf32>
    %154 = math.tanh %153 : vector<2x32xf32>
    %155 = vector.extract_strided_slice %136 {offsets = [0, 96], sizes = [2, 32], strides = [1, 1]} : vector<2x128xf32> to vector<2x32xf32>
    %156 = arith.negf %155 : vector<2x32xf32>
    %157 = math.exp %156 : vector<2x32xf32>
    %cst_32 = arith.constant 1.000000e+00 : f32
    %158 = vector.broadcast %cst_32 : f32 to vector<2x32xf32>
    %159 = arith.addf %158, %157 : vector<2x32xf32>
    %160 = arith.divf %158, %159 : vector<2x32xf32>
    %161 = arith.mulf %152, %140 : vector<2x32xf32>
    %162 = arith.mulf %146, %154 : vector<2x32xf32>
    %163 = arith.addf %161, %162 : vector<2x32xf32>
    %164 = math.tanh %163 : vector<2x32xf32>
    %165 = arith.mulf %160, %164 : vector<2x32xf32>
    %166 = vector.extract_strided_slice %131 {offsets = [0, 32], sizes = [2, 32], strides = [1, 1]} : vector<2x64xf32> to vector<2x32xf32>
    %167 = vector.extract_strided_slice %139 {offsets = [0, 0], sizes = [2, 32], strides = [1, 1]} : vector<2x128xf32> to vector<2x32xf32>
    %168 = arith.negf %167 : vector<2x32xf32>
    %169 = math.exp %168 : vector<2x32xf32>
    %cst_33 = arith.constant 1.000000e+00 : f32
    %170 = vector.broadcast %cst_33 : f32 to vector<2x32xf32>
    %171 = arith.addf %170, %169 : vector<2x32xf32>
    %172 = arith.divf %170, %171 : vector<2x32xf32>
    %173 = vector.extract_strided_slice %139 {offsets = [0, 32], sizes = [2, 32], strides = [1, 1]} : vector<2x128xf32> to vector<2x32xf32>
    %174 = arith.negf %173 : vector<2x32xf32>
    %175 = math.exp %174 : vector<2x32xf32>
    %cst_34 = arith.constant 1.000000e+00 : f32
    %176 = vector.broadcast %cst_34 : f32 to vector<2x32xf32>
    %177 = arith.addf %176, %175 : vector<2x32xf32>
    %178 = arith.divf %176, %177 : vector<2x32xf32>
    %179 = vector.extract_strided_slice %139 {offsets = [0, 64], sizes = [2, 32], strides = [1, 1]} : vector<2x128xf32> to vector<2x32xf32>
    %180 = math.tanh %179 : vector<2x32xf32>
    %181 = vector.extract_strided_slice %139 {offsets = [0, 96], sizes = [2, 32], strides = [1, 1]} : vector<2x128xf32> to vector<2x32xf32>
    %182 = arith.negf %181 : vector<2x32xf32>
    %183 = math.exp %182 : vector<2x32xf32>
    %cst_35 = arith.constant 1.000000e+00 : f32
    %184 = vector.broadcast %cst_35 : f32 to vector<2x32xf32>
    %185 = arith.addf %184, %183 : vector<2x32xf32>
    %186 = arith.divf %184, %185 : vector<2x32xf32>
    %187 = arith.mulf %178, %166 : vector<2x32xf32>
    %188 = arith.mulf %172, %180 : vector<2x32xf32>
    %189 = arith.addf %187, %188 : vector<2x32xf32>
    %190 = math.tanh %189 : vector<2x32xf32>
    %191 = arith.mulf %186, %190 : vector<2x32xf32>
    %192 = tpu.concatenate %165, %191 in 1 : vector<2x32xf32>, vector<2x32xf32> -> vector<2x64xf32>
    %193 = tpu.concatenate %163, %189 in 1 : vector<2x32xf32>, vector<2x32xf32> -> vector<2x64xf32>
    %c0_36 = arith.constant 0 : index
    %c0_37 = arith.constant 0 : index
    %194 = vector.load %arg4[%c0_36, %c0_37] : memref<64x256xf32, #tpu.memory_space<vmem>>, vector<64x256xf32>
    %cst_38 = arith.constant dense<0.000000e+00> : vector<2x256xf32>
    %195 = tpu.matmul %192, %194, %cst_38 {dimension_numbers = #tpu.dot_dimension_numbers<[1], [0], [0], [1], [0, 0, 1, 1], [], []>} : vector<2x64xf32>, vector<64x256xf32>, vector<2x256xf32> -> vector<2x256xf32>
    %196 = vector.extract_strided_slice %5 {offsets = [6, 0], sizes = [2, 128], strides = [1, 1]} : vector<16x256xf32> to vector<2x128xf32>
    %197 = vector.extract_strided_slice %195 {offsets = [0, 0], sizes = [2, 128], strides = [1, 1]} : vector<2x256xf32> to vector<2x128xf32>
    %198 = arith.addf %196, %197 : vector<2x128xf32>
    %199 = vector.extract_strided_slice %5 {offsets = [8, 128], sizes = [2, 128], strides = [1, 1]} : vector<16x256xf32> to vector<2x128xf32>
    %200 = vector.extract_strided_slice %195 {offsets = [0, 128], sizes = [2, 128], strides = [1, 1]} : vector<2x256xf32> to vector<2x128xf32>
    %201 = arith.addf %199, %200 : vector<2x128xf32>
    %202 = vector.extract_strided_slice %193 {offsets = [0, 0], sizes = [2, 32], strides = [1, 1]} : vector<2x64xf32> to vector<2x32xf32>
    %203 = vector.extract_strided_slice %198 {offsets = [0, 0], sizes = [2, 32], strides = [1, 1]} : vector<2x128xf32> to vector<2x32xf32>
    %204 = arith.negf %203 : vector<2x32xf32>
    %205 = math.exp %204 : vector<2x32xf32>
    %cst_39 = arith.constant 1.000000e+00 : f32
    %206 = vector.broadcast %cst_39 : f32 to vector<2x32xf32>
    %207 = arith.addf %206, %205 : vector<2x32xf32>
    %208 = arith.divf %206, %207 : vector<2x32xf32>
    %209 = vector.extract_strided_slice %198 {offsets = [0, 32], sizes = [2, 32], strides = [1, 1]} : vector<2x128xf32> to vector<2x32xf32>
    %210 = arith.negf %209 : vector<2x32xf32>
    %211 = math.exp %210 : vector<2x32xf32>
    %cst_40 = arith.constant 1.000000e+00 : f32
    %212 = vector.broadcast %cst_40 : f32 to vector<2x32xf32>
    %213 = arith.addf %212, %211 : vector<2x32xf32>
    %214 = arith.divf %212, %213 : vector<2x32xf32>
    %215 = vector.extract_strided_slice %198 {offsets = [0, 64], sizes = [2, 32], strides = [1, 1]} : vector<2x128xf32> to vector<2x32xf32>
    %216 = math.tanh %215 : vector<2x32xf32>
    %217 = vector.extract_strided_slice %198 {offsets = [0, 96], sizes = [2, 32], strides = [1, 1]} : vector<2x128xf32> to vector<2x32xf32>
    %218 = arith.negf %217 : vector<2x32xf32>
    %219 = math.exp %218 : vector<2x32xf32>
    %cst_41 = arith.constant 1.000000e+00 : f32
    %220 = vector.broadcast %cst_41 : f32 to vector<2x32xf32>
    %221 = arith.addf %220, %219 : vector<2x32xf32>
    %222 = arith.divf %220, %221 : vector<2x32xf32>
    %223 = arith.mulf %214, %202 : vector<2x32xf32>
    %224 = arith.mulf %208, %216 : vector<2x32xf32>
    %225 = arith.addf %223, %224 : vector<2x32xf32>
    %226 = math.tanh %225 : vector<2x32xf32>
    %227 = arith.mulf %222, %226 : vector<2x32xf32>
    %228 = vector.extract_strided_slice %193 {offsets = [0, 32], sizes = [2, 32], strides = [1, 1]} : vector<2x64xf32> to vector<2x32xf32>
    %229 = vector.extract_strided_slice %201 {offsets = [0, 0], sizes = [2, 32], strides = [1, 1]} : vector<2x128xf32> to vector<2x32xf32>
    %230 = arith.negf %229 : vector<2x32xf32>
    %231 = math.exp %230 : vector<2x32xf32>
    %cst_42 = arith.constant 1.000000e+00 : f32
    %232 = vector.broadcast %cst_42 : f32 to vector<2x32xf32>
    %233 = arith.addf %232, %231 : vector<2x32xf32>
    %234 = arith.divf %232, %233 : vector<2x32xf32>
    %235 = vector.extract_strided_slice %201 {offsets = [0, 32], sizes = [2, 32], strides = [1, 1]} : vector<2x128xf32> to vector<2x32xf32>
    %236 = arith.negf %235 : vector<2x32xf32>
    %237 = math.exp %236 : vector<2x32xf32>
    %cst_43 = arith.constant 1.000000e+00 : f32
    %238 = vector.broadcast %cst_43 : f32 to vector<2x32xf32>
    %239 = arith.addf %238, %237 : vector<2x32xf32>
    %240 = arith.divf %238, %239 : vector<2x32xf32>
    %241 = vector.extract_strided_slice %201 {offsets = [0, 64], sizes = [2, 32], strides = [1, 1]} : vector<2x128xf32> to vector<2x32xf32>
    %242 = math.tanh %241 : vector<2x32xf32>
    %243 = vector.extract_strided_slice %201 {offsets = [0, 96], sizes = [2, 32], strides = [1, 1]} : vector<2x128xf32> to vector<2x32xf32>
    %244 = arith.negf %243 : vector<2x32xf32>
    %245 = math.exp %244 : vector<2x32xf32>
    %cst_44 = arith.constant 1.000000e+00 : f32
    %246 = vector.broadcast %cst_44 : f32 to vector<2x32xf32>
    %247 = arith.addf %246, %245 : vector<2x32xf32>
    %248 = arith.divf %246, %247 : vector<2x32xf32>
    %249 = arith.mulf %240, %228 : vector<2x32xf32>
    %250 = arith.mulf %234, %242 : vector<2x32xf32>
    %251 = arith.addf %249, %250 : vector<2x32xf32>
    %252 = math.tanh %251 : vector<2x32xf32>
    %253 = arith.mulf %248, %252 : vector<2x32xf32>
    %254 = tpu.concatenate %227, %253 in 1 : vector<2x32xf32>, vector<2x32xf32> -> vector<2x64xf32>
    %255 = tpu.concatenate %225, %251 in 1 : vector<2x32xf32>, vector<2x32xf32> -> vector<2x64xf32>
    %c0_45 = arith.constant 0 : index
    %c0_46 = arith.constant 0 : index
    %256 = vector.load %arg4[%c0_45, %c0_46] : memref<64x256xf32, #tpu.memory_space<vmem>>, vector<64x256xf32>
    %cst_47 = arith.constant dense<0.000000e+00> : vector<2x256xf32>
    %257 = tpu.matmul %254, %256, %cst_47 {dimension_numbers = #tpu.dot_dimension_numbers<[1], [0], [0], [1], [0, 0, 1, 1], [], []>} : vector<2x64xf32>, vector<64x256xf32>, vector<2x256xf32> -> vector<2x256xf32>
    %258 = vector.extract_strided_slice %5 {offsets = [8, 0], sizes = [2, 128], strides = [1, 1]} : vector<16x256xf32> to vector<2x128xf32>
    %259 = vector.extract_strided_slice %257 {offsets = [0, 0], sizes = [2, 128], strides = [1, 1]} : vector<2x256xf32> to vector<2x128xf32>
    %260 = arith.addf %258, %259 : vector<2x128xf32>
    %261 = vector.extract_strided_slice %5 {offsets = [6, 128], sizes = [2, 128], strides = [1, 1]} : vector<16x256xf32> to vector<2x128xf32>
    %262 = vector.extract_strided_slice %257 {offsets = [0, 128], sizes = [2, 128], strides = [1, 1]} : vector<2x256xf32> to vector<2x128xf32>
    %263 = arith.addf %261, %262 : vector<2x128xf32>
    %264 = vector.extract_strided_slice %255 {offsets = [0, 0], sizes = [2, 32], strides = [1, 1]} : vector<2x64xf32> to vector<2x32xf32>
    %265 = vector.extract_strided_slice %260 {offsets = [0, 0], sizes = [2, 32], strides = [1, 1]} : vector<2x128xf32> to vector<2x32xf32>
    %266 = arith.negf %265 : vector<2x32xf32>
    %267 = math.exp %266 : vector<2x32xf32>
    %cst_48 = arith.constant 1.000000e+00 : f32
    %268 = vector.broadcast %cst_48 : f32 to vector<2x32xf32>
    %269 = arith.addf %268, %267 : vector<2x32xf32>
    %270 = arith.divf %268, %269 : vector<2x32xf32>
    %271 = vector.extract_strided_slice %260 {offsets = [0, 32], sizes = [2, 32], strides = [1, 1]} : vector<2x128xf32> to vector<2x32xf32>
    %272 = arith.negf %271 : vector<2x32xf32>
    %273 = math.exp %272 : vector<2x32xf32>
    %cst_49 = arith.constant 1.000000e+00 : f32
    %274 = vector.broadcast %cst_49 : f32 to vector<2x32xf32>
    %275 = arith.addf %274, %273 : vector<2x32xf32>
    %276 = arith.divf %274, %275 : vector<2x32xf32>
    %277 = vector.extract_strided_slice %260 {offsets = [0, 64], sizes = [2, 32], strides = [1, 1]} : vector<2x128xf32> to vector<2x32xf32>
    %278 = math.tanh %277 : vector<2x32xf32>
    %279 = vector.extract_strided_slice %260 {offsets = [0, 96], sizes = [2, 32], strides = [1, 1]} : vector<2x128xf32> to vector<2x32xf32>
    %280 = arith.negf %279 : vector<2x32xf32>
    %281 = math.exp %280 : vector<2x32xf32>
    %cst_50 = arith.constant 1.000000e+00 : f32
    %282 = vector.broadcast %cst_50 : f32 to vector<2x32xf32>
    %283 = arith.addf %282, %281 : vector<2x32xf32>
    %284 = arith.divf %282, %283 : vector<2x32xf32>
    %285 = arith.mulf %276, %264 : vector<2x32xf32>
    %286 = arith.mulf %270, %278 : vector<2x32xf32>
    %287 = arith.addf %285, %286 : vector<2x32xf32>
    %288 = math.tanh %287 : vector<2x32xf32>
    %289 = arith.mulf %284, %288 : vector<2x32xf32>
    %290 = vector.extract_strided_slice %255 {offsets = [0, 32], sizes = [2, 32], strides = [1, 1]} : vector<2x64xf32> to vector<2x32xf32>
    %291 = vector.extract_strided_slice %263 {offsets = [0, 0], sizes = [2, 32], strides = [1, 1]} : vector<2x128xf32> to vector<2x32xf32>
    %292 = arith.negf %291 : vector<2x32xf32>
    %293 = math.exp %292 : vector<2x32xf32>
    %cst_51 = arith.constant 1.000000e+00 : f32
    %294 = vector.broadcast %cst_51 : f32 to vector<2x32xf32>
    %295 = arith.addf %294, %293 : vector<2x32xf32>
    %296 = arith.divf %294, %295 : vector<2x32xf32>
    %297 = vector.extract_strided_slice %263 {offsets = [0, 32], sizes = [2, 32], strides = [1, 1]} : vector<2x128xf32> to vector<2x32xf32>
    %298 = arith.negf %297 : vector<2x32xf32>
    %299 = math.exp %298 : vector<2x32xf32>
    %cst_52 = arith.constant 1.000000e+00 : f32
    %300 = vector.broadcast %cst_52 : f32 to vector<2x32xf32>
    %301 = arith.addf %300, %299 : vector<2x32xf32>
    %302 = arith.divf %300, %301 : vector<2x32xf32>
    %303 = vector.extract_strided_slice %263 {offsets = [0, 64], sizes = [2, 32], strides = [1, 1]} : vector<2x128xf32> to vector<2x32xf32>
    %304 = math.tanh %303 : vector<2x32xf32>
    %305 = vector.extract_strided_slice %263 {offsets = [0, 96], sizes = [2, 32], strides = [1, 1]} : vector<2x128xf32> to vector<2x32xf32>
    %306 = arith.negf %305 : vector<2x32xf32>
    %307 = math.exp %306 : vector<2x32xf32>
    %cst_53 = arith.constant 1.000000e+00 : f32
    %308 = vector.broadcast %cst_53 : f32 to vector<2x32xf32>
    %309 = arith.addf %308, %307 : vector<2x32xf32>
    %310 = arith.divf %308, %309 : vector<2x32xf32>
    %311 = arith.mulf %302, %290 : vector<2x32xf32>
    %312 = arith.mulf %296, %304 : vector<2x32xf32>
    %313 = arith.addf %311, %312 : vector<2x32xf32>
    %314 = math.tanh %313 : vector<2x32xf32>
    %315 = arith.mulf %310, %314 : vector<2x32xf32>
    %316 = tpu.concatenate %289, %315 in 1 : vector<2x32xf32>, vector<2x32xf32> -> vector<2x64xf32>
    %317 = tpu.concatenate %287, %313 in 1 : vector<2x32xf32>, vector<2x32xf32> -> vector<2x64xf32>
    %c0_54 = arith.constant 0 : index
    %c0_55 = arith.constant 0 : index
    %318 = vector.load %arg4[%c0_54, %c0_55] : memref<64x256xf32, #tpu.memory_space<vmem>>, vector<64x256xf32>
    %cst_56 = arith.constant dense<0.000000e+00> : vector<2x256xf32>
    %319 = tpu.matmul %316, %318, %cst_56 {dimension_numbers = #tpu.dot_dimension_numbers<[1], [0], [0], [1], [0, 0, 1, 1], [], []>} : vector<2x64xf32>, vector<64x256xf32>, vector<2x256xf32> -> vector<2x256xf32>
    %320 = vector.extract_strided_slice %5 {offsets = [10, 0], sizes = [2, 128], strides = [1, 1]} : vector<16x256xf32> to vector<2x128xf32>
    %321 = vector.extract_strided_slice %319 {offsets = [0, 0], sizes = [2, 128], strides = [1, 1]} : vector<2x256xf32> to vector<2x128xf32>
    %322 = arith.addf %320, %321 : vector<2x128xf32>
    %323 = vector.extract_strided_slice %5 {offsets = [4, 128], sizes = [2, 128], strides = [1, 1]} : vector<16x256xf32> to vector<2x128xf32>
    %324 = vector.extract_strided_slice %319 {offsets = [0, 128], sizes = [2, 128], strides = [1, 1]} : vector<2x256xf32> to vector<2x128xf32>
    %325 = arith.addf %323, %324 : vector<2x128xf32>
    %326 = vector.extract_strided_slice %317 {offsets = [0, 0], sizes = [2, 32], strides = [1, 1]} : vector<2x64xf32> to vector<2x32xf32>
    %327 = vector.extract_strided_slice %322 {offsets = [0, 0], sizes = [2, 32], strides = [1, 1]} : vector<2x128xf32> to vector<2x32xf32>
    %328 = arith.negf %327 : vector<2x32xf32>
    %329 = math.exp %328 : vector<2x32xf32>
    %cst_57 = arith.constant 1.000000e+00 : f32
    %330 = vector.broadcast %cst_57 : f32 to vector<2x32xf32>
    %331 = arith.addf %330, %329 : vector<2x32xf32>
    %332 = arith.divf %330, %331 : vector<2x32xf32>
    %333 = vector.extract_strided_slice %322 {offsets = [0, 32], sizes = [2, 32], strides = [1, 1]} : vector<2x128xf32> to vector<2x32xf32>
    %334 = arith.negf %333 : vector<2x32xf32>
    %335 = math.exp %334 : vector<2x32xf32>
    %cst_58 = arith.constant 1.000000e+00 : f32
    %336 = vector.broadcast %cst_58 : f32 to vector<2x32xf32>
    %337 = arith.addf %336, %335 : vector<2x32xf32>
    %338 = arith.divf %336, %337 : vector<2x32xf32>
    %339 = vector.extract_strided_slice %322 {offsets = [0, 64], sizes = [2, 32], strides = [1, 1]} : vector<2x128xf32> to vector<2x32xf32>
    %340 = math.tanh %339 : vector<2x32xf32>
    %341 = vector.extract_strided_slice %322 {offsets = [0, 96], sizes = [2, 32], strides = [1, 1]} : vector<2x128xf32> to vector<2x32xf32>
    %342 = arith.negf %341 : vector<2x32xf32>
    %343 = math.exp %342 : vector<2x32xf32>
    %cst_59 = arith.constant 1.000000e+00 : f32
    %344 = vector.broadcast %cst_59 : f32 to vector<2x32xf32>
    %345 = arith.addf %344, %343 : vector<2x32xf32>
    %346 = arith.divf %344, %345 : vector<2x32xf32>
    %347 = arith.mulf %338, %326 : vector<2x32xf32>
    %348 = arith.mulf %332, %340 : vector<2x32xf32>
    %349 = arith.addf %347, %348 : vector<2x32xf32>
    %350 = math.tanh %349 : vector<2x32xf32>
    %351 = arith.mulf %346, %350 : vector<2x32xf32>
    %352 = vector.extract_strided_slice %317 {offsets = [0, 32], sizes = [2, 32], strides = [1, 1]} : vector<2x64xf32> to vector<2x32xf32>
    %353 = vector.extract_strided_slice %325 {offsets = [0, 0], sizes = [2, 32], strides = [1, 1]} : vector<2x128xf32> to vector<2x32xf32>
    %354 = arith.negf %353 : vector<2x32xf32>
    %355 = math.exp %354 : vector<2x32xf32>
    %cst_60 = arith.constant 1.000000e+00 : f32
    %356 = vector.broadcast %cst_60 : f32 to vector<2x32xf32>
    %357 = arith.addf %356, %355 : vector<2x32xf32>
    %358 = arith.divf %356, %357 : vector<2x32xf32>
    %359 = vector.extract_strided_slice %325 {offsets = [0, 32], sizes = [2, 32], strides = [1, 1]} : vector<2x128xf32> to vector<2x32xf32>
    %360 = arith.negf %359 : vector<2x32xf32>
    %361 = math.exp %360 : vector<2x32xf32>
    %cst_61 = arith.constant 1.000000e+00 : f32
    %362 = vector.broadcast %cst_61 : f32 to vector<2x32xf32>
    %363 = arith.addf %362, %361 : vector<2x32xf32>
    %364 = arith.divf %362, %363 : vector<2x32xf32>
    %365 = vector.extract_strided_slice %325 {offsets = [0, 64], sizes = [2, 32], strides = [1, 1]} : vector<2x128xf32> to vector<2x32xf32>
    %366 = math.tanh %365 : vector<2x32xf32>
    %367 = vector.extract_strided_slice %325 {offsets = [0, 96], sizes = [2, 32], strides = [1, 1]} : vector<2x128xf32> to vector<2x32xf32>
    %368 = arith.negf %367 : vector<2x32xf32>
    %369 = math.exp %368 : vector<2x32xf32>
    %cst_62 = arith.constant 1.000000e+00 : f32
    %370 = vector.broadcast %cst_62 : f32 to vector<2x32xf32>
    %371 = arith.addf %370, %369 : vector<2x32xf32>
    %372 = arith.divf %370, %371 : vector<2x32xf32>
    %373 = arith.mulf %364, %352 : vector<2x32xf32>
    %374 = arith.mulf %358, %366 : vector<2x32xf32>
    %375 = arith.addf %373, %374 : vector<2x32xf32>
    %376 = math.tanh %375 : vector<2x32xf32>
    %377 = arith.mulf %372, %376 : vector<2x32xf32>
    %378 = tpu.concatenate %351, %377 in 1 : vector<2x32xf32>, vector<2x32xf32> -> vector<2x64xf32>
    %379 = tpu.concatenate %349, %375 in 1 : vector<2x32xf32>, vector<2x32xf32> -> vector<2x64xf32>
    %c0_63 = arith.constant 0 : index
    %c0_64 = arith.constant 0 : index
    %380 = vector.load %arg4[%c0_63, %c0_64] : memref<64x256xf32, #tpu.memory_space<vmem>>, vector<64x256xf32>
    %cst_65 = arith.constant dense<0.000000e+00> : vector<2x256xf32>
    %381 = tpu.matmul %378, %380, %cst_65 {dimension_numbers = #tpu.dot_dimension_numbers<[1], [0], [0], [1], [0, 0, 1, 1], [], []>} : vector<2x64xf32>, vector<64x256xf32>, vector<2x256xf32> -> vector<2x256xf32>
    %382 = vector.extract_strided_slice %5 {offsets = [12, 0], sizes = [2, 128], strides = [1, 1]} : vector<16x256xf32> to vector<2x128xf32>
    %383 = vector.extract_strided_slice %381 {offsets = [0, 0], sizes = [2, 128], strides = [1, 1]} : vector<2x256xf32> to vector<2x128xf32>
    %384 = arith.addf %382, %383 : vector<2x128xf32>
    %385 = vector.extract_strided_slice %5 {offsets = [2, 128], sizes = [2, 128], strides = [1, 1]} : vector<16x256xf32> to vector<2x128xf32>
    %386 = vector.extract_strided_slice %381 {offsets = [0, 128], sizes = [2, 128], strides = [1, 1]} : vector<2x256xf32> to vector<2x128xf32>
    %387 = arith.addf %385, %386 : vector<2x128xf32>
    %388 = vector.extract_strided_slice %379 {offsets = [0, 0], sizes = [2, 32], strides = [1, 1]} : vector<2x64xf32> to vector<2x32xf32>
    %389 = vector.extract_strided_slice %384 {offsets = [0, 0], sizes = [2, 32], strides = [1, 1]} : vector<2x128xf32> to vector<2x32xf32>
    %390 = arith.negf %389 : vector<2x32xf32>
    %391 = math.exp %390 : vector<2x32xf32>
    %cst_66 = arith.constant 1.000000e+00 : f32
    %392 = vector.broadcast %cst_66 : f32 to vector<2x32xf32>
    %393 = arith.addf %392, %391 : vector<2x32xf32>
    %394 = arith.divf %392, %393 : vector<2x32xf32>
    %395 = vector.extract_strided_slice %384 {offsets = [0, 32], sizes = [2, 32], strides = [1, 1]} : vector<2x128xf32> to vector<2x32xf32>
    %396 = arith.negf %395 : vector<2x32xf32>
    %397 = math.exp %396 : vector<2x32xf32>
    %cst_67 = arith.constant 1.000000e+00 : f32
    %398 = vector.broadcast %cst_67 : f32 to vector<2x32xf32>
    %399 = arith.addf %398, %397 : vector<2x32xf32>
    %400 = arith.divf %398, %399 : vector<2x32xf32>
    %401 = vector.extract_strided_slice %384 {offsets = [0, 64], sizes = [2, 32], strides = [1, 1]} : vector<2x128xf32> to vector<2x32xf32>
    %402 = math.tanh %401 : vector<2x32xf32>
    %403 = vector.extract_strided_slice %384 {offsets = [0, 96], sizes = [2, 32], strides = [1, 1]} : vector<2x128xf32> to vector<2x32xf32>
    %404 = arith.negf %403 : vector<2x32xf32>
    %405 = math.exp %404 : vector<2x32xf32>
    %cst_68 = arith.constant 1.000000e+00 : f32
    %406 = vector.broadcast %cst_68 : f32 to vector<2x32xf32>
    %407 = arith.addf %406, %405 : vector<2x32xf32>
    %408 = arith.divf %406, %407 : vector<2x32xf32>
    %409 = arith.mulf %400, %388 : vector<2x32xf32>
    %410 = arith.mulf %394, %402 : vector<2x32xf32>
    %411 = arith.addf %409, %410 : vector<2x32xf32>
    %412 = math.tanh %411 : vector<2x32xf32>
    %413 = arith.mulf %408, %412 : vector<2x32xf32>
    %414 = vector.extract_strided_slice %379 {offsets = [0, 32], sizes = [2, 32], strides = [1, 1]} : vector<2x64xf32> to vector<2x32xf32>
    %415 = vector.extract_strided_slice %387 {offsets = [0, 0], sizes = [2, 32], strides = [1, 1]} : vector<2x128xf32> to vector<2x32xf32>
    %416 = arith.negf %415 : vector<2x32xf32>
    %417 = math.exp %416 : vector<2x32xf32>
    %cst_69 = arith.constant 1.000000e+00 : f32
    %418 = vector.broadcast %cst_69 : f32 to vector<2x32xf32>
    %419 = arith.addf %418, %417 : vector<2x32xf32>
    %420 = arith.divf %418, %419 : vector<2x32xf32>
    %421 = vector.extract_strided_slice %387 {offsets = [0, 32], sizes = [2, 32], strides = [1, 1]} : vector<2x128xf32> to vector<2x32xf32>
    %422 = arith.negf %421 : vector<2x32xf32>
    %423 = math.exp %422 : vector<2x32xf32>
    %cst_70 = arith.constant 1.000000e+00 : f32
    %424 = vector.broadcast %cst_70 : f32 to vector<2x32xf32>
    %425 = arith.addf %424, %423 : vector<2x32xf32>
    %426 = arith.divf %424, %425 : vector<2x32xf32>
    %427 = vector.extract_strided_slice %387 {offsets = [0, 64], sizes = [2, 32], strides = [1, 1]} : vector<2x128xf32> to vector<2x32xf32>
    %428 = math.tanh %427 : vector<2x32xf32>
    %429 = vector.extract_strided_slice %387 {offsets = [0, 96], sizes = [2, 32], strides = [1, 1]} : vector<2x128xf32> to vector<2x32xf32>
    %430 = arith.negf %429 : vector<2x32xf32>
    %431 = math.exp %430 : vector<2x32xf32>
    %cst_71 = arith.constant 1.000000e+00 : f32
    %432 = vector.broadcast %cst_71 : f32 to vector<2x32xf32>
    %433 = arith.addf %432, %431 : vector<2x32xf32>
    %434 = arith.divf %432, %433 : vector<2x32xf32>
    %435 = arith.mulf %426, %414 : vector<2x32xf32>
    %436 = arith.mulf %420, %428 : vector<2x32xf32>
    %437 = arith.addf %435, %436 : vector<2x32xf32>
    %438 = math.tanh %437 : vector<2x32xf32>
    %439 = arith.mulf %434, %438 : vector<2x32xf32>
    %440 = tpu.concatenate %413, %439 in 1 : vector<2x32xf32>, vector<2x32xf32> -> vector<2x64xf32>
    %441 = tpu.concatenate %411, %437 in 1 : vector<2x32xf32>, vector<2x32xf32> -> vector<2x64xf32>
    %c0_72 = arith.constant 0 : index
    %c0_73 = arith.constant 0 : index
    %442 = vector.load %arg4[%c0_72, %c0_73] : memref<64x256xf32, #tpu.memory_space<vmem>>, vector<64x256xf32>
    %cst_74 = arith.constant dense<0.000000e+00> : vector<2x256xf32>
    %443 = tpu.matmul %440, %442, %cst_74 {dimension_numbers = #tpu.dot_dimension_numbers<[1], [0], [0], [1], [0, 0, 1, 1], [], []>} : vector<2x64xf32>, vector<64x256xf32>, vector<2x256xf32> -> vector<2x256xf32>
    %444 = vector.extract_strided_slice %5 {offsets = [14, 0], sizes = [2, 128], strides = [1, 1]} : vector<16x256xf32> to vector<2x128xf32>
    %445 = vector.extract_strided_slice %443 {offsets = [0, 0], sizes = [2, 128], strides = [1, 1]} : vector<2x256xf32> to vector<2x128xf32>
    %446 = arith.addf %444, %445 : vector<2x128xf32>
    %447 = vector.extract_strided_slice %5 {offsets = [0, 128], sizes = [2, 128], strides = [1, 1]} : vector<16x256xf32> to vector<2x128xf32>
    %448 = vector.extract_strided_slice %443 {offsets = [0, 128], sizes = [2, 128], strides = [1, 1]} : vector<2x256xf32> to vector<2x128xf32>
    %449 = arith.addf %447, %448 : vector<2x128xf32>
    %450 = vector.extract_strided_slice %441 {offsets = [0, 0], sizes = [2, 32], strides = [1, 1]} : vector<2x64xf32> to vector<2x32xf32>
    %451 = vector.extract_strided_slice %446 {offsets = [0, 0], sizes = [2, 32], strides = [1, 1]} : vector<2x128xf32> to vector<2x32xf32>
    %452 = arith.negf %451 : vector<2x32xf32>
    %453 = math.exp %452 : vector<2x32xf32>
    %cst_75 = arith.constant 1.000000e+00 : f32
    %454 = vector.broadcast %cst_75 : f32 to vector<2x32xf32>
    %455 = arith.addf %454, %453 : vector<2x32xf32>
    %456 = arith.divf %454, %455 : vector<2x32xf32>
    %457 = vector.extract_strided_slice %446 {offsets = [0, 32], sizes = [2, 32], strides = [1, 1]} : vector<2x128xf32> to vector<2x32xf32>
    %458 = arith.negf %457 : vector<2x32xf32>
    %459 = math.exp %458 : vector<2x32xf32>
    %cst_76 = arith.constant 1.000000e+00 : f32
    %460 = vector.broadcast %cst_76 : f32 to vector<2x32xf32>
    %461 = arith.addf %460, %459 : vector<2x32xf32>
    %462 = arith.divf %460, %461 : vector<2x32xf32>
    %463 = vector.extract_strided_slice %446 {offsets = [0, 64], sizes = [2, 32], strides = [1, 1]} : vector<2x128xf32> to vector<2x32xf32>
    %464 = math.tanh %463 : vector<2x32xf32>
    %465 = vector.extract_strided_slice %446 {offsets = [0, 96], sizes = [2, 32], strides = [1, 1]} : vector<2x128xf32> to vector<2x32xf32>
    %466 = arith.negf %465 : vector<2x32xf32>
    %467 = math.exp %466 : vector<2x32xf32>
    %cst_77 = arith.constant 1.000000e+00 : f32
    %468 = vector.broadcast %cst_77 : f32 to vector<2x32xf32>
    %469 = arith.addf %468, %467 : vector<2x32xf32>
    %470 = arith.divf %468, %469 : vector<2x32xf32>
    %471 = arith.mulf %462, %450 : vector<2x32xf32>
    %472 = arith.mulf %456, %464 : vector<2x32xf32>
    %473 = arith.addf %471, %472 : vector<2x32xf32>
    %474 = math.tanh %473 : vector<2x32xf32>
    %475 = arith.mulf %470, %474 : vector<2x32xf32>
    %476 = vector.extract_strided_slice %441 {offsets = [0, 32], sizes = [2, 32], strides = [1, 1]} : vector<2x64xf32> to vector<2x32xf32>
    %477 = vector.extract_strided_slice %449 {offsets = [0, 0], sizes = [2, 32], strides = [1, 1]} : vector<2x128xf32> to vector<2x32xf32>
    %478 = arith.negf %477 : vector<2x32xf32>
    %479 = math.exp %478 : vector<2x32xf32>
    %cst_78 = arith.constant 1.000000e+00 : f32
    %480 = vector.broadcast %cst_78 : f32 to vector<2x32xf32>
    %481 = arith.addf %480, %479 : vector<2x32xf32>
    %482 = arith.divf %480, %481 : vector<2x32xf32>
    %483 = vector.extract_strided_slice %449 {offsets = [0, 32], sizes = [2, 32], strides = [1, 1]} : vector<2x128xf32> to vector<2x32xf32>
    %484 = arith.negf %483 : vector<2x32xf32>
    %485 = math.exp %484 : vector<2x32xf32>
    %cst_79 = arith.constant 1.000000e+00 : f32
    %486 = vector.broadcast %cst_79 : f32 to vector<2x32xf32>
    %487 = arith.addf %486, %485 : vector<2x32xf32>
    %488 = arith.divf %486, %487 : vector<2x32xf32>
    %489 = vector.extract_strided_slice %449 {offsets = [0, 64], sizes = [2, 32], strides = [1, 1]} : vector<2x128xf32> to vector<2x32xf32>
    %490 = math.tanh %489 : vector<2x32xf32>
    %491 = vector.extract_strided_slice %449 {offsets = [0, 96], sizes = [2, 32], strides = [1, 1]} : vector<2x128xf32> to vector<2x32xf32>
    %492 = arith.negf %491 : vector<2x32xf32>
    %493 = math.exp %492 : vector<2x32xf32>
    %cst_80 = arith.constant 1.000000e+00 : f32
    %494 = vector.broadcast %cst_80 : f32 to vector<2x32xf32>
    %495 = arith.addf %494, %493 : vector<2x32xf32>
    %496 = arith.divf %494, %495 : vector<2x32xf32>
    %497 = arith.mulf %488, %476 : vector<2x32xf32>
    %498 = arith.mulf %482, %490 : vector<2x32xf32>
    %499 = arith.addf %497, %498 : vector<2x32xf32>
    %500 = math.tanh %499 : vector<2x32xf32>
    %501 = arith.mulf %496, %500 : vector<2x32xf32>
    %502 = tpu.concatenate %475, %501 in 1 : vector<2x32xf32>, vector<2x32xf32> -> vector<2x64xf32>
    %503 = tpu.concatenate %473, %499 in 1 : vector<2x32xf32>, vector<2x32xf32> -> vector<2x64xf32>
    %504 = tpu.concatenate %41, %501 in 1 : vector<2x32xf32>, vector<2x32xf32> -> vector<2x64xf32>
    %505 = tpu.concatenate %103, %439 in 1 : vector<2x32xf32>, vector<2x32xf32> -> vector<2x64xf32>
    %506 = tpu.concatenate %165, %377 in 1 : vector<2x32xf32>, vector<2x32xf32> -> vector<2x64xf32>
    %507 = tpu.concatenate %227, %315 in 1 : vector<2x32xf32>, vector<2x32xf32> -> vector<2x64xf32>
    %508 = tpu.concatenate %289, %253 in 1 : vector<2x32xf32>, vector<2x32xf32> -> vector<2x64xf32>
    %509 = tpu.concatenate %351, %191 in 1 : vector<2x32xf32>, vector<2x32xf32> -> vector<2x64xf32>
    %510 = tpu.concatenate %413, %129 in 1 : vector<2x32xf32>, vector<2x32xf32> -> vector<2x64xf32>
    %511 = tpu.concatenate %475, %67 in 1 : vector<2x32xf32>, vector<2x32xf32> -> vector<2x64xf32>
    %512 = vector.shape_cast %504 : vector<2x64xf32> to vector<1x2x64xf32>
    %513 = vector.shape_cast %505 : vector<2x64xf32> to vector<1x2x64xf32>
    %514 = vector.shape_cast %506 : vector<2x64xf32> to vector<1x2x64xf32>
    %515 = vector.shape_cast %507 : vector<2x64xf32> to vector<1x2x64xf32>
    %516 = vector.shape_cast %508 : vector<2x64xf32> to vector<1x2x64xf32>
    %517 = vector.shape_cast %509 : vector<2x64xf32> to vector<1x2x64xf32>
    %518 = vector.shape_cast %510 : vector<2x64xf32> to vector<1x2x64xf32>
    %519 = vector.shape_cast %511 : vector<2x64xf32> to vector<1x2x64xf32>
    %520 = tpu.concatenate %512, %513, %514, %515, %516, %517, %518, %519 in 0 : vector<1x2x64xf32>, vector<1x2x64xf32>, vector<1x2x64xf32>, vector<1x2x64xf32>, vector<1x2x64xf32>, vector<1x2x64xf32>, vector<1x2x64xf32>, vector<1x2x64xf32> -> vector<8x2x64xf32>
    %c0_81 = arith.constant 0 : index
    %c0_82 = arith.constant 0 : index
    %c0_83 = arith.constant 0 : index
    %521 = vector.load %arg6[%c0_81, %c0_82, %c0_83] : memref<8x2x64xf32, #tpu.memory_space<vmem>>, vector<8x2x64xf32>
    tpu.vector_store %arg6[%c0_81, %c0_82, %c0_83], %520 {strides = array<i32>} : memref<8x2x64xf32, #tpu.memory_space<vmem>>, vector<8x2x64xf32>,
    %c0_84 = arith.constant 0 : index
    %c0_85 = arith.constant 0 : index
    %522 = vector.load %arg7[%c0_84, %c0_85] : memref<2x64xf32, #tpu.memory_space<vmem>>, vector<2x64xf32>
    tpu.vector_store %arg7[%c0_84, %c0_85], %502 {strides = array<i32>} : memref<2x64xf32, #tpu.memory_space<vmem>>, vector<2x64xf32>,
    %c0_86 = arith.constant 0 : index
    %c0_87 = arith.constant 0 : index
    %523 = vector.load %arg8[%c0_86, %c0_87] : memref<2x64xf32, #tpu.memory_space<vmem>>, vector<2x64xf32>
    tpu.vector_store %arg8[%c0_86, %c0_87], %503 {strides = array<i32>} : memref<2x64xf32, #tpu.memory_space<vmem>>, vector<2x64xf32>,
    return
  }
}

module attributes {stable_mosaic.version = 11 : i64} {
  func.func @_embal_loss_kernel(%arg0: memref<8x2x32xf32, #tpu.memory_space<vmem>>, %arg1: memref<2x128xf32, #tpu.memory_space<vmem>>, %arg2: memref<32x128xf32, #tpu.memory_space<vmem>>, %arg3: memref<1x128xf32, #tpu.memory_space<vmem>>, %arg4: memref<128x8xf32, #tpu.memory_space<vmem>>, %arg5: memref<1x8xf32, #tpu.memory_space<vmem>>, %arg6: memref<2x8xf32, #tpu.memory_space<vmem>>, %arg7: memref<1x1xf32, #tpu.memory_space<vmem>>) attributes {dimension_semantics = [], scalar_prefetch = 0 : i64, scratch_operands = 0 : i64, tpu.core_type = #tpu.core_type<tc>} {
    %c0 = arith.constant 0 : index
    %c0_0 = arith.constant 0 : index
    %c0_1 = arith.constant 0 : index
    %0 = vector.load %arg0[%c0, %c0_0, %c0_1] : memref<8x2x32xf32, #tpu.memory_space<vmem>>, vector<8x2x32xf32>
    %cst = arith.constant dense<0.000000e+00> : vector<2x32xf32>
    %1 = vector.multi_reduction <add>, %0, %cst [0] : vector<8x2x32xf32> to vector<2x32xf32>
    %cst_2 = arith.constant 8.000000e+00 : f32
    %2 = vector.broadcast %cst_2 : f32 to vector<2x32xf32>
    %3 = arith.divf %1, %2 : vector<2x32xf32>
    %c0_3 = arith.constant 0 : index
    %c0_4 = arith.constant 0 : index
    %4 = vector.load %arg1[%c0_3, %c0_4] : memref<2x128xf32, #tpu.memory_space<vmem>>, vector<2x128xf32>
    %c0_5 = arith.constant 0 : index
    %c0_6 = arith.constant 0 : index
    %5 = vector.load %arg2[%c0_5, %c0_6] : memref<32x128xf32, #tpu.memory_space<vmem>>, vector<32x128xf32>
    %cst_7 = arith.constant dense<0.000000e+00> : vector<2x128xf32>
    %6 = tpu.matmul %3, %5, %cst_7 {dimension_numbers = #tpu.dot_dimension_numbers<[1], [0], [0], [1], [0, 0, 1, 1], [], []>} : vector<2x32xf32>, vector<32x128xf32>, vector<2x128xf32> -> vector<2x128xf32>
    %c0_8 = arith.constant 0 : index
    %c0_9 = arith.constant 0 : index
    %7 = vector.load %arg3[%c0_8, %c0_9] : memref<1x128xf32, #tpu.memory_space<vmem>>, vector<1x128xf32>
    %8 = vector.broadcast %7 : vector<1x128xf32> to vector<2x128xf32>
    %9 = arith.addf %6, %8 : vector<2x128xf32>
    %10 = math.tanh %9 : vector<2x128xf32>
    %c0_10 = arith.constant 0 : index
    %c0_11 = arith.constant 0 : index
    %11 = vector.load %arg4[%c0_10, %c0_11] : memref<128x8xf32, #tpu.memory_space<vmem>>, vector<128x8xf32>
    %cst_12 = arith.constant dense<0.000000e+00> : vector<2x8xf32>
    %12 = tpu.matmul %4, %11, %cst_12 {dimension_numbers = #tpu.dot_dimension_numbers<[1], [0], [0], [1], [0, 0, 1, 1], [], []>} : vector<2x128xf32>, vector<128x8xf32>, vector<2x8xf32> -> vector<2x8xf32>
    %c0_13 = arith.constant 0 : index
    %c0_14 = arith.constant 0 : index
    %13 = vector.load %arg5[%c0_13, %c0_14] : memref<1x8xf32, #tpu.memory_space<vmem>>, vector<1x8xf32>
    %14 = vector.broadcast %13 : vector<1x8xf32> to vector<2x8xf32>
    %15 = arith.addf %12, %14 : vector<2x8xf32>
    %16 = math.tanh %15 : vector<2x8xf32>
    %cst_15 = arith.constant dense<0xFF800000> : vector<2xf32>
    %17 = vector.multi_reduction <maximumf>, %16, %cst_15 [1] : vector<2x8xf32> to vector<2xf32>
    %18 = vector.shape_cast %17 : vector<2xf32> to vector<2x1xf32>
    %19 = vector.broadcast %18 : vector<2x1xf32> to vector<2x8xf32>
    %20 = arith.subf %16, %19 : vector<2x8xf32>
    %21 = math.exp %20 : vector<2x8xf32>
    %cst_16 = arith.constant dense<0.000000e+00> : vector<2xf32>
    %22 = vector.multi_reduction <add>, %21, %cst_16 [1] : vector<2x8xf32> to vector<2xf32>
    %23 = vector.shape_cast %22 : vector<2xf32> to vector<2x1xf32>
    %24 = math.log %23 : vector<2x1xf32>
    %25 = arith.addf %24, %18 : vector<2x1xf32>
    %c0_17 = arith.constant 0 : index
    %c0_18 = arith.constant 0 : index
    %26 = vector.load %arg6[%c0_17, %c0_18] : memref<2x8xf32, #tpu.memory_space<vmem>>, vector<2x8xf32>
    %27 = arith.mulf %16, %26 : vector<2x8xf32>
    %cst_19 = arith.constant dense<0.000000e+00> : vector<2xf32>
    %28 = vector.multi_reduction <add>, %27, %cst_19 [1] : vector<2x8xf32> to vector<2xf32>
    %29 = vector.shape_cast %28 : vector<2xf32> to vector<2x1xf32>
    %30 = arith.subf %25, %29 : vector<2x1xf32>
    %31 = vector.shape_cast %30 : vector<2x1xf32> to vector<1x2x1xf32>
    %cst_20 = arith.constant dense<0.000000e+00> : vector<1xf32>
    %32 = vector.multi_reduction <add>, %31, %cst_20 [1, 2] : vector<1x2x1xf32> to vector<1xf32>
    %33 = vector.shape_cast %32 : vector<1xf32> to vector<1x1x1xf32>
    %34 = vector.extract %33[0, 0, 0] : f32 from vector<1x1x1xf32>
    %cst_21 = arith.constant 2.000000e+00 : f32
    %35 = arith.divf %34, %cst_21 : f32
    %36 = arith.subf %10, %4 : vector<2x128xf32>
    %37 = arith.mulf %36, %36 : vector<2x128xf32>
    %38 = vector.shape_cast %37 : vector<2x128xf32> to vector<1x2x128xf32>
    %cst_22 = arith.constant dense<0.000000e+00> : vector<1xf32>
    %39 = vector.multi_reduction <add>, %38, %cst_22 [1, 2] : vector<1x2x128xf32> to vector<1xf32>
    %40 = vector.shape_cast %39 : vector<1xf32> to vector<1x1x1xf32>
    %41 = vector.extract %40[0, 0, 0] : f32 from vector<1x1x1xf32>
    %cst_23 = arith.constant 2.560000e+02 : f32
    %42 = arith.divf %41, %cst_23 : f32
    %43 = arith.addf %35, %42 : f32
    %44 = vector.broadcast %43 : f32 to vector<1x1xf32>
    %c0_24 = arith.constant 0 : index
    %c0_25 = arith.constant 0 : index
    %45 = vector.load %arg7[%c0_24, %c0_25] : memref<1x1xf32, #tpu.memory_space<vmem>>, vector<1x1xf32>
    tpu.vector_store %arg7[%c0_24, %c0_25], %44 {strides = array<i32>} : memref<1x1xf32, #tpu.memory_space<vmem>>, vector<1x1xf32>,
    return
  }
}

</mosaic_0001>

<bundles_post_ra>
// kernel: model_forward.9
= control target key start
LH: loop header
LB: loop body
LE: loop exit
PB: predicated region body
PF: predicated region fallthrough
CT: control target
= control target key end

     0   :  { %15 = vsyncpa [#allocation3], 0  ;;  %v561_v2 = vmov 0.0   ;;  %s562_s13 = smov 96   ;;  %vm563_vm0 = vmmov 0   ;;  %s795_s0 = inlined_call_operand.vmem [shape: f32[2,64], index: 0, kind: input, shape index: {}]   ;;  %s796_s1 = inlined_call_operand.vmem [shape: f32[2,128], index: 1, kind: input, shape index: {}]   ;;  %s797_s2 = inlined_call_operand.vmem [shape: f32[128,128], index: 2, kind: input, shape index: {}]   ;;  %s798_s3 = inlined_call_operand.vmem [shape: f32[1,128], index: 3, kind: input, shape index: {}]   ;;  %s799_s4 = inlined_call_operand.vmem [shape: f32[128,128], index: 4, kind: input, shape index: {}]   ;;  %s800_s5 = inlined_call_operand.vmem [shape: f32[1,128], index: 5, kind: input, shape index: {}]   ;;  %s801_s6 = inlined_call_operand.vmem [shape: f32[32,128], index: 6, kind: input, shape index: {}]   ;;  %s802_s7 = inlined_call_operand.vmem [shape: f32[1,128], index: 7, kind: input, shape index: {}]   ;;  %s803_s8 = inlined_call_operand.hbm [shape: f32[1,1], index: 8, kind: output, shape index: {0}]   ;;  %s804_s9 = inlined_call_operand.hbm [shape: f32[2,128], index: 9, kind: output, shape index: {1}]  }
   0x1   :  { %v619_v0 = vld [vmem:[%s795_s0] sm:$0x3]  ;;  %v55_v1 = vld [vmem:[%s797_s2 + $0x78] sm:$0xff]  ;;  %421 = vmatprep.subr.mxu0 %v561_v2  ;;  %v54_v3 = vld [vmem:[%s797_s2 + $0x70] sm:$0xff]  ;;  %453 = vmatprep.mubr.msk.f32.mxu0 %vm563_vm0, %v561_v2 }
   0x2   :  { %35 = vrot.lane.b32.xlu0 %v619_v0, %s562_s13  ;;  %422 = vmatpush3.msra.mxu0 %v55_v1  ;;  %v53_v4 = vld [vmem:[%s797_s2 + $0x68] sm:$0xff]  ;;  %v52_v5 = vld [vmem:[%s797_s2 + $0x60] sm:$0xff]  ;;  %v137_v6 = vld [vmem:[%s801_s6 + $0x18] sm:$0xff] }
   0x3   :  { %423 = vmatprep.subr.mxu0 %v561_v2  ;;  %456 = vmatprep.subr.mxu1 %v561_v2  ;;  %v136_v7 = vld [vmem:[%s801_s6 + $0x10] sm:$0xff]  ;;  %v51_v8 = vld [vmem:[%s797_s2 + $0x58] sm:$0xff]  ;;  %v135_v9 = vld [vmem:[%s801_s6 + $0x8] sm:$0xff] }
   0x4   :  { %424 = vmatpush3.msra.mxu0 %v54_v3  ;;  %464 = vmatprep.mubr.msk.f32.mxu1 %vm563_vm0, %v561_v2  ;;  %v50_v10 = vld [vmem:[%s797_s2 + $0x50] sm:$0xff]  ;;  %v134_v11 = vld [vmem:[%s801_s6] sm:$0xff] }
   0x5   :  { %425 = vmatprep.subr.mxu0 %v561_v2  ;;  %457 = vmatpush3.msra.mxu1 %v137_v6 }
   0x6   :  { %426 = vmatpush3.msra.mxu0 %v53_v4  ;;  %458 = vmatprep.subr.mxu1 %v561_v2 }
   0x7   :  { %427 = vmatprep.subr.mxu0 %v561_v2  ;;  %459 = vmatpush3.msra.mxu1 %v136_v7 }
   0x8   :  { %428 = vmatpush3.msra.mxu0 %v52_v5  ;;  %460 = vmatprep.subr.mxu1 %v561_v2 }
   0x9   :  { %429 = vmatprep.subr.mxu0 %v561_v2 }
   0xa   :  { %430 = vmatpush3.msra.mxu0 %v51_v8 }
   0xb   :  { %16 = vsyncpa [#allocation5], 0  ;;  %431 = vmatprep.subr.mxu0 %v561_v2  ;;  %v49_v12 = vld [vmem:[%s797_s2 + $0x48] sm:$0xff]  ;;  %461 = vmatpush3.msra.mxu1 %v135_v9  ;;  %v48_v13 = vld [vmem:[%s797_s2 + $0x40] sm:$0xff]  ;;  %vm145_vm1 = vcmask 261120   ;;  %vm317_vm2 = vcmask 1041408  }
   0xc   :  { %432 = vmatpush3.msra.mxu0 %v50_v10  ;;  %462 = vmatprep.subr.mxu1 %v561_v2  ;;  %v47_v14 = vld [vmem:[%s797_s2 + $0x38] sm:$0xff]  ;;  %v46_v15 = vld [vmem:[%s797_s2 + $0x30] sm:$0xff]  ;;  %v45_v16 = vld [vmem:[%s797_s2 + $0x28] sm:$0xff] }
   0xd   :  { %433 = vmatprep.subr.mxu0 %v561_v2  ;;  %463 = vmatpush3.msra.mxu1 %v134_v11  ;;  %v44_v17 = vld [vmem:[%s797_s2 + $0x20] sm:$0xff]  ;;  %v43_v18 = vld [vmem:[%s797_s2 + $0x18] sm:$0xff]  ;;  %v42_v19 = vld [vmem:[%s797_s2 + $0x10] sm:$0xff] }
   0xe   :  { %434 = vmatpush3.msra.mxu0 %v49_v12  ;;  %467 = vmatprep.subr.mxu1 %v561_v2  ;;  %v41_v20 = vld [vmem:[%s797_s2 + $0x8] sm:$0xff]  ;;  %v40_v21 = vld [vmem:[%s797_s2] sm:$0xff]  ;;  %v235_v25 = vld [vmem:[%s799_s4 + $0x78] sm:$0xff] }
   0xf   :  { %435 = vmatprep.subr.mxu0 %v561_v2  ;;  %v709_v22 = vld [vmem:[%s796_s1] sm:$0x3]  ;;  %v234_v26 = vld [vmem:[%s799_s4 + $0x70] sm:$0xff]  ;;  %v233_v27 = vld [vmem:[%s799_s4 + $0x68] sm:$0xff] }
  0x10   :  { %436 = vmatpush3.msra.mxu0 %v48_v13  ;;  %v232_v28 = vld [vmem:[%s799_s4 + $0x60] sm:$0xff]  ;;  %v231_v29 = vld [vmem:[%s799_s4 + $0x58] sm:$0xff]  ;;  %v230_v30 = vld [vmem:[%s799_s4 + $0x50] sm:$0xff] }
  0x11   :  { %437 = vmatprep.subr.mxu0 %v561_v2  ;;  %v229_v31 = vld [vmem:[%s799_s4 + $0x48] sm:$0xff]  ;;  %v228_v32 = vld [vmem:[%s799_s4 + $0x40] sm:$0xff]  ;;  %v227_v33 = vld [vmem:[%s799_s4 + $0x38] sm:$0xff] }
  0x12   :  { %438 = vmatpush3.msra.mxu0 %v47_v14  ;;  %v226_v34 = vld [vmem:[%s799_s4 + $0x30] sm:$0xff]  ;;  %v225_v35 = vld [vmem:[%s799_s4 + $0x28] sm:$0xff]  ;;  %v224_v36 = vld [vmem:[%s799_s4 + $0x20] sm:$0xff] }
  0x13   :  { %439 = vmatprep.subr.mxu0 %v561_v2  ;;  %v223_v37 = vld [vmem:[%s799_s4 + $0x18] sm:$0xff]  ;;  %v222_v38 = vld [vmem:[%s799_s4 + $0x10] sm:$0xff]  ;;  %v221_v39 = vld [vmem:[%s799_s4 + $0x8] sm:$0xff] }
  0x14   :  { %440 = vmatpush3.msra.mxu0 %v46_v15  ;;  %v220_v40 = vld [vmem:[%s799_s4] sm:$0xff] }
  0x15   :  { %441 = vmatprep.subr.mxu0 %v561_v2  ;;  %v378_v41 = vld [vmem:[%s798_s3] ss:$0 sm:$0xff] }
  0x16   :  { %442 = vmatpush3.msra.mxu0 %v45_v16  ;;  %v379_v46 = vld [vmem:[%s802_s7] ss:$0 sm:$0xff]  ;;  %s564_s7 = smov [#allocation4]  }
  0x17   :  { %443 = vmatprep.subr.mxu0 %v561_v2  ;;  %v381_v54 = vld [vmem:[%s800_s5] ss:$0 sm:$0xff]  ;;  %s366_s16 = sshll.u32 %s564_s7, 4  ;;  %s367_s16 = int_to_ptr.vmem [resolvable:$true] %s366_s16 }
  0x18   :  { %444 = vmatpush3.msra.mxu0 %v44_v17  ;;  %s517_s17 = scalar_lea.vmem %s367_s16, 32  ;;  %p522_p1 = scmp.lt.s32.totalorder %s367_s16, %s367_s16 }
  0x19   :  { %445 = vmatprep.subr.mxu0 %v561_v2  ;;  %p518_p0 = scmp.ne.s32.totalorder %s367_s16, %s517_s17  ;;  %p523_p2 = scmp.lt.s32.totalorder %s517_s17, %s517_s17 }
  0x1a   :  { %446 = vmatpush3.msra.mxu0 %v43_v18 }
  0x1b   :  { %447 = vmatprep.subr.mxu0 %v561_v2  ;;  %p524_p3 = por %p523_p2, %p522_p1 }
  0x1c   :  { %448 = vmatpush3.msra.mxu0 %v42_v19 }
  0x1d   :  { %449 = vmatprep.subr.mxu0 %v561_v2  ;;  %p525_p4 = pnand %p524_p3, %p518_p0 }
  0x1e   :  { %450 = vmatpush3.msra.mxu0 %v41_v20 }
  0x1f   :  { %451 = vmatprep.subr.mxu0 %v561_v2 }
  0x20   :  { %452 = vmatpush3.msra.mxu0 %v40_v21 }
  0x21   :  { %454 = vmatmul.mubr.f32.vlgmr.msra.gmra.mxu0 %v709_v22 }
  0x74   :  { %v36_v23 = vpop.permute.xlu0 %35 }
  0x75   :  { %v38_v24 = vadd.f32 %v36_v23, %v619_v0 }
  0x77   :  { %465 = vmatmul.mubr.msk.f32.vlgmr.msra.gmra.mxu1 %vm145_vm1, %v38_v24 }
  0x78   :  { %468 = vmatpush3.msra.mxu1 %v235_v25  ;;  %499 = vmatprep.mubr.msk.f32.mxu1 %vm563_vm0, %v561_v2 }
  0x79   :  { %469 = vmatprep.subr.mxu1 %v561_v2 }
  0x7a   :  { %470 = vmatpush3.msra.mxu1 %v234_v26 }
  0x7b   :  { %471 = vmatprep.subr.mxu1 %v561_v2 }
  0x7c   :  { %472 = vmatpush3.msra.mxu1 %v233_v27 }
  0x7d   :  { %473 = vmatprep.subr.mxu1 %v561_v2 }
  0x7e   :  { %474 = vmatpush3.msra.mxu1 %v232_v28 }
  0x7f   :  { %475 = vmatprep.subr.mxu1 %v561_v2 }
  0x80   :  { %476 = vmatpush3.msra.mxu1 %v231_v29 }
  0x81   :  { %477 = vmatprep.subr.mxu1 %v561_v2 }
  0x82   :  { %478 = vmatpush3.msra.mxu1 %v230_v30 }
  0x83   :  { %479 = vmatprep.subr.mxu1 %v561_v2 }
  0x84   :  { %480 = vmatpush3.msra.mxu1 %v229_v31 }
  0x85   :  { %481 = vmatprep.subr.mxu1 %v561_v2 }
  0x86   :  { %482 = vmatpush3.msra.mxu1 %v228_v32 }
  0x87   :  { %483 = vmatprep.subr.mxu1 %v561_v2 }
  0x88   :  { %484 = vmatpush3.msra.mxu1 %v227_v33 }
  0x89   :  { %485 = vmatprep.subr.mxu1 %v561_v2 }
  0x8a   :  { %486 = vmatpush3.msra.mxu1 %v226_v34 }
  0x8b   :  { %487 = vmatprep.subr.mxu1 %v561_v2 }
  0x8c   :  { %488 = vmatpush3.msra.mxu1 %v225_v35 }
  0x8d   :  { %489 = vmatprep.subr.mxu1 %v561_v2 }
  0x8e   :  { %490 = vmatpush3.msra.mxu1 %v224_v36 }
  0x8f   :  { %491 = vmatprep.subr.mxu1 %v561_v2 }
  0x90   :  { %492 = vmatpush3.msra.mxu1 %v223_v37 }
  0x91   :  { %493 = vmatprep.subr.mxu1 %v561_v2 }
  0x92   :  { %494 = vmatpush3.msra.mxu1 %v222_v38 }
  0x93   :  { %495 = vmatprep.subr.mxu1 %v561_v2 }
  0x94   :  { %496 = vmatpush3.msra.mxu1 %v221_v39 }
  0x95   :  { %497 = vmatprep.subr.mxu1 %v561_v2 }
  0x96   :  { %498 = vmatpush3.msra.mxu1 %v220_v40 }
  0xe1   :  { %v129_v42 = vpop.f32.mrf.mxu0 }
  0xe2   :  { %v130_v43 = vadd.f32 %v378_v41, %v129_v42 }
  0xe3   :  { %v455_v44 = vpop.f32.mrf.mxu0 }
  0xe4   :  { %511 = vtanh.f32 %v130_v43 }
  0xf1   :  { %v512_v45 = vpop.eup %511 }
  0xf2   :  { %349 = vst [vmem:[#allocation4] sm:$0x3] %v512_v45  ;;  %500 = vmatmul.mubr.f32.vlgmr.msra.gmra.mxu1 %v512_v45 }
 0x137   :  { %v215_v47 = vpop.f32.mrf.mxu1 }
 0x138   :  { %v216_v48 = vadd.f32 %v379_v46, %v215_v47 }
 0x139   :  { %v466_v49 = vpop.f32.mrf.mxu1 }
 0x13a   :  { %513 = vtanh.f32 %v216_v48 }
 0x147   :  { %v514_v50 = vpop.eup %513 }
 0x148   :  { %v315_v51 = vsub.f32 %v514_v50, %v512_v45 }
 0x14a   :  { %v331_v52 = vmul.f32 %v315_v51, %v315_v51 }
 0x14c   :  { %v332_v53 = vsel %vm317_vm2, %v331_v52, 0.0 }
 0x14d   :  { %333 = vadd.xlane.f32.xlu1 %v332_v53 }
 0x1b2   :  { %v309_v55 = vpop.f32.mrf.mxu1 }
 0x1b3   :  { %v310_v56 = vadd.f32 %v381_v54, %v309_v55 }
 0x1b4   :  { %v501_v57 = vpop.f32.mrf.mxu1 }
 0x1b5   :  { %515 = vtanh.f32 %v310_v56 }
 0x1c2   :  { %v516_v58 = vpop.eup %515 }
 0x1c3   :  { %v314_v59 = vsub.f32 %v516_v58, %v709_v22 }
 0x1c5   :  { %v316_v60 = vmul.f32 %v314_v59, %v314_v59 }
 0x1c7   :  { %v318_v61 = vsel %vm317_vm2, %v316_v60, 0.0 }
 0x1c8   :  { %319 = vadd.xlane.f32.xlu0 %v318_v61 }
 0x1c9   :  { %528 = shalt.err (!%p525_p4)
}
 0x1ca   :  { %369 = dma.vmem_to_hbm [thread:$0]  %s367_s16, 32, %s804_s9, [#allocation5]   ;;  %vm347_vm3 = vcmask 0  }
 0x1cb   :  { %s565_s22 = smov [#allocation2]  }
 0x1cc   :  { %s356_s23 = sshll.u32 %s565_s22, 4  ;;  %s357_s23 = int_to_ptr.vmem [resolvable:$true] %s356_s23 }
 0x1cd   :  { %s537_s25 = scalar_lea.vmem %s357_s23, 16  ;;  %s541_s26 = scalar_lea.vmem %s357_s23, 32 }
 0x1ce   :  { %p538_p5 = scmp.ne.s32.totalorder %s357_s23, %s537_s25  ;;  %p542_p6 = scmp.lt.s32.totalorder %s357_s23, %s357_s23 }
 0x1cf   :  { %p543_p7 = scmp.lt.s32.totalorder %s541_s26, %s537_s25 }
 0x1d1   :  { %p544_p8 = por %p543_p7, %p542_p6 }
 0x1d3   :  { %p545_p9 = pnand %p544_p8, %p538_p5 }
 0x1d6   :  { %v334_v62 = vpop.xlane.xlu1 %333 }
 0x1d7   :  { %v335_v63 = vrot.slane %v334_v62, 4 }
 0x1d9   :  { %v336_v0 = vadd.f32 %v335_v63, %v334_v62 }
 0x1db   :  { %v337_v1 = vrot.slane %v336_v0, 2 }
 0x1dd   :  { %v338_v5 = vadd.f32 %v337_v1, %v336_v0 }
 0x1df   :  { %v339_v8 = vrot.slane %v338_v5, 1 }
 0x1e1   :  { %v340_v11 = vadd.f32 %v339_v8, %v338_v5 }
 0x251   :  { %v320_v2 = vpop.xlane.xlu0 %319 }
 0x252   :  { %v321_v3 = vrot.slane %v320_v2, 4 }
 0x254   :  { %v322_v4 = vadd.f32 %v321_v3, %v320_v2 }
 0x256   :  { %v323_v6 = vrot.slane %v322_v4, 2 }
 0x258   :  { %v324_v7 = vadd.f32 %v323_v6, %v322_v4 }
 0x25a   :  { %v325_v9 = vrot.slane %v324_v7, 1 }
 0x25c   :  { %v326_v10 = vadd.f32 %v325_v9, %v324_v7 }
 0x25e   :  { %502 = vpush %v326_v10 }
 0x25f   :  { %504 = vpush %v340_v11 }
 0x28f   :  { %s503_s19 = spop %502 }
 0x290   :  { %s330_s20 = smul.f32 0.00390625, %s503_s19  ;;  %s505_s21 = spop %504 }
 0x291   :  { %s344_s9 = smul.f32 0.00390625, %s505_s21 }
 0x293   :  { %s345_s24 = sadd.f32 %s344_s9, %s330_s20 }
 0x295   :  { %v346_v12 = vstv %s345_s24 }
 0x296   :  { %348 = vst.msk [vmem:[#allocation2] sm:$0x1] %vm347_vm3, %v346_v12 }
 0x297   :  { %548 = shalt.err (!%p545_p9)
}
 0x298   :  { %359 = dma.vmem_to_hbm [thread:$0]  %s357_s23, 16, %s803_s8, [#allocation3]  }
 0x299   :  { %557 = dma.done.wait [#allocation3], 16  }
 0x29a   :  { %558 = vsyncadd [#allocation3], 4294967280 }
 0x29b   :  { %559 = dma.done.wait [#allocation5], 32  }
 0x29c   :  { %560 = vsyncadd [#allocation5], 4294967264 }
 0x29d   :  { %376 = vsyncpa [#allocation3], 1 }
 0x29e   :  { %377 = vsyncpa [#allocation5], 1 }

// kernel: model_forward.7
= control target key start
LH: loop header
LB: loop body
LE: loop exit
PB: predicated region body
PF: predicated region fallthrough
CT: control target
= control target key end

     0   :  { %v527_v2 = vmov 0.0   ;;  %s528_s13 = smov 96   ;;  %vm529_vm0 = vmmov 0   ;;  %s760_s0 = inlined_call_operand.vmem [shape: f32[2,64], index: 0, kind: input, shape index: {}]   ;;  %s761_s1 = inlined_call_operand.vmem [shape: f32[2,128], index: 1, kind: input, shape index: {}]   ;;  %s762_s2 = inlined_call_operand.vmem [shape: f32[128,128], index: 2, kind: input, shape index: {}]   ;;  %s763_s3 = inlined_call_operand.vmem [shape: f32[1,128], index: 3, kind: input, shape index: {}]   ;;  %s764_s4 = inlined_call_operand.vmem [shape: f32[128,128], index: 4, kind: input, shape index: {}]   ;;  %s765_s5 = inlined_call_operand.vmem [shape: f32[1,128], index: 5, kind: input, shape index: {}]   ;;  %s766_s6 = inlined_call_operand.vmem [shape: f32[32,128], index: 6, kind: input, shape index: {}]   ;;  %s767_s7 = inlined_call_operand.vmem [shape: f32[1,128], index: 7, kind: input, shape index: {}]   ;;  %s768_s8 = inlined_call_operand.hbm [shape: f32[1,1], index: 8, kind: output, shape index: {0}]   ;;  %s769_s9 = inlined_call_operand.vmem [shape: f32[2,128], index: 9, kind: output, shape index: {1}]  }
   0x1   :  { %v584_v0 = vld [vmem:[%s760_s0] sm:$0x3]  ;;  %v54_v1 = vld [vmem:[%s762_s2 + $0x78] sm:$0xff]  ;;  %410 = vmatprep.subr.mxu0 %v527_v2  ;;  %v53_v3 = vld [vmem:[%s762_s2 + $0x70] sm:$0xff]  ;;  %442 = vmatprep.mubr.msk.f32.mxu0 %vm529_vm0, %v527_v2 }
   0x2   :  { %34 = vrot.lane.b32.xlu0 %v584_v0, %s528_s13  ;;  %411 = vmatpush3.msra.mxu0 %v54_v1  ;;  %v52_v4 = vld [vmem:[%s762_s2 + $0x68] sm:$0xff]  ;;  %v51_v5 = vld [vmem:[%s762_s2 + $0x60] sm:$0xff]  ;;  %v136_v6 = vld [vmem:[%s766_s6 + $0x18] sm:$0xff] }
   0x3   :  { %412 = vmatprep.subr.mxu0 %v527_v2  ;;  %445 = vmatprep.subr.mxu1 %v527_v2  ;;  %v135_v7 = vld [vmem:[%s766_s6 + $0x10] sm:$0xff]  ;;  %v50_v8 = vld [vmem:[%s762_s2 + $0x58] sm:$0xff]  ;;  %v134_v9 = vld [vmem:[%s766_s6 + $0x8] sm:$0xff] }
   0x4   :  { %413 = vmatpush3.msra.mxu0 %v53_v3  ;;  %453 = vmatprep.mubr.msk.f32.mxu1 %vm529_vm0, %v527_v2  ;;  %v49_v10 = vld [vmem:[%s762_s2 + $0x50] sm:$0xff]  ;;  %v133_v11 = vld [vmem:[%s766_s6] sm:$0xff] }
   0x5   :  { %414 = vmatprep.subr.mxu0 %v527_v2  ;;  %446 = vmatpush3.msra.mxu1 %v136_v6 }
   0x6   :  { %415 = vmatpush3.msra.mxu0 %v52_v4  ;;  %447 = vmatprep.subr.mxu1 %v527_v2 }
   0x7   :  { %416 = vmatprep.subr.mxu0 %v527_v2  ;;  %448 = vmatpush3.msra.mxu1 %v135_v7 }
   0x8   :  { %417 = vmatpush3.msra.mxu0 %v51_v5  ;;  %449 = vmatprep.subr.mxu1 %v527_v2 }
   0x9   :  { %418 = vmatprep.subr.mxu0 %v527_v2 }
   0xa   :  { %419 = vmatpush3.msra.mxu0 %v50_v8 }
   0xb   :  { %15 = vsyncpa [#allocation3], 0  ;;  %420 = vmatprep.subr.mxu0 %v527_v2  ;;  %v48_v12 = vld [vmem:[%s762_s2 + $0x48] sm:$0xff]  ;;  %450 = vmatpush3.msra.mxu1 %v134_v9  ;;  %v47_v13 = vld [vmem:[%s762_s2 + $0x40] sm:$0xff]  ;;  %vm144_vm1 = vcmask 261120   ;;  %vm316_vm2 = vcmask 1041408  }
   0xc   :  { %421 = vmatpush3.msra.mxu0 %v49_v10  ;;  %451 = vmatprep.subr.mxu1 %v527_v2  ;;  %v46_v14 = vld [vmem:[%s762_s2 + $0x38] sm:$0xff]  ;;  %v45_v15 = vld [vmem:[%s762_s2 + $0x30] sm:$0xff]  ;;  %v44_v16 = vld [vmem:[%s762_s2 + $0x28] sm:$0xff]  ;;  %s530_s19 = smov [#allocation2]   ;;  %vm346_vm3 = vcmask 0  }
   0xd   :  { %422 = vmatprep.subr.mxu0 %v527_v2  ;;  %452 = vmatpush3.msra.mxu1 %v133_v11  ;;  %v43_v17 = vld [vmem:[%s762_s2 + $0x20] sm:$0xff]  ;;  %v42_v18 = vld [vmem:[%s762_s2 + $0x18] sm:$0xff]  ;;  %v41_v19 = vld [vmem:[%s762_s2 + $0x10] sm:$0xff]  ;;  %s355_s20 = sshll.u32 %s530_s19, 4  ;;  %s356_s20 = int_to_ptr.vmem [resolvable:$true] %s355_s20 }
   0xe   :  { %423 = vmatpush3.msra.mxu0 %v48_v12  ;;  %456 = vmatprep.subr.mxu1 %v527_v2  ;;  %v40_v20 = vld [vmem:[%s762_s2 + $0x8] sm:$0xff]  ;;  %v39_v21 = vld [vmem:[%s762_s2] sm:$0xff]  ;;  %v234_v25 = vld [vmem:[%s764_s4 + $0x78] sm:$0xff]  ;;  %s505_s22 = scalar_lea.vmem %s356_s20, 16  ;;  %s509_s23 = scalar_lea.vmem %s356_s20, 32 }
   0xf   :  { %424 = vmatprep.subr.mxu0 %v527_v2  ;;  %v674_v22 = vld [vmem:[%s761_s1] sm:$0x3]  ;;  %v233_v26 = vld [vmem:[%s764_s4 + $0x70] sm:$0xff]  ;;  %v232_v27 = vld [vmem:[%s764_s4 + $0x68] sm:$0xff]  ;;  %p506_p0 = scmp.ne.s32.totalorder %s356_s20, %s505_s22  ;;  %p510_p1 = scmp.lt.s32.totalorder %s356_s20, %s356_s20 }
  0x10   :  { %425 = vmatpush3.msra.mxu0 %v47_v13  ;;  %v231_v28 = vld [vmem:[%s764_s4 + $0x60] sm:$0xff]  ;;  %v230_v29 = vld [vmem:[%s764_s4 + $0x58] sm:$0xff]  ;;  %v229_v30 = vld [vmem:[%s764_s4 + $0x50] sm:$0xff]  ;;  %p511_p2 = scmp.lt.s32.totalorder %s509_s23, %s505_s22 }
  0x11   :  { %426 = vmatprep.subr.mxu0 %v527_v2  ;;  %v228_v31 = vld [vmem:[%s764_s4 + $0x48] sm:$0xff]  ;;  %v227_v32 = vld [vmem:[%s764_s4 + $0x40] sm:$0xff]  ;;  %v226_v33 = vld [vmem:[%s764_s4 + $0x38] sm:$0xff] }
  0x12   :  { %427 = vmatpush3.msra.mxu0 %v46_v14  ;;  %v225_v34 = vld [vmem:[%s764_s4 + $0x30] sm:$0xff]  ;;  %v224_v35 = vld [vmem:[%s764_s4 + $0x28] sm:$0xff]  ;;  %v223_v36 = vld [vmem:[%s764_s4 + $0x20] sm:$0xff]  ;;  %p512_p3 = por %p511_p2, %p510_p1 }
  0x13   :  { %428 = vmatprep.subr.mxu0 %v527_v2  ;;  %v222_v37 = vld [vmem:[%s764_s4 + $0x18] sm:$0xff]  ;;  %v221_v38 = vld [vmem:[%s764_s4 + $0x10] sm:$0xff]  ;;  %v220_v39 = vld [vmem:[%s764_s4 + $0x8] sm:$0xff] }
  0x14   :  { %429 = vmatpush3.msra.mxu0 %v45_v15  ;;  %v219_v40 = vld [vmem:[%s764_s4] sm:$0xff]  ;;  %p513_p4 = pnand %p512_p3, %p506_p0 }
  0x15   :  { %430 = vmatprep.subr.mxu0 %v527_v2  ;;  %v367_v41 = vld [vmem:[%s763_s3] ss:$0 sm:$0xff] }
  0x16   :  { %431 = vmatpush3.msra.mxu0 %v44_v16  ;;  %v368_v46 = vld [vmem:[%s767_s7] ss:$0 sm:$0xff] }
  0x17   :  { %432 = vmatprep.subr.mxu0 %v527_v2  ;;  %v370_v54 = vld [vmem:[%s765_s5] ss:$0 sm:$0xff] }
  0x18   :  { %433 = vmatpush3.msra.mxu0 %v43_v17 }
  0x19   :  { %434 = vmatprep.subr.mxu0 %v527_v2 }
  0x1a   :  { %435 = vmatpush3.msra.mxu0 %v42_v18 }
  0x1b   :  { %436 = vmatprep.subr.mxu0 %v527_v2 }
  0x1c   :  { %437 = vmatpush3.msra.mxu0 %v41_v19 }
  0x1d   :  { %438 = vmatprep.subr.mxu0 %v527_v2 }
  0x1e   :  { %439 = vmatpush3.msra.mxu0 %v40_v20 }
  0x1f   :  { %440 = vmatprep.subr.mxu0 %v527_v2 }
  0x20   :  { %441 = vmatpush3.msra.mxu0 %v39_v21 }
  0x21   :  { %443 = vmatmul.mubr.f32.vlgmr.msra.gmra.mxu0 %v674_v22 }
  0x74   :  { %v35_v23 = vpop.permute.xlu0 %34 }
  0x75   :  { %v37_v24 = vadd.f32 %v35_v23, %v584_v0 }
  0x77   :  { %454 = vmatmul.mubr.msk.f32.vlgmr.msra.gmra.mxu1 %vm144_vm1, %v37_v24 }
  0x78   :  { %457 = vmatpush3.msra.mxu1 %v234_v25  ;;  %488 = vmatprep.mubr.msk.f32.mxu1 %vm529_vm0, %v527_v2 }
  0x79   :  { %458 = vmatprep.subr.mxu1 %v527_v2 }
  0x7a   :  { %459 = vmatpush3.msra.mxu1 %v233_v26 }
  0x7b   :  { %460 = vmatprep.subr.mxu1 %v527_v2 }
  0x7c   :  { %461 = vmatpush3.msra.mxu1 %v232_v27 }
  0x7d   :  { %462 = vmatprep.subr.mxu1 %v527_v2 }
  0x7e   :  { %463 = vmatpush3.msra.mxu1 %v231_v28 }
  0x7f   :  { %464 = vmatprep.subr.mxu1 %v527_v2 }
  0x80   :  { %465 = vmatpush3.msra.mxu1 %v230_v29 }
  0x81   :  { %466 = vmatprep.subr.mxu1 %v527_v2 }
  0x82   :  { %467 = vmatpush3.msra.mxu1 %v229_v30 }
  0x83   :  { %468 = vmatprep.subr.mxu1 %v527_v2 }
  0x84   :  { %469 = vmatpush3.msra.mxu1 %v228_v31 }
  0x85   :  { %470 = vmatprep.subr.mxu1 %v527_v2 }
  0x86   :  { %471 = vmatpush3.msra.mxu1 %v227_v32 }
  0x87   :  { %472 = vmatprep.subr.mxu1 %v527_v2 }
  0x88   :  { %473 = vmatpush3.msra.mxu1 %v226_v33 }
  0x89   :  { %474 = vmatprep.subr.mxu1 %v527_v2 }
  0x8a   :  { %475 = vmatpush3.msra.mxu1 %v225_v34 }
  0x8b   :  { %476 = vmatprep.subr.mxu1 %v527_v2 }
  0x8c   :  { %477 = vmatpush3.msra.mxu1 %v224_v35 }
  0x8d   :  { %478 = vmatprep.subr.mxu1 %v527_v2 }
  0x8e   :  { %479 = vmatpush3.msra.mxu1 %v223_v36 }
  0x8f   :  { %480 = vmatprep.subr.mxu1 %v527_v2 }
  0x90   :  { %481 = vmatpush3.msra.mxu1 %v222_v37 }
  0x91   :  { %482 = vmatprep.subr.mxu1 %v527_v2 }
  0x92   :  { %483 = vmatpush3.msra.mxu1 %v221_v38 }
  0x93   :  { %484 = vmatprep.subr.mxu1 %v527_v2 }
  0x94   :  { %485 = vmatpush3.msra.mxu1 %v220_v39 }
  0x95   :  { %486 = vmatprep.subr.mxu1 %v527_v2 }
  0x96   :  { %487 = vmatpush3.msra.mxu1 %v219_v40 }
  0xe1   :  { %v128_v42 = vpop.f32.mrf.mxu0 }
  0xe2   :  { %v129_v43 = vadd.f32 %v367_v41, %v128_v42 }
  0xe3   :  { %v444_v44 = vpop.f32.mrf.mxu0 }
  0xe4   :  { %499 = vtanh.f32 %v129_v43 }
  0xf1   :  { %v500_v45 = vpop.eup %499 }
  0xf2   :  { %348 = vst [vmem:[%s769_s9] sm:$0x3] %v500_v45  ;;  %489 = vmatmul.mubr.f32.vlgmr.msra.gmra.mxu1 %v500_v45 }
 0x137   :  { %v214_v47 = vpop.f32.mrf.mxu1 }
 0x138   :  { %v215_v48 = vadd.f32 %v368_v46, %v214_v47 }
 0x139   :  { %v455_v49 = vpop.f32.mrf.mxu1 }
 0x13a   :  { %501 = vtanh.f32 %v215_v48 }
 0x147   :  { %v502_v50 = vpop.eup %501 }
 0x148   :  { %v314_v51 = vsub.f32 %v502_v50, %v500_v45 }
 0x14a   :  { %v330_v52 = vmul.f32 %v314_v51, %v314_v51 }
 0x14c   :  { %v331_v53 = vsel %vm316_vm2, %v330_v52, 0.0 }
 0x14d   :  { %332 = vadd.xlane.f32.xlu1 %v331_v53 }
 0x1b2   :  { %v308_v55 = vpop.f32.mrf.mxu1 }
 0x1b3   :  { %v309_v56 = vadd.f32 %v370_v54, %v308_v55 }
 0x1b4   :  { %v490_v57 = vpop.f32.mrf.mxu1 }
 0x1b5   :  { %503 = vtanh.f32 %v309_v56 }
 0x1c2   :  { %v504_v58 = vpop.eup %503 }
 0x1c3   :  { %v313_v59 = vsub.f32 %v504_v58, %v674_v22 }
 0x1c5   :  { %v315_v60 = vmul.f32 %v313_v59, %v313_v59 }
 0x1c7   :  { %v317_v61 = vsel %vm316_vm2, %v315_v60, 0.0 }
 0x1c8   :  { %318 = vadd.xlane.f32.xlu0 %v317_v61 }
 0x1d6   :  { %v333_v62 = vpop.xlane.xlu1 %332 }
 0x1d7   :  { %v334_v63 = vrot.slane %v333_v62, 4 }
 0x1d9   :  { %v335_v0 = vadd.f32 %v334_v63, %v333_v62 }
 0x1db   :  { %v336_v1 = vrot.slane %v335_v0, 2 }
 0x1dd   :  { %v337_v5 = vadd.f32 %v336_v1, %v335_v0 }
 0x1df   :  { %v338_v8 = vrot.slane %v337_v5, 1 }
 0x1e1   :  { %v339_v11 = vadd.f32 %v338_v8, %v337_v5 }
 0x251   :  { %v319_v2 = vpop.xlane.xlu0 %318 }
 0x252   :  { %v320_v3 = vrot.slane %v319_v2, 4 }
 0x254   :  { %v321_v4 = vadd.f32 %v320_v3, %v319_v2 }
 0x256   :  { %v322_v6 = vrot.slane %v321_v4, 2 }
 0x258   :  { %v323_v7 = vadd.f32 %v322_v6, %v321_v4 }
 0x25a   :  { %v324_v9 = vrot.slane %v323_v7, 1 }
 0x25c   :  { %v325_v10 = vadd.f32 %v324_v9, %v323_v7 }
 0x25e   :  { %491 = vpush %v325_v10 }
 0x25f   :  { %493 = vpush %v339_v11 }
 0x28f   :  { %s492_s5 = spop %491 }
 0x290   :  { %s329_s7 = smul.f32 0.00390625, %s492_s5  ;;  %s494_s9 = spop %493 }
 0x291   :  { %s343_s18 = smul.f32 0.00390625, %s494_s9 }
 0x293   :  { %s344_s21 = sadd.f32 %s343_s18, %s329_s7 }
 0x295   :  { %v345_v12 = vstv %s344_s21 }
 0x296   :  { %347 = vst.msk [vmem:[#allocation2] sm:$0x1] %vm346_vm3, %v345_v12 }
 0x297   :  { %516 = shalt.err (!%p513_p4)
}
 0x298   :  { %358 = dma.vmem_to_hbm [thread:$0]  %s356_s20, 16, %s768_s8, [#allocation3]  }
 0x299   :  { %525 = dma.done.wait [#allocation3], 16  }
 0x29a   :  { %526 = vsyncadd [#allocation3], 4294967280 }
 0x29b   :  { %366 = vsyncpa [#allocation3], 1 }

// kernel: model_forward.6
= control target key start
LH: loop header
LB: loop body
LE: loop exit
PB: predicated region body
PF: predicated region fallthrough
CT: control target
= control target key end

     0   :  { %v1609_v3 = vmov 0.0   ;;  %vm48_vm0 = vcmask 261120   ;;  %vm150_vm1 = vcmask 523264   ;;  %v38_v29 = vlaneseq  ;;  %s1612_s15 = smov 96   ;;  %s2155_s4 = inlined_call_operand.vmem [shape: f32[64,256], index: 4, kind: input, shape index: {}]   ;;  %s2156_s3 = inlined_call_operand.vmem [shape: f32[32,256], index: 3, kind: input, shape index: {}]   ;;  %s2157_s0 = inlined_call_operand.vmem [shape: f32[16,32], index: 0, kind: input, shape index: {}]   ;;  %s2158_s2 = inlined_call_operand.vmem [shape: f32[2,64], index: 2, kind: input, shape index: {}, may-alias: {1,2}]   ;;  %s2159_s1 = inlined_call_operand.vmem [shape: f32[2,64], index: 1, kind: input, shape index: {}, may-alias: {1,2}]   ;;  %s2160_s5 = inlined_call_operand.vmem [shape: f32[1,256], index: 5, kind: input, shape index: {}]   ;;  %s2161_s6 = inlined_call_operand.vmem [shape: f32[8,2,64], index: 6, kind: output, shape index: {0}]   ;;  %s2162_s8 = inlined_call_operand.vmem [shape: f32[2,64], index: 8, kind: output, shape index: {2}]   ;;  %s2163_s7 = inlined_call_operand.vmem [shape: f32[2,64], index: 7, kind: output, shape index: {1}]  }
   0x1   :  { %v1661_v0 = vld [vmem:[%s2155_s4 + $0x78] sm:$0xff]  ;;  %v1666_v1 = vld [vmem:[%s2155_s4 + $0x70] sm:$0xff]  ;;  %119 = vmatprep.mubr.f32.mxu0 %v1609_v3  ;;  %218 = vmatprep.mubr.f32.mxu1 %v1609_v3  ;;  %v1677_v4 = vld [vmem:[%s2155_s4 + $0x68] sm:$0xff]  ;;  %vm1427_vm2 = vcmask 517120   ;;  %vm1436_vm3 = vcmask 523270  }
   0x2   :  { %v35_v2 = vld [vmem:[%s2156_s3 + $0x38] sm:$0xff]  ;;  %170 = vmatprep.subr.mxu1 %v1661_v0  ;;  %v34_v5 = vld [vmem:[%s2156_s3 + $0x30] sm:$0xff]  ;;  %v1685_v6 = vld [vmem:[%s2155_s4 + $0x60] sm:$0xff]  ;;  %v39_v30 = vshrl.u32 %v38_v29, 7 }
   0x3   :  { %79 = vmatprep.subr.mxu0 %v35_v2  ;;  %171 = vmatpush1.msra.mxu1 %v1666_v1  ;;  %v33_v7 = vld [vmem:[%s2156_s3 + $0x28] sm:$0xff]  ;;  %v1694_v8 = vld [vmem:[%s2155_s4 + $0x58] sm:$0xff]  ;;  %v32_v9 = vld [vmem:[%s2156_s3 + $0x20] sm:$0xff] }
   0x4   :  { %80 = vmatpush1.msra.mxu0 %v34_v5  ;;  %172 = vmatprep.subr.mxu1 %v1677_v4  ;;  %v1703_v10 = vld [vmem:[%s2155_s4 + $0x50] sm:$0xff]  ;;  %v31_v11 = vld [vmem:[%s2156_s3 + $0x18] sm:$0xff]  ;;  %v1712_v12 = vld [vmem:[%s2155_s4 + $0x48] sm:$0xff]  ;;  %v44_v31 = vsub.s32 1, %v39_v30  ;;  %v40_v33 = vsub.s32 0, %v39_v30 }
   0x5   :  { %81 = vmatprep.subr.mxu0 %v33_v7  ;;  %173 = vmatpush1.msra.mxu1 %v1685_v6  ;;  %v30_v13 = vld [vmem:[%s2156_s3 + $0x10] sm:$0xff]  ;;  %v29_v14 = vld [vmem:[%s2156_s3 + $0x8] sm:$0xff]  ;;  %v1724_v15 = vld [vmem:[%s2155_s4 + $0x40] sm:$0xff] }
   0x6   :  { %82 = vmatpush1.msra.mxu0 %v32_v9  ;;  %174 = vmatprep.subr.mxu1 %v1694_v8  ;;  %v28_v16 = vld [vmem:[%s2156_s3] sm:$0xff]  ;;  %v1733_v17 = vld [vmem:[%s2155_s4 + $0x38] sm:$0xff]  ;;  %v1742_v19 = vld [vmem:[%s2155_s4 + $0x30] sm:$0xff] }
   0x7   :  { %83 = vmatprep.subr.mxu0 %v31_v11  ;;  %175 = vmatpush1.msra.mxu1 %v1703_v10  ;;  %v26_v18 = vld [vmem:[%s2157_s0] sm:$0xff]  ;;  %v1748_v20 = vld [vmem:[%s2155_s4 + $0x28] sm:$0xff]  ;;  %v1766_v23 = vld [vmem:[%s2155_s4 + $0x18] sm:$0xff] }
   0x8   :  { %84 = vmatpush1.msra.mxu0 %v30_v13  ;;  %176 = vmatprep.subr.mxu1 %v1712_v12  ;;  %v1755_v21 = vld [vmem:[%s2155_s4 + $0x20] sm:$0xff]  ;;  %v27_v24 = vld [vmem:[%s2157_s0 + $0x8] sm:$0xff]  ;;  %v1776_v25 = vld [vmem:[%s2155_s4 + $0x10] sm:$0xff] }
   0x9   :  { %85 = vmatprep.subr.mxu0 %v29_v14  ;;  %177 = vmatpush1.msra.mxu1 %v1724_v15  ;;  %v1760_v22 = vld [vmem:[%s2158_s2] sm:$0x3]  ;;  %s1610_s2 = smov 32   ;;  %v1784_v26 = vld [vmem:[%s2155_s4 + $0x8] sm:$0xff] }
   0xa   :  { %86 = vmatpush1.msra.mxu0 %v28_v16  ;;  %178 = vmatprep.subr.mxu1 %v1733_v17  ;;  %v1792_v27 = vld [vmem:[%s2155_s4] sm:$0xff]  ;;  %v265_v63 = vrot.slane %v1760_v22, 2 }
   0xb   :  { %1451 = vmatmul.mubr.msk.f32.vlgmr.msra.gmra.mxu0 %vm48_vm0, %v26_v18  ;;  %179 = vmatpush1.msra.mxu1 %v1742_v19  ;;  %v132_v28 = vld [vmem:[%s2159_s1] sm:$0x3] }
   0xc   :  { %125 = vmatprep.mubr.f32.mxu0 %v1609_v3  ;;  %180 = vmatprep.subr.mxu1 %v1748_v20  ;;  %v36_v32 = vld [vmem:[%s2160_s5] sm:$0x3]  ;;  %s1611_s5 = smov 64  }
   0xd   :  { %238 = vrot.lane.b32.xlu1 %v1760_v22, %s1610_s2  ;;  %181 = vmatpush1.msra.mxu1 %v1755_v21  ;;  %v45_v34 = vrot.slane %v36_v32, %v44_v31  ;;  %v41_v37 = vrot.slane %v36_v32, %v40_v33 }
   0xe   :  { %321 = vmatprep.subr.mxu0 %v1661_v0  ;;  %182 = vmatprep.subr.mxu1 %v1766_v23 }
   0xf   :  { %1452 = vmatmul.mubr.msk.f32.gmra.mxu0 %vm48_vm0, %v27_v24  ;;  %183 = vmatpush1.msra.mxu1 %v1776_v25 }
  0x10   :  { %322 = vmatpush1.msra.mxu0 %v1666_v1  ;;  %184 = vmatprep.subr.mxu1 %v1784_v26 }
  0x11   :  { %323 = vmatprep.subr.mxu0 %v1677_v4  ;;  %185 = vmatpush1.msra.mxu1 %v1792_v27 }
  0x12   :  { %324 = vmatpush1.msra.mxu0 %v1685_v6  ;;  %1453 = vmatmul.mubr.msk.f32.vlgmr.msra.gmra.mxu1 %vm150_vm1, %v132_v28 }
  0x13   :  { %325 = vmatprep.subr.mxu0 %v1694_v8  ;;  %369 = vmatprep.mubr.f32.mxu0 %v1609_v3 }
  0x14   :  { %326 = vmatpush1.msra.mxu0 %v1703_v10  ;;  %477 = vmatprep.subr.mxu1 %v1661_v0 }
  0x15   :  { %327 = vmatprep.subr.mxu0 %v1712_v12  ;;  %478 = vmatpush1.msra.mxu1 %v1666_v1 }
  0x16   :  { %328 = vmatpush1.msra.mxu0 %v1724_v15  ;;  %479 = vmatprep.subr.mxu1 %v1677_v4 }
  0x17   :  { %329 = vmatprep.subr.mxu0 %v1733_v17  ;;  %480 = vmatpush1.msra.mxu1 %v1685_v6 }
  0x18   :  { %330 = vmatpush1.msra.mxu0 %v1742_v19  ;;  %481 = vmatprep.subr.mxu1 %v1694_v8 }
  0x19   :  { %331 = vmatprep.subr.mxu0 %v1748_v20  ;;  %482 = vmatpush1.msra.mxu1 %v1703_v10 }
  0x1a   :  { %332 = vmatpush1.msra.mxu0 %v1755_v21  ;;  %483 = vmatprep.subr.mxu1 %v1712_v12 }
  0x1b   :  { %333 = vmatprep.subr.mxu0 %v1766_v23  ;;  %484 = vmatpush1.msra.mxu1 %v1724_v15 }
  0x1c   :  { %334 = vmatpush1.msra.mxu0 %v1776_v25  ;;  %485 = vmatprep.subr.mxu1 %v1733_v17 }
  0x1d   :  { %335 = vmatprep.subr.mxu0 %v1784_v26  ;;  %486 = vmatpush1.msra.mxu1 %v1742_v19 }
  0x1e   :  { %336 = vmatpush1.msra.mxu0 %v1792_v27  ;;  %487 = vmatprep.subr.mxu1 %v1748_v20 }
  0x1f   :  { %525 = vmatprep.mubr.f32.mxu1 %v1609_v3  ;;  %488 = vmatpush1.msra.mxu1 %v1755_v21 }
  0x20   :  { %631 = vmatprep.subr.mxu0 %v1661_v0  ;;  %489 = vmatprep.subr.mxu1 %v1766_v23 }
  0x21   :  { %490 = vmatpush1.msra.mxu1 %v1776_v25 }
  0x22   :  { %491 = vmatprep.subr.mxu1 %v1784_v26 }
  0x23   :  { %492 = vmatpush1.msra.mxu1 %v1792_v27 }
  0x24   :  { %784 = vmatprep.subr.mxu1 %v1661_v0 }
  0x7f   :  { %v239_v2 = vpop.permute.xlu1 %238 }
  0xcb   :  { %v121_v35 = vpop.f32.mrf.mxu0 }
  0xcc   :  { %v1845_v46 = vadd.f32 %v121_v35, %v41_v37 }
  0xcd   :  { %v123_v36 = vpop.f32.mrf.mxu0 }
  0xce   :  { %v1839_v38 = vadd.f32 %v123_v36, %v45_v34 }
  0xcf   :  { %v127_v39 = vpop.f32.mrf.mxu0 }
  0xd0   :  { %v1841_v40 = vadd.f32 %v127_v39, %v41_v37 }
  0xd1   :  { %v129_v41 = vpop.f32.mrf.mxu0 }
  0xd2   :  { %v220_v42 = vpop.f32.mrf.mxu1  ;;  %v1843_v44 = vadd.f32 %v129_v41, %v45_v34 }
  0xd3   :  { %v225_v48 = vadd.f32 %v220_v42, %v1845_v46 }
  0xd4   :  { %v222_v43 = vpop.f32.mrf.mxu1 }
  0xd5   :  { %v227_v45 = vrot.slane %v222_v43, 2  ;;  %v1454_v52 = vmul.f32 -1.442695, %v225_v48 }
  0xd7   :  { %v229_v47 = vadd.f32 %v227_v45, %v1843_v44 }
  0xd9   :  { %1481 = vtanh.f32 %v229_v47  ;;  %v1455_v51 = vmul.f32 -1.442695, %v229_v47 }
  0xda   :  { %1483 = vtanh.f32 %v225_v48 }
  0xdb   :  { %1485 = vpow2.f32 %v1455_v51 }
  0xdc   :  { %1487 = vpow2.f32 %v1454_v52 }
  0xe6   :  { %v1482_v49 = vpop.eup %1481 }
  0xe7   :  { %269 = vrot.lane.b32.xlu0 %v1482_v49, %s1611_s5  ;;  %v1484_v50 = vpop.eup %1483 }
  0xe8   :  { %v1486_v53 = vpop.eup %1485 }
  0xe9   :  { %v261_v54 = vadd.f32 1.0, %v1486_v53  ;;  %v1488_v55 = vpop.eup %1487 }
  0xea   :  { %v233_v56 = vadd.f32 1.0, %v1488_v55 }
  0xeb   :  { %243 = vrot.lane.b32.xlu0 %v1484_v50, %s1611_s5  ;;  %1489 = vrcp.f32 %v261_v54 }
  0xec   :  { %1491 = vrcp.f32 %v233_v56 }
  0xf8   :  { %v1490_v57 = vpop.eup %1489 }
  0xf9   :  { %v1492_v60 = vpop.eup %1491  ;;  %v267_v5 = vmul.f32 %v1490_v57, %v265_v63 }
  0xfa   :  { %v241_v11 = vmul.f32 %v1492_v60, %v239_v2 }
 0x159   :  { %v270_v58 = vpop.permute.xlu0 %269 }
 0x15a   :  { %v272_v59 = vmul.f32 %v1490_v57, %v270_v58 }
 0x15c   :  { %274 = vrot.lane.b32.xlu1 %v272_v59, %s1610_s2 }
 0x15d   :  { %v244_v61 = vpop.permute.xlu0 %243 }
 0x15e   :  { %v246_v62 = vmul.f32 %v1492_v60, %v244_v61 }
 0x160   :  { %248 = vrot.lane.b32.xlu0 %v246_v62, %s1610_s2 }
 0x1ce   :  { %v275_v7 = vpop.permute.xlu1 %274 }
 0x1cf   :  { %v277_v9 = vadd.f32 %v275_v7, %v267_v5 }
 0x1d1   :  { %1493 = vtanh.f32 %v277_v9  ;;  %v299_v45 = vrot.slane %v277_v9, 6 }
 0x1d2   :  { %v249_v13 = vpop.permute.xlu0 %248 }
 0x1d3   :  { %v251_v14 = vadd.f32 %v249_v13, %v241_v11 }
 0x1d5   :  { %1495 = vtanh.f32 %v251_v14 }
 0x1de   :  { %v1494_v16 = vpop.eup %1493 }
 0x1df   :  { %280 = vrot.lane.b32.xlu1 %v1494_v16, %s1611_s5 }
 0x1e2   :  { %v1496_v18 = vpop.eup %1495 }
 0x1e3   :  { %254 = vrot.lane.b32.xlu0 %v1496_v18, %s1611_s5 }
 0x251   :  { %v281_v24 = vpop.permute.xlu1 %280 }
 0x252   :  { %v1856_v28 = vmul.f32 %v1490_v57, %v281_v24 }
 0x254   :  { %v289_v22 = vrot.slane %v1856_v28, 6 }
 0x255   :  { %v255_v29 = vpop.permute.xlu0 %254 }
 0x256   :  { %v257_v30 = vmul.f32 %v1492_v60, %v255_v29  ;;  %290 = vrot.lane.b32.xlu0 %v289_v22, %s1611_s5 }
 0x258   :  { %285 = vrot.lane.b32.xlu1 %v257_v30, %s1610_s2 }
 0x25c   :  { %295 = vrot.lane.b32.xlu1 %v251_v14, %s1612_s15 }
 0x2c8   :  { %v291_v31 = vpop.permute.xlu0 %290 }
 0x2ca   :  { %v1862_v32 = vpop.permute.xlu1 %285 }
 0x2cb   :  { %v293_v33 = vsel %vm48_vm0, %v1862_v32, %v291_v31 }
 0x2cc   :  { %1456 = vmatmul.mubr.msk.f32.vlgmr.msra.gmra.mxu0 %vm150_vm1, %v293_v33 }
 0x2cd   :  { %632 = vmatpush1.msra.mxu0 %v1666_v1  ;;  %679 = vmatprep.mubr.f32.mxu0 %v1609_v3 }
 0x2ce   :  { %633 = vmatprep.subr.mxu0 %v1677_v4  ;;  %v296_v43 = vpop.permute.xlu1 %295 }
 0x2cf   :  { %634 = vmatpush1.msra.mxu0 %v1685_v6  ;;  %v301_v48 = vsel %vm48_vm0, %v296_v43, %v299_v45 }
 0x2d0   :  { %635 = vmatprep.subr.mxu0 %v1694_v8  ;;  %v392_v49 = vrot.slane %v301_v48, 6  ;;  %v420_v2 = vrot.slane %v301_v48, 4 }
 0x2d1   :  { %636 = vmatpush1.msra.mxu0 %v1703_v10 }
 0x2d2   :  { %637 = vmatprep.subr.mxu0 %v1712_v12 }
 0x2d3   :  { %638 = vmatpush1.msra.mxu0 %v1724_v15 }
 0x2d4   :  { %639 = vmatprep.subr.mxu0 %v1733_v17 }
 0x2d5   :  { %640 = vmatpush1.msra.mxu0 %v1742_v19 }
 0x2d6   :  { %641 = vmatprep.subr.mxu0 %v1748_v20 }
 0x2d7   :  { %642 = vmatpush1.msra.mxu0 %v1755_v21 }
 0x2d8   :  { %643 = vmatprep.subr.mxu0 %v1766_v23 }
 0x2d9   :  { %644 = vmatpush1.msra.mxu0 %v1776_v25 }
 0x2da   :  { %645 = vmatprep.subr.mxu0 %v1784_v26 }
 0x2db   :  { %646 = vmatpush1.msra.mxu0 %v1792_v27 }
 0x2dc   :  { %934 = vmatprep.subr.mxu0 %v1661_v0 }
 0x38c   :  { %v371_v34 = vpop.f32.mrf.mxu0 }
 0x38d   :  { %v377_v35 = vrot.slane %v371_v34, 6 }
 0x38e   :  { %v373_v36 = vpop.f32.mrf.mxu0 }
 0x38f   :  { %v379_v37 = vadd.f32 %v377_v35, %v1845_v46  ;;  %v381_v39 = vrot.slane %v373_v36, 4 }
 0x391   :  { %1497 = vtanh.f32 %v379_v37  ;;  %v383_v41 = vadd.f32 %v381_v39, %v1843_v44  ;;  %v1457_v50 = vmul.f32 -1.442695, %v379_v37 }
 0x393   :  { %1499 = vtanh.f32 %v383_v41  ;;  %v1458_v51 = vmul.f32 -1.442695, %v383_v41 }
 0x394   :  { %1501 = vpow2.f32 %v1457_v50 }
 0x395   :  { %1503 = vpow2.f32 %v1458_v51 }
 0x39e   :  { %v1498_v42 = vpop.eup %1497 }
 0x39f   :  { %398 = vrot.lane.b32.xlu1 %v1498_v42, %s1611_s5 }
 0x3a0   :  { %v1500_v47 = vpop.eup %1499 }
 0x3a1   :  { %424 = vrot.lane.b32.xlu0 %v1500_v47, %s1611_s5  ;;  %v1502_v52 = vpop.eup %1501 }
 0x3a2   :  { %v1504_v53 = vpop.eup %1503  ;;  %v387_v54 = vadd.f32 1.0, %v1502_v52 }
 0x3a3   :  { %v416_v55 = vadd.f32 1.0, %v1504_v53 }
 0x3a4   :  { %1505 = vrcp.f32 %v387_v54 }
 0x3a5   :  { %393 = vrot.lane.b32.xlu0 %v392_v49, %s1610_s2  ;;  %1507 = vrcp.f32 %v416_v55 }
 0x3b1   :  { %v1506_v56 = vpop.eup %1505 }
 0x3b2   :  { %v1508_v59 = vpop.eup %1507 }
 0x3b3   :  { %v422_v9 = vmul.f32 %v1508_v59, %v420_v2 }
 0x411   :  { %v399_v57 = vpop.permute.xlu1 %398 }
 0x412   :  { %v401_v58 = vmul.f32 %v1506_v56, %v399_v57 }
 0x413   :  { %v425_v60 = vpop.permute.xlu0 %424 }
 0x414   :  { %403 = vrot.lane.b32.xlu0 %v401_v58, %s1610_s2  ;;  %v427_v61 = vmul.f32 %v1508_v59, %v425_v60 }
 0x416   :  { %429 = vrot.lane.b32.xlu1 %v427_v61, %s1610_s2 }
 0x417   :  { %v394_v62 = vpop.permute.xlu0 %393 }
 0x418   :  { %v396_v63 = vmul.f32 %v1506_v56, %v394_v62 }
 0x486   :  { %v404_v5 = vpop.permute.xlu0 %403 }
 0x487   :  { %v406_v7 = vadd.f32 %v404_v5, %v396_v63 }
 0x488   :  { %v430_v11 = vpop.permute.xlu1 %429 }
 0x489   :  { %1509 = vtanh.f32 %v406_v7  ;;  %v432_v13 = vadd.f32 %v430_v11, %v422_v9 }
 0x48b   :  { %1511 = vtanh.f32 %v432_v13  ;;  %v454_v48 = vrot.slane %v432_v13, 2 }
 0x496   :  { %v1510_v14 = vpop.eup %1509 }
 0x497   :  { %409 = vrot.lane.b32.xlu0 %v1510_v14, %s1611_s5 }
 0x498   :  { %v1512_v16 = vpop.eup %1511 }
 0x499   :  { %435 = vrot.lane.b32.xlu1 %v1512_v16, %s1611_s5 }
 0x509   :  { %v410_v18 = vpop.permute.xlu0 %409 }
 0x50a   :  { %v412_v24 = vmul.f32 %v1506_v56, %v410_v18 }
 0x50b   :  { %v436_v22 = vpop.permute.xlu1 %435 }
 0x50c   :  { %440 = vrot.lane.b32.xlu1 %v412_v24, %s1610_s2  ;;  %v1895_v29 = vmul.f32 %v1508_v59, %v436_v22 }
 0x50e   :  { %v444_v30 = vrot.slane %v1895_v29, 2 }
 0x510   :  { %450 = vrot.lane.b32.xlu1 %v406_v7, %s1612_s15  ;;  %445 = vrot.lane.b32.xlu0 %v444_v30, %s1611_s5 }
 0x57e   :  { %v1900_v31 = vpop.permute.xlu1 %440 }
 0x582   :  { %v446_v33 = vpop.permute.xlu0 %445  ;;  %v451_v47 = vpop.permute.xlu1 %450 }
 0x583   :  { %v448_v34 = vsel %vm48_vm0, %v1900_v31, %v446_v33  ;;  %v456_v50 = vsel %vm48_vm0, %v451_v47, %v454_v48 }
 0x584   :  { %v458_v35 = vrot.slane %v448_v34, 2  ;;  %v548_v51 = vrot.slane %v456_v50, 6 }
 0x586   :  { %1459 = vmatmul.mubr.msk.f32.vlgmr.msra.gmra.mxu1 %vm150_vm1, %v458_v35 }
 0x587   :  { %785 = vmatpush1.msra.mxu1 %v1666_v1  ;;  %832 = vmatprep.mubr.f32.mxu1 %v1609_v3 }
 0x588   :  { %786 = vmatprep.subr.mxu1 %v1677_v4 }
 0x589   :  { %787 = vmatpush1.msra.mxu1 %v1685_v6 }
 0x58a   :  { %788 = vmatprep.subr.mxu1 %v1694_v8 }
 0x58b   :  { %789 = vmatpush1.msra.mxu1 %v1703_v10 }
 0x58c   :  { %790 = vmatprep.subr.mxu1 %v1712_v12 }
 0x58d   :  { %791 = vmatpush1.msra.mxu1 %v1724_v15 }
 0x58e   :  { %792 = vmatprep.subr.mxu1 %v1733_v17 }
 0x58f   :  { %793 = vmatpush1.msra.mxu1 %v1742_v19 }
 0x590   :  { %794 = vmatprep.subr.mxu1 %v1748_v20 }
 0x591   :  { %795 = vmatpush1.msra.mxu1 %v1755_v21 }
 0x592   :  { %796 = vmatprep.subr.mxu1 %v1766_v23 }
 0x593   :  { %797 = vmatpush1.msra.mxu1 %v1776_v25 }
 0x594   :  { %798 = vmatprep.subr.mxu1 %v1784_v26 }
 0x595   :  { %799 = vmatpush1.msra.mxu1 %v1792_v27 }
 0x596   :  { %1090 = vmatprep.subr.mxu1 %v1661_v0 }
 0x646   :  { %v527_v36 = vpop.f32.mrf.mxu1 }
 0x647   :  { %v533_v37 = vrot.slane %v527_v36, 4 }
 0x648   :  { %v529_v39 = vpop.f32.mrf.mxu1 }
 0x649   :  { %v535_v41 = vadd.f32 %v533_v37, %v1845_v46  ;;  %v537_v42 = vrot.slane %v529_v39, 6 }
 0x64b   :  { %1513 = vtanh.f32 %v535_v41  ;;  %v539_v43 = vadd.f32 %v537_v42, %v1843_v44  ;;  %v1460_v52 = vmul.f32 -1.442695, %v535_v41 }
 0x64d   :  { %1515 = vtanh.f32 %v539_v43  ;;  %v1461_v53 = vmul.f32 -1.442695, %v539_v43 }
 0x64e   :  { %1517 = vpow2.f32 %v1460_v52 }
 0x64f   :  { %1519 = vpow2.f32 %v1461_v53 }
 0x658   :  { %v1514_v45 = vpop.eup %1513 }
 0x659   :  { %554 = vrot.lane.b32.xlu1 %v1514_v45, %s1611_s5 }
 0x65a   :  { %v1516_v49 = vpop.eup %1515 }
 0x65b   :  { %578 = vrot.lane.b32.xlu0 %v1516_v49, %s1611_s5  ;;  %v1518_v54 = vpop.eup %1517 }
 0x65c   :  { %v1520_v55 = vpop.eup %1519  ;;  %v543_v56 = vadd.f32 1.0, %v1518_v54 }
 0x65d   :  { %v572_v57 = vadd.f32 1.0, %v1520_v55 }
 0x65e   :  { %1521 = vrcp.f32 %v543_v56 }
 0x65f   :  { %549 = vrot.lane.b32.xlu0 %v548_v51, %s1610_s2  ;;  %1523 = vrcp.f32 %v572_v57 }
 0x66b   :  { %v1522_v58 = vpop.eup %1521 }
 0x66c   :  { %v1524_v61 = vpop.eup %1523 }
 0x66d   :  { %v576_v11 = vmul.f32 %v1524_v61, %v456_v50 }
 0x6cb   :  { %v555_v59 = vpop.permute.xlu1 %554 }
 0x6cc   :  { %v557_v60 = vmul.f32 %v1522_v58, %v555_v59 }
 0x6cd   :  { %v579_v62 = vpop.permute.xlu0 %578 }
 0x6ce   :  { %559 = vrot.lane.b32.xlu0 %v557_v60, %s1610_s2  ;;  %v581_v63 = vmul.f32 %v1524_v61, %v579_v62 }
 0x6d0   :  { %583 = vrot.lane.b32.xlu1 %v581_v63, %s1610_s2 }
 0x6d1   :  { %v550_v2 = vpop.permute.xlu0 %549 }
 0x6d2   :  { %v552_v5 = vmul.f32 %v1522_v58, %v550_v2 }
 0x740   :  { %v560_v7 = vpop.permute.xlu0 %559 }
 0x741   :  { %v562_v9 = vadd.f32 %v560_v7, %v552_v5 }
 0x742   :  { %v584_v13 = vpop.permute.xlu1 %583 }
 0x743   :  { %1525 = vtanh.f32 %v562_v9  ;;  %v586_v14 = vadd.f32 %v584_v13, %v576_v11 }
 0x745   :  { %1527 = vtanh.f32 %v586_v14  ;;  %v608_v49 = vrot.slane %v586_v14, 6 }
 0x750   :  { %v1526_v16 = vpop.eup %1525 }
 0x751   :  { %565 = vrot.lane.b32.xlu0 %v1526_v16, %s1611_s5 }
 0x752   :  { %v1528_v18 = vpop.eup %1527 }
 0x753   :  { %589 = vrot.lane.b32.xlu1 %v1528_v18, %s1611_s5 }
 0x7c3   :  { %v566_v24 = vpop.permute.xlu0 %565 }
 0x7c4   :  { %v568_v22 = vmul.f32 %v1522_v58, %v566_v24 }
 0x7c5   :  { %v590_v30 = vpop.permute.xlu1 %589 }
 0x7c6   :  { %594 = vrot.lane.b32.xlu1 %v568_v22, %s1610_s2  ;;  %v1933_v33 = vmul.f32 %v1524_v61, %v590_v30 }
 0x7c8   :  { %v598_v34 = vrot.slane %v1933_v33, 6 }
 0x7ca   :  { %604 = vrot.lane.b32.xlu1 %v562_v9, %s1612_s15  ;;  %599 = vrot.lane.b32.xlu0 %v598_v34, %s1611_s5 }
 0x838   :  { %v1938_v35 = vpop.permute.xlu1 %594 }
 0x83c   :  { %v600_v36 = vpop.permute.xlu0 %599  ;;  %v605_v48 = vpop.permute.xlu1 %604 }
 0x83d   :  { %v602_v37 = vsel %vm48_vm0, %v1938_v35, %v600_v36  ;;  %v610_v52 = vsel %vm48_vm0, %v605_v48, %v608_v49 }
 0x83e   :  { %v612_v39 = vrot.slane %v602_v37, 4  ;;  %v727_v2 = vrot.slane %v610_v52, 4 }
 0x840   :  { %1462 = vmatmul.mubr.msk.f32.vlgmr.msra.gmra.mxu0 %vm150_vm1, %v612_v39 }
 0x841   :  { %935 = vmatpush1.msra.mxu0 %v1666_v1  ;;  %982 = vmatprep.mubr.f32.mxu0 %v1609_v3 }
 0x842   :  { %936 = vmatprep.subr.mxu0 %v1677_v4 }
 0x843   :  { %937 = vmatpush1.msra.mxu0 %v1685_v6 }
 0x844   :  { %938 = vmatprep.subr.mxu0 %v1694_v8 }
 0x845   :  { %939 = vmatpush1.msra.mxu0 %v1703_v10 }
 0x846   :  { %940 = vmatprep.subr.mxu0 %v1712_v12 }
 0x847   :  { %941 = vmatpush1.msra.mxu0 %v1724_v15 }
 0x848   :  { %942 = vmatprep.subr.mxu0 %v1733_v17 }
 0x849   :  { %943 = vmatpush1.msra.mxu0 %v1742_v19 }
 0x84a   :  { %944 = vmatprep.subr.mxu0 %v1748_v20 }
 0x84b   :  { %945 = vmatpush1.msra.mxu0 %v1755_v21 }
 0x84c   :  { %946 = vmatprep.subr.mxu0 %v1766_v23 }
 0x84d   :  { %947 = vmatpush1.msra.mxu0 %v1776_v25 }
 0x84e   :  { %948 = vmatprep.subr.mxu0 %v1784_v26 }
 0x84f   :  { %949 = vmatpush1.msra.mxu0 %v1792_v27 }
 0x850   :  { %1244 = vmatprep.subr.mxu0 %v1661_v0  ;;  %v699_v0 = vrot.slane %v610_v52, 6 }
 0x900   :  { %v681_v41 = vpop.f32.mrf.mxu0 }
 0x901   :  { %v687_v42 = vrot.slane %v681_v41, 2 }
 0x902   :  { %v683_v43 = vpop.f32.mrf.mxu0 }
 0x903   :  { %v689_v45 = vadd.f32 %v687_v42, %v1845_v46  ;;  %v690_v47 = vadd.f32 %v683_v43, %v1843_v44 }
 0x905   :  { %1529 = vtanh.f32 %v689_v45  ;;  %v1463_v53 = vmul.f32 -1.442695, %v689_v45  ;;  %v1464_v54 = vmul.f32 -1.442695, %v690_v47 }
 0x906   :  { %1531 = vtanh.f32 %v690_v47 }
 0x907   :  { %1533 = vpow2.f32 %v1463_v53 }
 0x908   :  { %1535 = vpow2.f32 %v1464_v54 }
 0x912   :  { %v1530_v50 = vpop.eup %1529 }
 0x913   :  { %v1532_v51 = vpop.eup %1531  ;;  %705 = vrot.lane.b32.xlu1 %v1530_v50, %s1611_s5 }
 0x914   :  { %731 = vrot.lane.b32.xlu0 %v1532_v51, %s1611_s5  ;;  %v1534_v44 = vpop.eup %1533 }
 0x915   :  { %v1536_v46 = vpop.eup %1535  ;;  %v694_v55 = vadd.f32 1.0, %v1534_v44 }
 0x916   :  { %v723_v56 = vadd.f32 1.0, %v1536_v46 }
 0x917   :  { %1537 = vrcp.f32 %v694_v55 }
 0x918   :  { %700 = vrot.lane.b32.xlu0 %v699_v0, %s1610_s2  ;;  %1539 = vrcp.f32 %v723_v56 }
 0x924   :  { %v1538_v57 = vpop.eup %1537 }
 0x925   :  { %v1540_v59 = vpop.eup %1539 }
 0x926   :  { %v729_v9 = vmul.f32 %v1540_v59, %v727_v2 }
 0x985   :  { %v706_v58 = vpop.permute.xlu1 %705 }
 0x986   :  { %v732_v60 = vpop.permute.xlu0 %731  ;;  %v708_v61 = vmul.f32 %v1538_v57, %v706_v58 }
 0x987   :  { %v734_v62 = vmul.f32 %v1540_v59, %v732_v60 }
 0x988   :  { %710 = vrot.lane.b32.xlu0 %v708_v61, %s1610_s2 }
 0x989   :  { %736 = vrot.lane.b32.xlu1 %v734_v62, %s1610_s2 }
 0x98a   :  { %v701_v63 = vpop.permute.xlu0 %700 }
 0x98b   :  { %v703_v5 = vmul.f32 %v1538_v57, %v701_v63 }
 0x9fa   :  { %v711_v7 = vpop.permute.xlu0 %710 }
 0x9fb   :  { %v713_v11 = vadd.f32 %v711_v7, %v703_v5  ;;  %v737_v13 = vpop.permute.xlu1 %736 }
 0x9fc   :  { %v739_v14 = vadd.f32 %v737_v13, %v729_v9 }
 0x9fd   :  { %1541 = vtanh.f32 %v713_v11 }
 0x9fe   :  { %1543 = vtanh.f32 %v739_v14  ;;  %v761_v52 = vrot.slane %v739_v14, 2 }
 0xa0a   :  { %v1542_v16 = vpop.eup %1541 }
 0xa0b   :  { %v1544_v18 = vpop.eup %1543  ;;  %716 = vrot.lane.b32.xlu0 %v1542_v16, %s1611_s5 }
 0xa0c   :  { %742 = vrot.lane.b32.xlu1 %v1544_v18, %s1611_s5 }
 0xa7d   :  { %v717_v24 = vpop.permute.xlu0 %716 }
 0xa7e   :  { %v719_v22 = vmul.f32 %v1538_v57, %v717_v24  ;;  %v743_v30 = vpop.permute.xlu1 %742 }
 0xa7f   :  { %v1970_v34 = vmul.f32 %v1540_v59, %v743_v30 }
 0xa80   :  { %747 = vrot.lane.b32.xlu1 %v719_v22, %s1610_s2 }
 0xa81   :  { %v751_v36 = vrot.slane %v1970_v34, 2 }
 0xa83   :  { %752 = vrot.lane.b32.xlu0 %v751_v36, %s1611_s5 }
 0xa84   :  { %757 = vrot.lane.b32.xlu1 %v713_v11, %s1612_s15 }
 0xaf2   :  { %v1976_v37 = vpop.permute.xlu1 %747 }
 0xaf5   :  { %v753_v39 = vpop.permute.xlu0 %752 }
 0xaf6   :  { %v755_v41 = vsel %vm48_vm0, %v1976_v37, %v753_v39  ;;  %v758_v51 = vpop.permute.xlu1 %757 }
 0xaf7   :  { %v765_v42 = vrot.slane %v755_v41, 6  ;;  %v763_v53 = vsel %vm48_vm0, %v758_v51, %v761_v52 }
 0xaf8   :  { %v852_v54 = vrot.slane %v763_v53, 6 }
 0xaf9   :  { %1465 = vmatmul.mubr.msk.f32.vlgmr.msra.gmra.mxu1 %vm150_vm1, %v765_v42 }
 0xafa   :  { %1091 = vmatpush1.msra.mxu1 %v1666_v1  ;;  %1138 = vmatprep.mubr.f32.mxu1 %v1609_v3 }
 0xafb   :  { %1092 = vmatprep.subr.mxu1 %v1677_v4 }
 0xafc   :  { %1093 = vmatpush1.msra.mxu1 %v1685_v6 }
 0xafd   :  { %1094 = vmatprep.subr.mxu1 %v1694_v8 }
 0xafe   :  { %1095 = vmatpush1.msra.mxu1 %v1703_v10 }
 0xaff   :  { %1096 = vmatprep.subr.mxu1 %v1712_v12 }
 0xb00   :  { %1097 = vmatpush1.msra.mxu1 %v1724_v15 }
 0xb01   :  { %1098 = vmatprep.subr.mxu1 %v1733_v17 }
 0xb02   :  { %1099 = vmatpush1.msra.mxu1 %v1742_v19 }
 0xb03   :  { %1100 = vmatprep.subr.mxu1 %v1748_v20 }
 0xb04   :  { %1101 = vmatpush1.msra.mxu1 %v1755_v21 }
 0xb05   :  { %1102 = vmatprep.subr.mxu1 %v1766_v23 }
 0xb06   :  { %1103 = vmatpush1.msra.mxu1 %v1776_v25 }
 0xb07   :  { %1104 = vmatprep.subr.mxu1 %v1784_v26 }
 0xb08   :  { %1105 = vmatpush1.msra.mxu1 %v1792_v27 }
 0xbb9   :  { %v834_v43 = vpop.f32.mrf.mxu1 }
 0xbba   :  { %v839_v45 = vadd.f32 %v834_v43, %v1841_v40 }
 0xbbb   :  { %v836_v47 = vpop.f32.mrf.mxu1 }
 0xbbc   :  { %1545 = vtanh.f32 %v839_v45  ;;  %v841_v48 = vrot.slane %v836_v47, 2  ;;  %v1466_v44 = vmul.f32 -1.442695, %v839_v45 }
 0xbbe   :  { %v843_v49 = vadd.f32 %v841_v48, %v1839_v38 }
 0xbc0   :  { %1547 = vtanh.f32 %v843_v49  ;;  %v1467_v46 = vmul.f32 -1.442695, %v843_v49 }
 0xbc1   :  { %1549 = vpow2.f32 %v1466_v44 }
 0xbc2   :  { %1551 = vpow2.f32 %v1467_v46 }
 0xbc9   :  { %v1546_v50 = vpop.eup %1545 }
 0xbca   :  { %858 = vrot.lane.b32.xlu1 %v1546_v50, %s1611_s5 }
 0xbcd   :  { %v1548_v0 = vpop.eup %1547 }
 0xbce   :  { %882 = vrot.lane.b32.xlu0 %v1548_v0, %s1611_s5  ;;  %v1550_v55 = vpop.eup %1549 }
 0xbcf   :  { %v847_v56 = vadd.f32 1.0, %v1550_v55  ;;  %v1552_v57 = vpop.eup %1551 }
 0xbd0   :  { %v876_v58 = vadd.f32 1.0, %v1552_v57 }
 0xbd1   :  { %1553 = vrcp.f32 %v847_v56 }
 0xbd2   :  { %853 = vrot.lane.b32.xlu0 %v852_v54, %s1610_s2  ;;  %1555 = vrcp.f32 %v876_v58 }
 0xbde   :  { %v1554_v59 = vpop.eup %1553 }
 0xbdf   :  { %v1556_v62 = vpop.eup %1555 }
 0xbe0   :  { %v880_v13 = vmul.f32 %v1556_v62, %v763_v53 }
 0xc3c   :  { %v859_v60 = vpop.permute.xlu1 %858 }
 0xc3d   :  { %v861_v61 = vmul.f32 %v1554_v59, %v859_v60 }
 0xc3f   :  { %863 = vrot.lane.b32.xlu0 %v861_v61, %s1610_s2 }
 0xc40   :  { %v883_v63 = vpop.permute.xlu0 %882 }
 0xc41   :  { %v885_v2 = vmul.f32 %v1556_v62, %v883_v63 }
 0xc43   :  { %887 = vrot.lane.b32.xlu1 %v885_v2, %s1610_s2 }
 0xc44   :  { %v854_v5 = vpop.permute.xlu0 %853 }
 0xc45   :  { %v856_v7 = vmul.f32 %v1554_v59, %v854_v5 }
 0xcb1   :  { %v864_v9 = vpop.permute.xlu0 %863 }
 0xcb2   :  { %v866_v11 = vadd.f32 %v864_v9, %v856_v7 }
 0xcb4   :  { %1557 = vtanh.f32 %v866_v11 }
 0xcb5   :  { %v888_v14 = vpop.permute.xlu1 %887 }
 0xcb6   :  { %v890_v16 = vadd.f32 %v888_v14, %v880_v13 }
 0xcb8   :  { %1559 = vtanh.f32 %v890_v16 }
 0xcc1   :  { %v1558_v18 = vpop.eup %1557 }
 0xcc2   :  { %869 = vrot.lane.b32.xlu0 %v1558_v18, %s1611_s5 }
 0xcc5   :  { %v1560_v24 = vpop.eup %1559 }
 0xcc6   :  { %893 = vrot.lane.b32.xlu1 %v1560_v24, %s1611_s5 }
 0xd34   :  { %v870_v22 = vpop.permute.xlu0 %869 }
 0xd35   :  { %v872_v30 = vmul.f32 %v1554_v59, %v870_v22 }
 0xd37   :  { %898 = vrot.lane.b32.xlu1 %v872_v30, %s1610_s2 }
 0xd38   :  { %v894_v36 = vpop.permute.xlu1 %893 }
 0xd39   :  { %v2008_v39 = vmul.f32 %v1556_v62, %v894_v36 }
 0xd3b   :  { %v902_v41 = vrot.slane %v2008_v39, 6  ;;  %908 = vrot.lane.b32.xlu1 %v866_v11, %s1612_s15 }
 0xd3d   :  { %903 = vrot.lane.b32.xlu0 %v902_v41, %s1611_s5 }
 0xda9   :  { %v2013_v42 = vpop.permute.xlu1 %898 }
 0xdaf   :  { %v904_v43 = vpop.permute.xlu0 %903 }
 0xdb0   :  { %v906_v45 = vsel %vm48_vm0, %v2013_v42, %v904_v43 }
 0xdb1   :  { %1468 = vmatmul.mubr.msk.f32.vlgmr.msra.gmra.mxu0 %vm150_vm1, %v906_v45 }
 0xdb2   :  { %1245 = vmatpush1.msra.mxu0 %v1666_v1  ;;  %1292 = vmatprep.mubr.f32.mxu0 %v1609_v3 }
 0xdb3   :  { %1246 = vmatprep.subr.mxu0 %v1677_v4 }
 0xdb4   :  { %1247 = vmatpush1.msra.mxu0 %v1685_v6 }
 0xdb5   :  { %1248 = vmatprep.subr.mxu0 %v1694_v8 }
 0xdb6   :  { %1249 = vmatpush1.msra.mxu0 %v1703_v10 }
 0xdb7   :  { %1250 = vmatprep.subr.mxu0 %v1712_v12 }
 0xdb8   :  { %1251 = vmatpush1.msra.mxu0 %v1724_v15  ;;  %v909_v15 = vpop.permute.xlu1 %908 }
 0xdb9   :  { %1252 = vmatprep.subr.mxu0 %v1733_v17  ;;  %v912_v17 = vrot.slane %v890_v16, 6 }
 0xdba   :  { %1253 = vmatpush1.msra.mxu0 %v1742_v19 }
 0xdbb   :  { %1254 = vmatprep.subr.mxu0 %v1748_v20  ;;  %v914_v20 = vsel %vm48_vm0, %v909_v15, %v912_v17 }
 0xdbc   :  { %1255 = vmatpush1.msra.mxu0 %v1755_v21  ;;  %v1005_v21 = vrot.slane %v914_v20, 6  ;;  %v1033_v46 = vrot.slane %v914_v20, 4 }
 0xdbd   :  { %1256 = vmatprep.subr.mxu0 %v1766_v23 }
 0xdbe   :  { %1257 = vmatpush1.msra.mxu0 %v1776_v25 }
 0xdbf   :  { %1258 = vmatprep.subr.mxu0 %v1784_v26 }
 0xdc0   :  { %1259 = vmatpush1.msra.mxu0 %v1792_v27 }
 0xe71   :  { %v984_v1 = vpop.f32.mrf.mxu0 }
 0xe72   :  { %v990_v3 = vrot.slane %v984_v1, 6 }
 0xe73   :  { %v986_v4 = vpop.f32.mrf.mxu0 }
 0xe74   :  { %v992_v6 = vadd.f32 %v990_v3, %v1841_v40  ;;  %v994_v8 = vrot.slane %v986_v4, 4 }
 0xe76   :  { %1561 = vtanh.f32 %v992_v6  ;;  %v996_v10 = vadd.f32 %v994_v8, %v1839_v38  ;;  %v1469_v23 = vmul.f32 -1.442695, %v992_v6 }
 0xe78   :  { %1563 = vtanh.f32 %v996_v10  ;;  %v1470_v25 = vmul.f32 -1.442695, %v996_v10 }
 0xe79   :  { %1565 = vpow2.f32 %v1469_v23 }
 0xe7a   :  { %1567 = vpow2.f32 %v1470_v25 }
 0xe83   :  { %v1562_v12 = vpop.eup %1561 }
 0xe84   :  { %1011 = vrot.lane.b32.xlu1 %v1562_v12, %s1611_s5 }
 0xe85   :  { %v1564_v19 = vpop.eup %1563 }
 0xe86   :  { %1037 = vrot.lane.b32.xlu0 %v1564_v19, %s1611_s5  ;;  %v1566_v26 = vpop.eup %1565 }
 0xe87   :  { %v1568_v27 = vpop.eup %1567  ;;  %v1000_v47 = vadd.f32 1.0, %v1566_v26 }
 0xe88   :  { %v1029_v48 = vadd.f32 1.0, %v1568_v27 }
 0xe89   :  { %1569 = vrcp.f32 %v1000_v47 }
 0xe8a   :  { %1006 = vrot.lane.b32.xlu0 %v1005_v21, %s1610_s2  ;;  %1571 = vrcp.f32 %v1029_v48 }
 0xe96   :  { %v1570_v49 = vpop.eup %1569 }
 0xe97   :  { %v1572_v52 = vpop.eup %1571 }
 0xe98   :  { %v1035_v57 = vmul.f32 %v1572_v52, %v1033_v46 }
 0xef6   :  { %v1012_v50 = vpop.permute.xlu1 %1011 }
 0xef7   :  { %v1014_v51 = vmul.f32 %v1570_v49, %v1012_v50 }
 0xef8   :  { %v1038_v0 = vpop.permute.xlu0 %1037 }
 0xef9   :  { %1016 = vrot.lane.b32.xlu0 %v1014_v51, %s1610_s2  ;;  %v1040_v53 = vmul.f32 %v1572_v52, %v1038_v0 }
 0xefb   :  { %1042 = vrot.lane.b32.xlu1 %v1040_v53, %s1610_s2 }
 0xefc   :  { %v1007_v54 = vpop.permute.xlu0 %1006 }
 0xefd   :  { %v1009_v44 = vmul.f32 %v1570_v49, %v1007_v54 }
 0xf6b   :  { %v1017_v55 = vpop.permute.xlu0 %1016 }
 0xf6c   :  { %v1019_v56 = vadd.f32 %v1017_v55, %v1009_v44 }
 0xf6d   :  { %v1043_v58 = vpop.permute.xlu1 %1042 }
 0xf6e   :  { %1573 = vtanh.f32 %v1019_v56  ;;  %v1045_v59 = vadd.f32 %v1043_v58, %v1035_v57 }
 0xf70   :  { %1575 = vtanh.f32 %v1045_v59  ;;  %v1067_v45 = vrot.slane %v1045_v59, 2 }
 0xf7b   :  { %v1574_v60 = vpop.eup %1573 }
 0xf7c   :  { %1022 = vrot.lane.b32.xlu0 %v1574_v60, %s1611_s5 }
 0xf7d   :  { %v1576_v61 = vpop.eup %1575 }
 0xf7e   :  { %1048 = vrot.lane.b32.xlu1 %v1576_v61, %s1611_s5 }
 0xfee   :  { %v1023_v62 = vpop.permute.xlu0 %1022 }
 0xfef   :  { %v1025_v63 = vmul.f32 %v1570_v49, %v1023_v62 }
 0xff0   :  { %v1049_v2 = vpop.permute.xlu1 %1048 }
 0xff1   :  { %1053 = vrot.lane.b32.xlu1 %v1025_v63, %s1610_s2  ;;  %v2045_v5 = vmul.f32 %v1572_v52, %v1049_v2 }
 0xff3   :  { %v1057_v7 = vrot.slane %v2045_v5, 2 }
 0xff5   :  { %1063 = vrot.lane.b32.xlu1 %v1019_v56, %s1612_s15  ;;  %1058 = vrot.lane.b32.xlu0 %v1057_v7, %s1611_s5 }
0x1063   :  { %v2050_v9 = vpop.permute.xlu1 %1053 }
0x1067   :  { %v1059_v11 = vpop.permute.xlu0 %1058  ;;  %v1064_v43 = vpop.permute.xlu1 %1063 }
0x1068   :  { %v1061_v13 = vsel %vm48_vm0, %v2050_v9, %v1059_v11  ;;  %v1069_v3 = vsel %vm48_vm0, %v1064_v43, %v1067_v45 }
0x1069   :  { %v1071_v14 = vrot.slane %v1061_v13, 2  ;;  %v1161_v4 = vrot.slane %v1069_v3, 6 }
0x106b   :  { %1471 = vmatmul.mubr.msk.f32.vlgmr.msra.gmra.mxu1 %vm150_vm1, %v1071_v14 }
0x112b   :  { %v1140_v16 = vpop.f32.mrf.mxu1 }
0x112c   :  { %v1146_v18 = vrot.slane %v1140_v16, 4 }
0x112d   :  { %v1142_v24 = vpop.f32.mrf.mxu1 }
0x112e   :  { %v1148_v22 = vadd.f32 %v1146_v18, %v1841_v40  ;;  %v1150_v30 = vrot.slane %v1142_v24, 6 }
0x1130   :  { %1577 = vtanh.f32 %v1148_v22  ;;  %v1152_v36 = vadd.f32 %v1150_v30, %v1839_v38  ;;  %v1472_v6 = vmul.f32 -1.442695, %v1148_v22 }
0x1132   :  { %1579 = vtanh.f32 %v1152_v36  ;;  %v1473_v8 = vmul.f32 -1.442695, %v1152_v36 }
0x1133   :  { %1581 = vpow2.f32 %v1472_v6 }
0x1134   :  { %1583 = vpow2.f32 %v1473_v8 }
0x113d   :  { %v1578_v41 = vpop.eup %1577 }
0x113e   :  { %1167 = vrot.lane.b32.xlu1 %v1578_v41, %s1611_s5 }
0x113f   :  { %v1580_v1 = vpop.eup %1579 }
0x1140   :  { %1191 = vrot.lane.b32.xlu0 %v1580_v1, %s1611_s5  ;;  %v1582_v10 = vpop.eup %1581 }
0x1141   :  { %v1584_v12 = vpop.eup %1583  ;;  %v1156_v15 = vadd.f32 1.0, %v1582_v10 }
0x1142   :  { %v1185_v17 = vadd.f32 1.0, %v1584_v12 }
0x1143   :  { %1585 = vrcp.f32 %v1156_v15 }
0x1144   :  { %1162 = vrot.lane.b32.xlu0 %v1161_v4, %s1610_s2  ;;  %1587 = vrcp.f32 %v1185_v17 }
0x1150   :  { %v1586_v19 = vpop.eup %1585 }
0x1151   :  { %v1588_v23 = vpop.eup %1587 }
0x1152   :  { %v1189_v50 = vmul.f32 %v1588_v23, %v1069_v3 }
0x11b0   :  { %v1168_v20 = vpop.permute.xlu1 %1167 }
0x11b1   :  { %v1170_v21 = vmul.f32 %v1586_v19, %v1168_v20 }
0x11b2   :  { %v1192_v25 = vpop.permute.xlu0 %1191 }
0x11b3   :  { %1172 = vrot.lane.b32.xlu0 %v1170_v21, %s1610_s2  ;;  %v1194_v26 = vmul.f32 %v1588_v23, %v1192_v25 }
0x11b5   :  { %1196 = vrot.lane.b32.xlu1 %v1194_v26, %s1610_s2 }
0x11b6   :  { %v1163_v27 = vpop.permute.xlu0 %1162 }
0x11b7   :  { %v1165_v47 = vmul.f32 %v1586_v19, %v1163_v27 }
0x1225   :  { %v1173_v48 = vpop.permute.xlu0 %1172 }
0x1226   :  { %v1175_v49 = vadd.f32 %v1173_v48, %v1165_v47 }
0x1227   :  { %v1197_v51 = vpop.permute.xlu1 %1196 }
0x1228   :  { %1589 = vtanh.f32 %v1175_v49  ;;  %v1199_v52 = vadd.f32 %v1197_v51, %v1189_v50 }
0x122a   :  { %1591 = vtanh.f32 %v1199_v52  ;;  %v1221_v13 = vrot.slane %v1199_v52, 6 }
0x1235   :  { %v1590_v0 = vpop.eup %1589 }
0x1236   :  { %1178 = vrot.lane.b32.xlu0 %v1590_v0, %s1611_s5 }
0x1237   :  { %v1592_v53 = vpop.eup %1591 }
0x1238   :  { %1202 = vrot.lane.b32.xlu1 %v1592_v53, %s1611_s5 }
0x12a8   :  { %v1179_v54 = vpop.permute.xlu0 %1178 }
0x12a9   :  { %v1181_v44 = vmul.f32 %v1586_v19, %v1179_v54 }
0x12aa   :  { %v1203_v46 = vpop.permute.xlu1 %1202 }
0x12ab   :  { %1207 = vrot.lane.b32.xlu1 %v1181_v44, %s1610_s2  ;;  %v1205_v55 = vmul.f32 %v1588_v23, %v1203_v46 }
0x12ad   :  { %v1211_v56 = vrot.slane %v1205_v55, 6 }
0x12af   :  { %1217 = vrot.lane.b32.xlu1 %v1175_v49, %s1612_s15  ;;  %1212 = vrot.lane.b32.xlu0 %v1211_v56, %s1611_s5 }
0x131d   :  { %v2068_v57 = vpop.permute.xlu1 %1207 }
0x1321   :  { %v1213_v58 = vpop.permute.xlu0 %1212  ;;  %v1218_v11 = vpop.permute.xlu1 %1217 }
0x1322   :  { %v1215_v59 = vsel %vm48_vm0, %v2068_v57, %v1213_v58  ;;  %v1223_v16 = vsel %vm48_vm0, %v1218_v11, %v1221_v13 }
0x1323   :  { %v1225_v60 = vrot.slane %v1215_v59, 4  ;;  %v1312_v24 = vrot.slane %v1223_v16, 6  ;;  %v1340_v10 = vrot.slane %v1223_v16, 4 }
0x1325   :  { %1474 = vmatmul.mubr.msk.f32.vlgmr.msra.gmra.mxu0 %vm150_vm1, %v1225_v60 }
0x13e5   :  { %v1294_v61 = vpop.f32.mrf.mxu0 }
0x13e6   :  { %v1300_v62 = vrot.slane %v1294_v61, 2 }
0x13e7   :  { %v1296_v63 = vpop.f32.mrf.mxu0 }
0x13e8   :  { %v1302_v2 = vadd.f32 %v1300_v62, %v1841_v40  ;;  %v1303_v7 = vadd.f32 %v1296_v63, %v1839_v38 }
0x13ea   :  { %1593 = vtanh.f32 %v1302_v2  ;;  %v1475_v22 = vmul.f32 -1.442695, %v1302_v2  ;;  %v1476_v30 = vmul.f32 -1.442695, %v1303_v7 }
0x13eb   :  { %1595 = vtanh.f32 %v1303_v7 }
0x13ec   :  { %1597 = vpow2.f32 %v1475_v22 }
0x13ed   :  { %1599 = vpow2.f32 %v1476_v30 }
0x13f7   :  { %v1594_v14 = vpop.eup %1593 }
0x13f8   :  { %v1596_v18 = vpop.eup %1595  ;;  %1318 = vrot.lane.b32.xlu0 %v1594_v14, %s1611_s5 }
0x13f9   :  { %1344 = vrot.lane.b32.xlu1 %v1596_v18, %s1611_s5  ;;  %v1598_v38 = vpop.eup %1597 }
0x13fa   :  { %v1600_v40 = vpop.eup %1599  ;;  %v1307_v36 = vadd.f32 1.0, %v1598_v38 }
0x13fb   :  { %v1336_v41 = vadd.f32 1.0, %v1600_v40 }
0x13fc   :  { %1313 = vrot.lane.b32.xlu0 %v1312_v24, %s1610_s2  ;;  %1601 = vrcp.f32 %v1307_v36 }
0x13fd   :  { %1603 = vrcp.f32 %v1336_v41 }
0x1409   :  { %v1602_v43 = vpop.eup %1601 }
0x140a   :  { %v1604_v1 = vpop.eup %1603 }
0x140b   :  { %v1342_v15 = vmul.f32 %v1604_v1, %v1340_v10 }
0x146a   :  { %v1319_v45 = vpop.permute.xlu0 %1318 }
0x146b   :  { %v1321_v3 = vmul.f32 %v1602_v43, %v1319_v45  ;;  %v1345_v4 = vpop.permute.xlu1 %1344 }
0x146c   :  { %v1347_v6 = vmul.f32 %v1604_v1, %v1345_v4 }
0x146d   :  { %1323 = vrot.lane.b32.xlu1 %v1321_v3, %s1610_s2 }
0x146e   :  { %1349 = vrot.lane.b32.xlu0 %v1347_v6, %s1610_s2  ;;  %v1314_v8 = vpop.permute.xlu0 %1313 }
0x146f   :  { %v1316_v12 = vmul.f32 %v1602_v43, %v1314_v8 }
0x14df   :  { %v1324_v17 = vpop.permute.xlu1 %1323 }
0x14e0   :  { %v1350_v19 = vpop.permute.xlu0 %1349  ;;  %v1326_v20 = vadd.f32 %v1324_v17, %v1316_v12 }
0x14e1   :  { %v1352_v21 = vadd.f32 %v1350_v19, %v1342_v15 }
0x14e2   :  { %1605 = vtanh.f32 %v1326_v20 }
0x14e3   :  { %1607 = vtanh.f32 %v1352_v21 }
0x14ef   :  { %v1606_v23 = vpop.eup %1605 }
0x14f0   :  { %v1608_v25 = vpop.eup %1607  ;;  %1329 = vrot.lane.b32.xlu1 %v1606_v23, %s1611_s5 }
0x14f1   :  { %1355 = vrot.lane.b32.xlu0 %v1608_v25, %s1611_s5 }
0x14f4   :  { %1385 = vrot.lane.b32.xlu1 %v2045_v5, %s1611_s5 }
0x14f5   :  { %1381 = vrot.lane.b32.xlu0 %v1205_v55, %s1611_s5 }
0x14f8   :  { %1397 = vrot.lane.b32.xlu1 %v1933_v33, %s1611_s5 }
0x14f9   :  { %1389 = vrot.lane.b32.xlu0 %v2008_v39, %s1611_s5 }
0x14fc   :  { %1405 = vrot.lane.b32.xlu1 %v1856_v28, %s1611_s5 }
0x14fd   :  { %1401 = vrot.lane.b32.xlu0 %v1895_v29, %s1611_s5 }
0x1500   :  { %1370 = vrot.lane.b32.xlu1 %v1326_v20, %s1612_s15 }
0x1562   :  { %v1330_v26 = vpop.permute.xlu1 %1329 }
0x1563   :  { %v1356_v27 = vpop.permute.xlu0 %1355  ;;  %v1332_v47 = vmul.f32 %v1602_v43, %v1330_v26 }
0x1564   :  { %v1358_v5 = vmul.f32 %v1604_v1, %v1356_v27 }
0x1565   :  { %1360 = vrot.lane.b32.xlu1 %v1332_v47, %s1610_s2 }
0x1566   :  { %v1364_v48 = vrot.slane %v1358_v5, 2  ;;  %v1386_v49 = vpop.permute.xlu1 %1385 }
0x1567   :  { %v1382_v33 = vpop.permute.xlu0 %1381  ;;  %v1388_v39 = vsel %vm48_vm0, %v1938_v35, %v1386_v49 }
0x1568   :  { %v1384_v28 = vsel %vm48_vm0, %v1900_v31, %v1382_v33  ;;  %v1413_v50 = vrot.slane %v1388_v39, 4  ;;  %1365 = vrot.lane.b32.xlu0 %v1364_v48, %s1611_s5 }
0x1569   :  { %v1410_v29 = vrot.slane %v1384_v28, 2  ;;  %1393 = vrot.lane.b32.xlu1 %v1970_v34, %s1611_s5 }
0x156a   :  { %1430 = vst.msk [vmem:[%s2161_s6 + $0x4] sm:$0x3] %vm1427_vm2, %v1413_v50  ;;  %v1398_v51 = vpop.permute.xlu1 %1397 }
0x156b   :  { %1429 = vst.msk [vmem:[%s2161_s6 + $0x2] sm:$0x3] %vm1427_vm2, %v1410_v29  ;;  %v1390_v35 = vpop.permute.xlu0 %1389  ;;  %v1400_v31 = vsel %vm48_vm0, %v2050_v9, %v1398_v51 }
0x156c   :  { %v1392_v52 = vsel %vm48_vm0, %v1976_v37, %v1390_v35  ;;  %v1419_v0 = vrot.slane %v1400_v31, 2  ;;  %1377 = vrot.lane.b32.xlu0 %v1358_v5, %s1611_s5  ;;  %v1374_v37 = vrot.slane %v1352_v21, 2 }
0x156d   :  { %v1416_v34 = vrot.slane %v1392_v52, 6 }
0x156e   :  { %1433 = vst.msk [vmem:[%s2161_s6 + $0xa] sm:$0x3] %vm1427_vm2, %v1419_v0  ;;  %v1406_v53 = vpop.permute.xlu1 %1405 }
0x156f   :  { %1431 = vst.msk [vmem:[%s2161_s6 + $0x6] sm:$0x3] %vm1427_vm2, %v1416_v34  ;;  %v1402_v54 = vpop.permute.xlu0 %1401 }
0x1570   :  { %v1404_v9 = vsel %vm48_vm0, %v2068_v57, %v1402_v54 }
0x1571   :  { %v1422_v44 = vrot.slane %v1404_v9, 4 }
0x1572   :  { %v1371_v46 = vpop.permute.xlu1 %1370 }
0x1573   :  { %1434 = vst.msk [vmem:[%s2161_s6 + $0xc] sm:$0x3] %vm1427_vm2, %v1422_v44  ;;  %v1376_v55 = vsel %vm48_vm0, %v1371_v46, %v1374_v37 }
0x1574   :  { %1438 = vst.msk [vmem:[%s2162_s8 - $0x6] sm:$0xc0] %vm1436_vm3, %v1376_v55 }
0x15d7   :  { %v1361_v56 = vpop.permute.xlu1 %1360 }
0x15d8   :  { %v1408_v58 = vsel %vm48_vm0, %v1361_v56, %v1406_v53 }
0x15d9   :  { %v1425_v59 = vrot.slane %v1408_v58, 6 }
0x15da   :  { %v1366_v57 = vpop.permute.xlu0 %1365 }
0x15db   :  { %1435 = vst.msk [vmem:[%s2161_s6 + $0xe] sm:$0x3] %vm1427_vm2, %v1425_v59  ;;  %v1368_v60 = vsel %vm48_vm0, %v1361_v56, %v1366_v57  ;;  %v1394_v61 = vpop.permute.xlu1 %1393 }
0x15dc   :  { %1437 = vst.msk [vmem:[%s2163_s7 - $0x6] sm:$0xc0] %vm1436_vm3, %v1368_v60  ;;  %v1396_v62 = vsel %vm48_vm0, %v2013_v42, %v1394_v61 }
0x15dd   :  { %1432 = vst.msk [vmem:[%s2161_s6 + $0x8] sm:$0x3] %vm1427_vm2, %v1396_v62 }
0x15de   :  { %v1378_v63 = vpop.permute.xlu0 %1377 }
0x15df   :  { %v1380_v2 = vsel %vm48_vm0, %v1862_v32, %v1378_v63 }
0x15e0   :  { %1428 = vst.msk [vmem:[%s2161_s6] sm:$0x3] %vm1427_vm2, %v1380_v2 }

// kernel: model_forward.8
= control target key start
LH: loop header
LB: loop body
LE: loop exit
PB: predicated region body
PF: predicated region fallthrough
CT: control target
= control target key end

     0   :  { %14 = vsyncpa [#allocation3], 0  ;;  %v1688_v6 = vmov 0.0   ;;  %s2244_s0 = inlined_call_operand.vmem [shape: f32[16,64], index: 0, kind: input, shape index: {}]   ;;  %s2245_s1 = inlined_call_operand.vmem [shape: f32[2,64], index: 1, kind: input, shape index: {}]   ;;  %s2246_s2 = inlined_call_operand.vmem [shape: f32[2,64], index: 2, kind: input, shape index: {}]   ;;  %s2247_s3 = inlined_call_operand.vmem [shape: f32[64,256], index: 3, kind: input, shape index: {}]   ;;  %s2248_s4 = inlined_call_operand.vmem [shape: f32[64,256], index: 4, kind: input, shape index: {}]   ;;  %s2249_s5 = inlined_call_operand.vmem [shape: f32[1,256], index: 5, kind: input, shape index: {}]   ;;  %s2250_s6 = inlined_call_operand.hbm [shape: f32[8,2,64], index: 6, kind: output, shape index: {0}]   ;;  %s2251_s7 = inlined_call_operand.vmem [shape: f32[2,64], index: 7, kind: output, shape index: {1}]   ;;  %s2252_s8 = inlined_call_operand.hbm [shape: f32[2,64], index: 8, kind: output, shape index: {2}]  }
   0x1   :  { %v45_v0 = vld [vmem:[%s2247_s3 + $0x78] sm:$0xff]  ;;  %v44_v1 = vld [vmem:[%s2247_s3 + $0x70] sm:$0xff]  ;;  %v43_v2 = vld [vmem:[%s2247_s3 + $0x68] sm:$0xff]  ;;  %129 = vmatprep.mubr.f32.mxu0 %v1688_v6 }
   0x2   :  { %81 = vmatprep.subr.mxu0 %v45_v0  ;;  %v1752_v3 = vld [vmem:[%s2248_s4 + $0x78] sm:$0xff]  ;;  %v42_v4 = vld [vmem:[%s2247_s3 + $0x60] sm:$0xff]  ;;  %v1760_v5 = vld [vmem:[%s2248_s4 + $0x70] sm:$0xff] }
   0x3   :  { %82 = vmatpush1.msra.mxu0 %v44_v1  ;;  %179 = vmatprep.subr.mxu1 %v1752_v3  ;;  %v41_v7 = vld [vmem:[%s2247_s3 + $0x58] sm:$0xff]  ;;  %v1770_v8 = vld [vmem:[%s2248_s4 + $0x68] sm:$0xff]  ;;  %v40_v9 = vld [vmem:[%s2247_s3 + $0x50] sm:$0xff] }
   0x4   :  { %83 = vmatprep.subr.mxu0 %v43_v2  ;;  %180 = vmatpush1.msra.mxu1 %v1760_v5  ;;  %v1779_v10 = vld [vmem:[%s2248_s4 + $0x60] sm:$0xff]  ;;  %v1784_v11 = vld [vmem:[%s2248_s4 + $0x58] sm:$0xff]  ;;  %v39_v12 = vld [vmem:[%s2247_s3 + $0x48] sm:$0xff] }
   0x5   :  { %84 = vmatpush1.msra.mxu0 %v42_v4  ;;  %181 = vmatprep.subr.mxu1 %v1770_v8  ;;  %v1793_v13 = vld [vmem:[%s2248_s4 + $0x50] sm:$0xff]  ;;  %v38_v14 = vld [vmem:[%s2247_s3 + $0x40] sm:$0xff]  ;;  %v1802_v15 = vld [vmem:[%s2248_s4 + $0x48] sm:$0xff] }
   0x6   :  { %85 = vmatprep.subr.mxu0 %v41_v7  ;;  %182 = vmatpush1.msra.mxu1 %v1779_v10  ;;  %v37_v16 = vld [vmem:[%s2247_s3 + $0x38] sm:$0xff]  ;;  %v1811_v17 = vld [vmem:[%s2248_s4 + $0x40] sm:$0xff]  ;;  %v36_v18 = vld [vmem:[%s2247_s3 + $0x30] sm:$0xff] }
   0x7   :  { %86 = vmatpush1.msra.mxu0 %v40_v9  ;;  %183 = vmatprep.subr.mxu1 %v1784_v11  ;;  %v1820_v19 = vld [vmem:[%s2248_s4 + $0x38] sm:$0xff]  ;;  %v35_v20 = vld [vmem:[%s2247_s3 + $0x28] sm:$0xff]  ;;  %v1829_v21 = vld [vmem:[%s2248_s4 + $0x30] sm:$0xff] }
   0x8   :  { %87 = vmatprep.subr.mxu0 %v39_v12  ;;  %184 = vmatpush1.msra.mxu1 %v1793_v13  ;;  %v34_v22 = vld [vmem:[%s2247_s3 + $0x20] sm:$0xff]  ;;  %v1838_v23 = vld [vmem:[%s2248_s4 + $0x28] sm:$0xff]  ;;  %v33_v24 = vld [vmem:[%s2247_s3 + $0x18] sm:$0xff] }
   0x9   :  { %88 = vmatpush1.msra.mxu0 %v38_v14  ;;  %185 = vmatprep.subr.mxu1 %v1802_v15  ;;  %v1847_v25 = vld [vmem:[%s2248_s4 + $0x20] sm:$0xff]  ;;  %v32_v26 = vld [vmem:[%s2247_s3 + $0x10] sm:$0xff]  ;;  %v1856_v27 = vld [vmem:[%s2248_s4 + $0x18] sm:$0xff] }
   0xa   :  { %89 = vmatprep.subr.mxu0 %v37_v16  ;;  %186 = vmatpush1.msra.mxu1 %v1811_v17  ;;  %v31_v28 = vld [vmem:[%s2247_s3 + $0x8] sm:$0xff]  ;;  %v1865_v29 = vld [vmem:[%s2248_s4 + $0x10] sm:$0xff] }
   0xb   :  { %90 = vmatpush1.msra.mxu0 %v36_v18  ;;  %187 = vmatprep.subr.mxu1 %v1820_v19 }
   0xc   :  { %91 = vmatprep.subr.mxu0 %v35_v20  ;;  %188 = vmatpush1.msra.mxu1 %v1829_v21 }
   0xd   :  { %92 = vmatpush1.msra.mxu0 %v34_v22  ;;  %189 = vmatprep.subr.mxu1 %v1838_v23 }
   0xe   :  { %15 = vsyncpa [#allocation5], 0  ;;  %93 = vmatprep.subr.mxu0 %v33_v24  ;;  %190 = vmatpush1.msra.mxu1 %v1847_v25  ;;  %v30_v30 = vld [vmem:[%s2247_s3] sm:$0xff]  ;;  %v1874_v31 = vld [vmem:[%s2248_s4 + $0x8] sm:$0xff]  ;;  %vm58_vm0 = vcmask 523264   ;;  %v48_v37 = vlaneseq  ;;  %s1691_s9 = smov 96  }
   0xf   :  { %94 = vmatpush1.msra.mxu0 %v32_v26  ;;  %191 = vmatprep.subr.mxu1 %v1856_v27  ;;  %v28_v32 = vld [vmem:[%s2244_s0] sm:$0xff]  ;;  %v29_v36 = vld [vmem:[%s2244_s0 + $0x8] sm:$0xff]  ;;  %vm302_vm1 = vcmask 261120   ;;  %vm1437_vm2 = vcmask 517120   ;;  %s1692_s10 = smov [#allocation4]   ;;  %vm1446_vm3 = vcmask 523270  }
  0x10   :  { %v1883_v33 = vld [vmem:[%s2248_s4] sm:$0xff]  ;;  %95 = vmatprep.subr.mxu0 %v31_v28  ;;  %192 = vmatpush1.msra.mxu1 %v1865_v29  ;;  %v49_v38 = vshrl.u32 %v48_v37, 7  ;;  %s1469_s11 = sshll.u32 %s1692_s10, 4  ;;  %s1470_s11 = int_to_ptr.vmem [resolvable:$true] %s1469_s11 }
  0x11   :  { %96 = vmatpush1.msra.mxu0 %v30_v30  ;;  %193 = vmatprep.subr.mxu1 %v1874_v31  ;;  %v142_v34 = vld [vmem:[%s2245_s1] sm:$0x3]  ;;  %s1689_s1 = smov 32   ;;  %s1644_s12 = scalar_lea.vmem %s1470_s11, 32 }
  0x12   :  { %v1893_v35 = vld [vmem:[%s2246_s2] sm:$0x3]  ;;  %1483 = vmatmul.mubr.msk.f32.vlgmr.msra.gmra.mxu0 %vm58_vm0, %v28_v32  ;;  %194 = vmatpush1.msra.mxu1 %v1883_v33  ;;  %v54_v39 = vsub.s32 1, %v49_v38  ;;  %v50_v41 = vsub.s32 0, %v49_v38  ;;  %p1645_p0 = scmp.ne.s32.totalorder %s1470_s11, %s1644_s12  ;;  %p1649_p1 = scmp.lt.s32.totalorder %s1470_s11, %s1470_s11 }
  0x13   :  { %227 = vmatprep.mubr.f32.mxu1 %v1688_v6  ;;  %135 = vmatprep.mubr.f32.mxu0 %v1688_v6  ;;  %v46_v40 = vld [vmem:[%s2249_s5] sm:$0x3]  ;;  %s1690_s5 = smov 64   ;;  %v274_v14 = vrot.slane %v1893_v35, 2  ;;  %p1650_p2 = scmp.lt.s32.totalorder %s1644_s12, %s1644_s12 }
  0x14   :  { %1485 = vmatmul.mubr.msk.f32.vlgmr.msra.gmra.mxu1 %vm58_vm0, %v142_v34  ;;  %247 = vrot.lane.b32.xlu1 %v1893_v35, %s1689_s1  ;;  %v55_v42 = vrot.slane %v46_v40, %v54_v39  ;;  %v51_v46 = vrot.slane %v46_v40, %v50_v41 }
  0x15   :  { %331 = vmatprep.subr.mxu0 %v1752_v3  ;;  %487 = vmatprep.subr.mxu1 %v1752_v3  ;;  %p1651_p3 = por %p1650_p2, %p1649_p1 }
  0x16   :  { %1484 = vmatmul.mubr.msk.f32.gmra.mxu0 %vm58_vm0, %v29_v36  ;;  %488 = vmatpush1.msra.mxu1 %v1760_v5 }
  0x17   :  { %332 = vmatpush1.msra.mxu0 %v1760_v5  ;;  %379 = vmatprep.mubr.f32.mxu0 %v1688_v6  ;;  %p1652_p4 = pnand %p1651_p3, %p1645_p0 }
  0x18   :  { %333 = vmatprep.subr.mxu0 %v1770_v8  ;;  %489 = vmatprep.subr.mxu1 %v1770_v8 }
  0x19   :  { %334 = vmatpush1.msra.mxu0 %v1779_v10  ;;  %490 = vmatpush1.msra.mxu1 %v1779_v10 }
  0x1a   :  { %335 = vmatprep.subr.mxu0 %v1784_v11  ;;  %491 = vmatprep.subr.mxu1 %v1784_v11 }
  0x1b   :  { %336 = vmatpush1.msra.mxu0 %v1793_v13  ;;  %492 = vmatpush1.msra.mxu1 %v1793_v13 }
  0x1c   :  { %337 = vmatprep.subr.mxu0 %v1802_v15  ;;  %493 = vmatprep.subr.mxu1 %v1802_v15 }
  0x1d   :  { %338 = vmatpush1.msra.mxu0 %v1811_v17  ;;  %494 = vmatpush1.msra.mxu1 %v1811_v17 }
  0x1e   :  { %339 = vmatprep.subr.mxu0 %v1820_v19  ;;  %495 = vmatprep.subr.mxu1 %v1820_v19 }
  0x1f   :  { %340 = vmatpush1.msra.mxu0 %v1829_v21  ;;  %496 = vmatpush1.msra.mxu1 %v1829_v21 }
  0x20   :  { %341 = vmatprep.subr.mxu0 %v1838_v23  ;;  %497 = vmatprep.subr.mxu1 %v1838_v23 }
  0x21   :  { %342 = vmatpush1.msra.mxu0 %v1847_v25  ;;  %498 = vmatpush1.msra.mxu1 %v1847_v25 }
  0x22   :  { %343 = vmatprep.subr.mxu0 %v1856_v27  ;;  %499 = vmatprep.subr.mxu1 %v1856_v27 }
  0x23   :  { %344 = vmatpush1.msra.mxu0 %v1865_v29  ;;  %500 = vmatpush1.msra.mxu1 %v1865_v29 }
  0x24   :  { %345 = vmatprep.subr.mxu0 %v1874_v31  ;;  %501 = vmatprep.subr.mxu1 %v1874_v31 }
  0x25   :  { %346 = vmatpush1.msra.mxu0 %v1883_v33  ;;  %502 = vmatpush1.msra.mxu1 %v1883_v33 }
  0x26   :  { %535 = vmatprep.mubr.f32.mxu1 %v1688_v6  ;;  %641 = vmatprep.subr.mxu0 %v1752_v3 }
  0x27   :  { %794 = vmatprep.subr.mxu1 %v1752_v3 }
  0x86   :  { %v248_v16 = vpop.permute.xlu1 %247 }
  0xd2   :  { %v131_v43 = vpop.f32.mrf.mxu0 }
  0xd3   :  { %v1949_v52 = vadd.f32 %v131_v43, %v51_v46 }
  0xd4   :  { %v133_v44 = vpop.f32.mrf.mxu0  ;;  %v229_v45 = vpop.f32.mrf.mxu1 }
  0xd5   :  { %v1945_v47 = vadd.f32 %v133_v44, %v55_v42  ;;  %v234_v56 = vadd.f32 %v229_v45, %v1949_v52 }
  0xd6   :  { %v137_v48 = vpop.f32.mrf.mxu0  ;;  %v231_v49 = vpop.f32.mrf.mxu1 }
  0xd7   :  { %v1947_v50 = vadd.f32 %v137_v48, %v51_v46  ;;  %v236_v53 = vrot.slane %v231_v49, 2  ;;  %v1486_v60 = vmul.f32 -1.442695, %v234_v56 }
  0xd8   :  { %v139_v51 = vpop.f32.mrf.mxu0 }
  0xd9   :  { %v1951_v54 = vadd.f32 %v139_v51, %v55_v42 }
  0xdb   :  { %v238_v55 = vadd.f32 %v236_v53, %v1951_v54 }
  0xdd   :  { %1516 = vtanh.f32 %v238_v55  ;;  %v1487_v59 = vmul.f32 -1.442695, %v238_v55 }
  0xde   :  { %1518 = vtanh.f32 %v234_v56 }
  0xdf   :  { %1520 = vpow2.f32 %v1487_v59 }
  0xe0   :  { %1522 = vpow2.f32 %v1486_v60 }
  0xea   :  { %v1517_v57 = vpop.eup %1516 }
  0xeb   :  { %278 = vrot.lane.b32.xlu0 %v1517_v57, %s1690_s5  ;;  %v1519_v58 = vpop.eup %1518 }
  0xec   :  { %v1521_v61 = vpop.eup %1520 }
  0xed   :  { %v270_v62 = vadd.f32 1.0, %v1521_v61  ;;  %v1523_v63 = vpop.eup %1522 }
  0xee   :  { %v242_v0 = vadd.f32 1.0, %v1523_v63 }
  0xef   :  { %252 = vrot.lane.b32.xlu0 %v1519_v58, %s1690_s5  ;;  %1524 = vrcp.f32 %v270_v62 }
  0xf0   :  { %1526 = vrcp.f32 %v242_v0 }
  0xfc   :  { %v1525_v1 = vpop.eup %1524 }
  0xfd   :  { %v1527_v7 = vpop.eup %1526  ;;  %v276_v18 = vmul.f32 %v1525_v1, %v274_v14 }
  0xfe   :  { %v250_v24 = vmul.f32 %v1527_v7, %v248_v16 }
 0x15d   :  { %v279_v2 = vpop.permute.xlu0 %278 }
 0x15e   :  { %v281_v4 = vmul.f32 %v1525_v1, %v279_v2 }
 0x160   :  { %283 = vrot.lane.b32.xlu1 %v281_v4, %s1689_s1 }
 0x161   :  { %v253_v9 = vpop.permute.xlu0 %252 }
 0x162   :  { %v255_v12 = vmul.f32 %v1527_v7, %v253_v9 }
 0x164   :  { %257 = vrot.lane.b32.xlu0 %v255_v12, %s1689_s1 }
 0x1d2   :  { %v284_v20 = vpop.permute.xlu1 %283 }
 0x1d3   :  { %v286_v22 = vadd.f32 %v284_v20, %v276_v18 }
 0x1d5   :  { %1528 = vtanh.f32 %v286_v22  ;;  %v309_v53 = vrot.slane %v286_v22, 6 }
 0x1d6   :  { %v258_v26 = vpop.permute.xlu0 %257 }
 0x1d7   :  { %v260_v28 = vadd.f32 %v258_v26, %v250_v24 }
 0x1d9   :  { %1530 = vtanh.f32 %v260_v28 }
 0x1e2   :  { %v1529_v30 = vpop.eup %1528 }
 0x1e3   :  { %289 = vrot.lane.b32.xlu1 %v1529_v30, %s1690_s5 }
 0x1e6   :  { %v1531_v32 = vpop.eup %1530 }
 0x1e7   :  { %263 = vrot.lane.b32.xlu0 %v1531_v32, %s1690_s5 }
 0x255   :  { %v290_v34 = vpop.permute.xlu1 %289 }
 0x256   :  { %v1962_v36 = vmul.f32 %v1525_v1, %v290_v34 }
 0x258   :  { %v298_v35 = vrot.slane %v1962_v36, 6 }
 0x259   :  { %v264_v37 = vpop.permute.xlu0 %263 }
 0x25a   :  { %v266_v38 = vmul.f32 %v1527_v7, %v264_v37  ;;  %299 = vrot.lane.b32.xlu0 %v298_v35, %s1690_s5 }
 0x25c   :  { %294 = vrot.lane.b32.xlu1 %v266_v38, %s1689_s1 }
 0x260   :  { %305 = vrot.lane.b32.xlu1 %v260_v28, %s1691_s9 }
 0x2cc   :  { %v300_v39 = vpop.permute.xlu0 %299 }
 0x2ce   :  { %v1968_v40 = vpop.permute.xlu1 %294 }
 0x2cf   :  { %v303_v41 = vsel %vm302_vm1, %v1968_v40, %v300_v39 }
 0x2d0   :  { %1488 = vmatmul.mubr.msk.f32.vlgmr.msra.gmra.mxu0 %vm58_vm0, %v303_v41 }
 0x2d1   :  { %642 = vmatpush1.msra.mxu0 %v1760_v5  ;;  %689 = vmatprep.mubr.f32.mxu0 %v1688_v6 }
 0x2d2   :  { %643 = vmatprep.subr.mxu0 %v1770_v8  ;;  %v306_v51 = vpop.permute.xlu1 %305 }
 0x2d3   :  { %644 = vmatpush1.msra.mxu0 %v1779_v10  ;;  %v311_v56 = vsel %vm302_vm1, %v306_v51, %v309_v53 }
 0x2d4   :  { %645 = vmatprep.subr.mxu0 %v1784_v11  ;;  %v402_v57 = vrot.slane %v311_v56, 6  ;;  %v430_v16 = vrot.slane %v311_v56, 4 }
 0x2d5   :  { %646 = vmatpush1.msra.mxu0 %v1793_v13 }
 0x2d6   :  { %647 = vmatprep.subr.mxu0 %v1802_v15 }
 0x2d7   :  { %648 = vmatpush1.msra.mxu0 %v1811_v17 }
 0x2d8   :  { %649 = vmatprep.subr.mxu0 %v1820_v19 }
 0x2d9   :  { %650 = vmatpush1.msra.mxu0 %v1829_v21 }
 0x2da   :  { %651 = vmatprep.subr.mxu0 %v1838_v23 }
 0x2db   :  { %652 = vmatpush1.msra.mxu0 %v1847_v25 }
 0x2dc   :  { %653 = vmatprep.subr.mxu0 %v1856_v27 }
 0x2dd   :  { %654 = vmatpush1.msra.mxu0 %v1865_v29 }
 0x2de   :  { %655 = vmatprep.subr.mxu0 %v1874_v31 }
 0x2df   :  { %656 = vmatpush1.msra.mxu0 %v1883_v33 }
 0x2e0   :  { %944 = vmatprep.subr.mxu0 %v1752_v3 }
 0x390   :  { %v381_v42 = vpop.f32.mrf.mxu0 }
 0x391   :  { %v387_v43 = vrot.slane %v381_v42, 6 }
 0x392   :  { %v383_v44 = vpop.f32.mrf.mxu0 }
 0x393   :  { %v389_v45 = vadd.f32 %v387_v43, %v1949_v52  ;;  %v391_v46 = vrot.slane %v383_v44, 4 }
 0x395   :  { %1532 = vtanh.f32 %v389_v45  ;;  %v393_v48 = vadd.f32 %v391_v46, %v1951_v54  ;;  %v1489_v58 = vmul.f32 -1.442695, %v389_v45 }
 0x397   :  { %1534 = vtanh.f32 %v393_v48  ;;  %v1490_v59 = vmul.f32 -1.442695, %v393_v48 }
 0x398   :  { %1536 = vpow2.f32 %v1489_v58 }
 0x399   :  { %1538 = vpow2.f32 %v1490_v59 }
 0x3a2   :  { %v1533_v49 = vpop.eup %1532 }
 0x3a3   :  { %408 = vrot.lane.b32.xlu1 %v1533_v49, %s1690_s5 }
 0x3a4   :  { %v1535_v55 = vpop.eup %1534 }
 0x3a5   :  { %434 = vrot.lane.b32.xlu0 %v1535_v55, %s1690_s5  ;;  %v1537_v60 = vpop.eup %1536 }
 0x3a6   :  { %v1539_v61 = vpop.eup %1538  ;;  %v397_v62 = vadd.f32 1.0, %v1537_v60 }
 0x3a7   :  { %v426_v63 = vadd.f32 1.0, %v1539_v61 }
 0x3a8   :  { %1540 = vrcp.f32 %v397_v62 }
 0x3a9   :  { %403 = vrot.lane.b32.xlu0 %v402_v57, %s1689_s1  ;;  %1542 = vrcp.f32 %v426_v63 }
 0x3b5   :  { %v1541_v0 = vpop.eup %1540 }
 0x3b6   :  { %v1543_v4 = vpop.eup %1542 }
 0x3b7   :  { %v432_v22 = vmul.f32 %v1543_v4, %v430_v16 }
 0x415   :  { %v409_v1 = vpop.permute.xlu1 %408 }
 0x416   :  { %v411_v2 = vmul.f32 %v1541_v0, %v409_v1 }
 0x417   :  { %v435_v7 = vpop.permute.xlu0 %434 }
 0x418   :  { %413 = vrot.lane.b32.xlu0 %v411_v2, %s1689_s1  ;;  %v437_v9 = vmul.f32 %v1543_v4, %v435_v7 }
 0x41a   :  { %439 = vrot.lane.b32.xlu1 %v437_v9, %s1689_s1 }
 0x41b   :  { %v404_v12 = vpop.permute.xlu0 %403 }
 0x41c   :  { %v406_v14 = vmul.f32 %v1541_v0, %v404_v12 }
 0x48a   :  { %v414_v18 = vpop.permute.xlu0 %413 }
 0x48b   :  { %v416_v20 = vadd.f32 %v414_v18, %v406_v14 }
 0x48c   :  { %v440_v24 = vpop.permute.xlu1 %439 }
 0x48d   :  { %1544 = vtanh.f32 %v416_v20  ;;  %v442_v26 = vadd.f32 %v440_v24, %v432_v22 }
 0x48f   :  { %1546 = vtanh.f32 %v442_v26  ;;  %v464_v56 = vrot.slane %v442_v26, 2 }
 0x49a   :  { %v1545_v28 = vpop.eup %1544 }
 0x49b   :  { %419 = vrot.lane.b32.xlu0 %v1545_v28, %s1690_s5 }
 0x49c   :  { %v1547_v30 = vpop.eup %1546 }
 0x49d   :  { %445 = vrot.lane.b32.xlu1 %v1547_v30, %s1690_s5 }
 0x50d   :  { %v420_v32 = vpop.permute.xlu0 %419 }
 0x50e   :  { %v422_v34 = vmul.f32 %v1541_v0, %v420_v32 }
 0x50f   :  { %v446_v35 = vpop.permute.xlu1 %445 }
 0x510   :  { %450 = vrot.lane.b32.xlu1 %v422_v34, %s1689_s1  ;;  %v2001_v37 = vmul.f32 %v1543_v4, %v446_v35 }
 0x512   :  { %v454_v38 = vrot.slane %v2001_v37, 2 }
 0x514   :  { %460 = vrot.lane.b32.xlu1 %v416_v20, %s1691_s9  ;;  %455 = vrot.lane.b32.xlu0 %v454_v38, %s1690_s5 }
 0x582   :  { %v2006_v39 = vpop.permute.xlu1 %450 }
 0x586   :  { %v456_v41 = vpop.permute.xlu0 %455  ;;  %v461_v55 = vpop.permute.xlu1 %460 }
 0x587   :  { %v458_v42 = vsel %vm302_vm1, %v2006_v39, %v456_v41  ;;  %v466_v58 = vsel %vm302_vm1, %v461_v55, %v464_v56 }
 0x588   :  { %v468_v43 = vrot.slane %v458_v42, 2  ;;  %v558_v59 = vrot.slane %v466_v58, 6 }
 0x58a   :  { %1491 = vmatmul.mubr.msk.f32.vlgmr.msra.gmra.mxu1 %vm58_vm0, %v468_v43 }
 0x58b   :  { %795 = vmatpush1.msra.mxu1 %v1760_v5  ;;  %842 = vmatprep.mubr.f32.mxu1 %v1688_v6 }
 0x58c   :  { %796 = vmatprep.subr.mxu1 %v1770_v8 }
 0x58d   :  { %797 = vmatpush1.msra.mxu1 %v1779_v10 }
 0x58e   :  { %798 = vmatprep.subr.mxu1 %v1784_v11 }
 0x58f   :  { %799 = vmatpush1.msra.mxu1 %v1793_v13 }
 0x590   :  { %800 = vmatprep.subr.mxu1 %v1802_v15 }
 0x591   :  { %801 = vmatpush1.msra.mxu1 %v1811_v17 }
 0x592   :  { %802 = vmatprep.subr.mxu1 %v1820_v19 }
 0x593   :  { %803 = vmatpush1.msra.mxu1 %v1829_v21 }
 0x594   :  { %804 = vmatprep.subr.mxu1 %v1838_v23 }
 0x595   :  { %805 = vmatpush1.msra.mxu1 %v1847_v25 }
 0x596   :  { %806 = vmatprep.subr.mxu1 %v1856_v27 }
 0x597   :  { %807 = vmatpush1.msra.mxu1 %v1865_v29 }
 0x598   :  { %808 = vmatprep.subr.mxu1 %v1874_v31 }
 0x599   :  { %809 = vmatpush1.msra.mxu1 %v1883_v33 }
 0x59a   :  { %1100 = vmatprep.subr.mxu1 %v1752_v3 }
 0x64a   :  { %v537_v44 = vpop.f32.mrf.mxu1 }
 0x64b   :  { %v543_v45 = vrot.slane %v537_v44, 4 }
 0x64c   :  { %v539_v46 = vpop.f32.mrf.mxu1 }
 0x64d   :  { %v545_v48 = vadd.f32 %v543_v45, %v1949_v52  ;;  %v547_v49 = vrot.slane %v539_v46, 6 }
 0x64f   :  { %1548 = vtanh.f32 %v545_v48  ;;  %v549_v51 = vadd.f32 %v547_v49, %v1951_v54  ;;  %v1492_v60 = vmul.f32 -1.442695, %v545_v48 }
 0x651   :  { %1550 = vtanh.f32 %v549_v51  ;;  %v1493_v61 = vmul.f32 -1.442695, %v549_v51 }
 0x652   :  { %1552 = vpow2.f32 %v1492_v60 }
 0x653   :  { %1554 = vpow2.f32 %v1493_v61 }
 0x65c   :  { %v1549_v53 = vpop.eup %1548 }
 0x65d   :  { %564 = vrot.lane.b32.xlu1 %v1549_v53, %s1690_s5 }
 0x65e   :  { %v1551_v57 = vpop.eup %1550 }
 0x65f   :  { %588 = vrot.lane.b32.xlu0 %v1551_v57, %s1690_s5  ;;  %v1553_v62 = vpop.eup %1552 }
 0x660   :  { %v1555_v63 = vpop.eup %1554  ;;  %v553_v0 = vadd.f32 1.0, %v1553_v62 }
 0x661   :  { %v582_v1 = vadd.f32 1.0, %v1555_v63 }
 0x662   :  { %1556 = vrcp.f32 %v553_v0 }
 0x663   :  { %559 = vrot.lane.b32.xlu0 %v558_v59, %s1689_s1  ;;  %1558 = vrcp.f32 %v582_v1 }
 0x66f   :  { %v1557_v2 = vpop.eup %1556 }
 0x670   :  { %v1559_v9 = vpop.eup %1558 }
 0x671   :  { %v586_v24 = vmul.f32 %v1559_v9, %v466_v58 }
 0x6cf   :  { %v565_v4 = vpop.permute.xlu1 %564 }
 0x6d0   :  { %v567_v7 = vmul.f32 %v1557_v2, %v565_v4 }
 0x6d1   :  { %v589_v12 = vpop.permute.xlu0 %588 }
 0x6d2   :  { %569 = vrot.lane.b32.xlu0 %v567_v7, %s1689_s1  ;;  %v591_v14 = vmul.f32 %v1559_v9, %v589_v12 }
 0x6d4   :  { %593 = vrot.lane.b32.xlu1 %v591_v14, %s1689_s1 }
 0x6d5   :  { %v560_v16 = vpop.permute.xlu0 %559 }
 0x6d6   :  { %v562_v18 = vmul.f32 %v1557_v2, %v560_v16 }
 0x744   :  { %v570_v20 = vpop.permute.xlu0 %569 }
 0x745   :  { %v572_v22 = vadd.f32 %v570_v20, %v562_v18 }
 0x746   :  { %v594_v26 = vpop.permute.xlu1 %593 }
 0x747   :  { %1560 = vtanh.f32 %v572_v22  ;;  %v596_v28 = vadd.f32 %v594_v26, %v586_v24 }
 0x749   :  { %1562 = vtanh.f32 %v596_v28  ;;  %v618_v57 = vrot.slane %v596_v28, 6 }
 0x754   :  { %v1561_v30 = vpop.eup %1560 }
 0x755   :  { %575 = vrot.lane.b32.xlu0 %v1561_v30, %s1690_s5 }
 0x756   :  { %v1563_v32 = vpop.eup %1562 }
 0x757   :  { %599 = vrot.lane.b32.xlu1 %v1563_v32, %s1690_s5 }
 0x7c7   :  { %v576_v34 = vpop.permute.xlu0 %575 }
 0x7c8   :  { %v578_v35 = vmul.f32 %v1557_v2, %v576_v34 }
 0x7c9   :  { %v600_v38 = vpop.permute.xlu1 %599 }
 0x7ca   :  { %604 = vrot.lane.b32.xlu1 %v578_v35, %s1689_s1  ;;  %v2039_v41 = vmul.f32 %v1559_v9, %v600_v38 }
 0x7cc   :  { %v608_v42 = vrot.slane %v2039_v41, 6 }
 0x7ce   :  { %614 = vrot.lane.b32.xlu1 %v572_v22, %s1691_s9  ;;  %609 = vrot.lane.b32.xlu0 %v608_v42, %s1690_s5 }
 0x83c   :  { %v2044_v43 = vpop.permute.xlu1 %604 }
 0x840   :  { %v610_v44 = vpop.permute.xlu0 %609  ;;  %v615_v56 = vpop.permute.xlu1 %614 }
 0x841   :  { %v612_v45 = vsel %vm302_vm1, %v2044_v43, %v610_v44  ;;  %v620_v60 = vsel %vm302_vm1, %v615_v56, %v618_v57 }
 0x842   :  { %v622_v46 = vrot.slane %v612_v45, 4  ;;  %v737_v16 = vrot.slane %v620_v60, 4 }
 0x844   :  { %1494 = vmatmul.mubr.msk.f32.vlgmr.msra.gmra.mxu0 %vm58_vm0, %v622_v46 }
 0x845   :  { %945 = vmatpush1.msra.mxu0 %v1760_v5  ;;  %992 = vmatprep.mubr.f32.mxu0 %v1688_v6 }
 0x846   :  { %946 = vmatprep.subr.mxu0 %v1770_v8 }
 0x847   :  { %947 = vmatpush1.msra.mxu0 %v1779_v10 }
 0x848   :  { %948 = vmatprep.subr.mxu0 %v1784_v11 }
 0x849   :  { %949 = vmatpush1.msra.mxu0 %v1793_v13 }
 0x84a   :  { %950 = vmatprep.subr.mxu0 %v1802_v15 }
 0x84b   :  { %951 = vmatpush1.msra.mxu0 %v1811_v17 }
 0x84c   :  { %952 = vmatprep.subr.mxu0 %v1820_v19 }
 0x84d   :  { %953 = vmatpush1.msra.mxu0 %v1829_v21 }
 0x84e   :  { %954 = vmatprep.subr.mxu0 %v1838_v23 }
 0x84f   :  { %955 = vmatpush1.msra.mxu0 %v1847_v25 }
 0x850   :  { %956 = vmatprep.subr.mxu0 %v1856_v27 }
 0x851   :  { %957 = vmatpush1.msra.mxu0 %v1865_v29 }
 0x852   :  { %958 = vmatprep.subr.mxu0 %v1874_v31 }
 0x853   :  { %959 = vmatpush1.msra.mxu0 %v1883_v33 }
 0x854   :  { %1254 = vmatprep.subr.mxu0 %v1752_v3  ;;  %v709_v3 = vrot.slane %v620_v60, 6 }
 0x904   :  { %v691_v48 = vpop.f32.mrf.mxu0 }
 0x905   :  { %v697_v49 = vrot.slane %v691_v48, 2 }
 0x906   :  { %v693_v51 = vpop.f32.mrf.mxu0 }
 0x907   :  { %v699_v53 = vadd.f32 %v697_v49, %v1949_v52  ;;  %v700_v55 = vadd.f32 %v693_v51, %v1951_v54 }
 0x909   :  { %1564 = vtanh.f32 %v699_v53  ;;  %v1495_v61 = vmul.f32 -1.442695, %v699_v53  ;;  %v1496_v62 = vmul.f32 -1.442695, %v700_v55 }
 0x90a   :  { %1566 = vtanh.f32 %v700_v55 }
 0x90b   :  { %1568 = vpow2.f32 %v1495_v61 }
 0x90c   :  { %1570 = vpow2.f32 %v1496_v62 }
 0x916   :  { %v1565_v58 = vpop.eup %1564 }
 0x917   :  { %v1567_v59 = vpop.eup %1566  ;;  %715 = vrot.lane.b32.xlu1 %v1565_v58, %s1690_s5 }
 0x918   :  { %741 = vrot.lane.b32.xlu0 %v1567_v59, %s1690_s5  ;;  %v1569_v52 = vpop.eup %1568 }
 0x919   :  { %v1571_v54 = vpop.eup %1570  ;;  %v704_v63 = vadd.f32 1.0, %v1569_v52 }
 0x91a   :  { %v733_v0 = vadd.f32 1.0, %v1571_v54 }
 0x91b   :  { %1572 = vrcp.f32 %v704_v63 }
 0x91c   :  { %710 = vrot.lane.b32.xlu0 %v709_v3, %s1689_s1  ;;  %1574 = vrcp.f32 %v733_v0 }
 0x928   :  { %v1573_v1 = vpop.eup %1572 }
 0x929   :  { %v1575_v4 = vpop.eup %1574 }
 0x92a   :  { %v739_v22 = vmul.f32 %v1575_v4, %v737_v16 }
 0x989   :  { %v716_v2 = vpop.permute.xlu1 %715 }
 0x98a   :  { %v742_v7 = vpop.permute.xlu0 %741  ;;  %v718_v9 = vmul.f32 %v1573_v1, %v716_v2 }
 0x98b   :  { %v744_v12 = vmul.f32 %v1575_v4, %v742_v7 }
 0x98c   :  { %720 = vrot.lane.b32.xlu0 %v718_v9, %s1689_s1 }
 0x98d   :  { %746 = vrot.lane.b32.xlu1 %v744_v12, %s1689_s1 }
 0x98e   :  { %v711_v14 = vpop.permute.xlu0 %710 }
 0x98f   :  { %v713_v18 = vmul.f32 %v1573_v1, %v711_v14 }
 0x9fe   :  { %v721_v20 = vpop.permute.xlu0 %720 }
 0x9ff   :  { %v723_v24 = vadd.f32 %v721_v20, %v713_v18  ;;  %v747_v26 = vpop.permute.xlu1 %746 }
 0xa00   :  { %v749_v28 = vadd.f32 %v747_v26, %v739_v22 }
 0xa01   :  { %1576 = vtanh.f32 %v723_v24 }
 0xa02   :  { %1578 = vtanh.f32 %v749_v28  ;;  %v771_v60 = vrot.slane %v749_v28, 2 }
 0xa0e   :  { %v1577_v30 = vpop.eup %1576 }
 0xa0f   :  { %v1579_v32 = vpop.eup %1578  ;;  %726 = vrot.lane.b32.xlu0 %v1577_v30, %s1690_s5 }
 0xa10   :  { %752 = vrot.lane.b32.xlu1 %v1579_v32, %s1690_s5 }
 0xa81   :  { %v727_v34 = vpop.permute.xlu0 %726 }
 0xa82   :  { %v729_v35 = vmul.f32 %v1573_v1, %v727_v34  ;;  %v753_v38 = vpop.permute.xlu1 %752 }
 0xa83   :  { %v2076_v42 = vmul.f32 %v1575_v4, %v753_v38 }
 0xa84   :  { %757 = vrot.lane.b32.xlu1 %v729_v35, %s1689_s1 }
 0xa85   :  { %v761_v44 = vrot.slane %v2076_v42, 2 }
 0xa87   :  { %762 = vrot.lane.b32.xlu0 %v761_v44, %s1690_s5 }
 0xa88   :  { %767 = vrot.lane.b32.xlu1 %v723_v24, %s1691_s9 }
 0xaf6   :  { %v2082_v45 = vpop.permute.xlu1 %757 }
 0xaf9   :  { %v763_v46 = vpop.permute.xlu0 %762 }
 0xafa   :  { %v765_v48 = vsel %vm302_vm1, %v2082_v45, %v763_v46  ;;  %v768_v59 = vpop.permute.xlu1 %767 }
 0xafb   :  { %v775_v49 = vrot.slane %v765_v48, 6  ;;  %v773_v61 = vsel %vm302_vm1, %v768_v59, %v771_v60 }
 0xafc   :  { %v862_v62 = vrot.slane %v773_v61, 6 }
 0xafd   :  { %1497 = vmatmul.mubr.msk.f32.vlgmr.msra.gmra.mxu1 %vm58_vm0, %v775_v49 }
 0xafe   :  { %1101 = vmatpush1.msra.mxu1 %v1760_v5  ;;  %1148 = vmatprep.mubr.f32.mxu1 %v1688_v6 }
 0xaff   :  { %1102 = vmatprep.subr.mxu1 %v1770_v8 }
 0xb00   :  { %1103 = vmatpush1.msra.mxu1 %v1779_v10 }
 0xb01   :  { %1104 = vmatprep.subr.mxu1 %v1784_v11 }
 0xb02   :  { %1105 = vmatpush1.msra.mxu1 %v1793_v13 }
 0xb03   :  { %1106 = vmatprep.subr.mxu1 %v1802_v15 }
 0xb04   :  { %1107 = vmatpush1.msra.mxu1 %v1811_v17 }
 0xb05   :  { %1108 = vmatprep.subr.mxu1 %v1820_v19 }
 0xb06   :  { %1109 = vmatpush1.msra.mxu1 %v1829_v21 }
 0xb07   :  { %1110 = vmatprep.subr.mxu1 %v1838_v23 }
 0xb08   :  { %1111 = vmatpush1.msra.mxu1 %v1847_v25 }
 0xb09   :  { %1112 = vmatprep.subr.mxu1 %v1856_v27 }
 0xb0a   :  { %1113 = vmatpush1.msra.mxu1 %v1865_v29 }
 0xb0b   :  { %1114 = vmatprep.subr.mxu1 %v1874_v31 }
 0xb0c   :  { %1115 = vmatpush1.msra.mxu1 %v1883_v33 }
 0xbbd   :  { %v844_v51 = vpop.f32.mrf.mxu1 }
 0xbbe   :  { %v849_v53 = vadd.f32 %v844_v51, %v1947_v50 }
 0xbbf   :  { %v846_v55 = vpop.f32.mrf.mxu1 }
 0xbc0   :  { %1580 = vtanh.f32 %v849_v53  ;;  %v851_v56 = vrot.slane %v846_v55, 2  ;;  %v1498_v52 = vmul.f32 -1.442695, %v849_v53 }
 0xbc2   :  { %v853_v57 = vadd.f32 %v851_v56, %v1945_v47 }
 0xbc4   :  { %1582 = vtanh.f32 %v853_v57  ;;  %v1499_v54 = vmul.f32 -1.442695, %v853_v57 }
 0xbc5   :  { %1584 = vpow2.f32 %v1498_v52 }
 0xbc6   :  { %1586 = vpow2.f32 %v1499_v54 }
 0xbcd   :  { %v1581_v58 = vpop.eup %1580 }
 0xbce   :  { %868 = vrot.lane.b32.xlu1 %v1581_v58, %s1690_s5 }
 0xbd1   :  { %v1583_v3 = vpop.eup %1582 }
 0xbd2   :  { %892 = vrot.lane.b32.xlu0 %v1583_v3, %s1690_s5  ;;  %v1585_v63 = vpop.eup %1584 }
 0xbd3   :  { %v857_v0 = vadd.f32 1.0, %v1585_v63  ;;  %v1587_v1 = vpop.eup %1586 }
 0xbd4   :  { %v886_v2 = vadd.f32 1.0, %v1587_v1 }
 0xbd5   :  { %1588 = vrcp.f32 %v857_v0 }
 0xbd6   :  { %863 = vrot.lane.b32.xlu0 %v862_v62, %s1689_s1  ;;  %1590 = vrcp.f32 %v886_v2 }
 0xbe2   :  { %v1589_v4 = vpop.eup %1588 }
 0xbe3   :  { %v1591_v12 = vpop.eup %1590 }
 0xbe4   :  { %v890_v26 = vmul.f32 %v1591_v12, %v773_v61 }
 0xc40   :  { %v869_v7 = vpop.permute.xlu1 %868 }
 0xc41   :  { %v871_v9 = vmul.f32 %v1589_v4, %v869_v7 }
 0xc43   :  { %873 = vrot.lane.b32.xlu0 %v871_v9, %s1689_s1 }
 0xc44   :  { %v893_v14 = vpop.permute.xlu0 %892 }
 0xc45   :  { %v895_v16 = vmul.f32 %v1591_v12, %v893_v14 }
 0xc47   :  { %897 = vrot.lane.b32.xlu1 %v895_v16, %s1689_s1 }
 0xc48   :  { %v864_v18 = vpop.permute.xlu0 %863 }
 0xc49   :  { %v866_v20 = vmul.f32 %v1589_v4, %v864_v18 }
 0xcb5   :  { %v874_v22 = vpop.permute.xlu0 %873 }
 0xcb6   :  { %v876_v24 = vadd.f32 %v874_v22, %v866_v20 }
 0xcb8   :  { %1592 = vtanh.f32 %v876_v24 }
 0xcb9   :  { %v898_v28 = vpop.permute.xlu1 %897 }
 0xcba   :  { %v900_v30 = vadd.f32 %v898_v28, %v890_v26 }
 0xcbc   :  { %1594 = vtanh.f32 %v900_v30 }
 0xcc5   :  { %v1593_v32 = vpop.eup %1592 }
 0xcc6   :  { %879 = vrot.lane.b32.xlu0 %v1593_v32, %s1690_s5 }
 0xcc9   :  { %v1595_v34 = vpop.eup %1594 }
 0xcca   :  { %903 = vrot.lane.b32.xlu1 %v1595_v34, %s1690_s5 }
 0xd38   :  { %v880_v35 = vpop.permute.xlu0 %879 }
 0xd39   :  { %v882_v38 = vmul.f32 %v1589_v4, %v880_v35 }
 0xd3b   :  { %908 = vrot.lane.b32.xlu1 %v882_v38, %s1689_s1 }
 0xd3c   :  { %v904_v44 = vpop.permute.xlu1 %903 }
 0xd3d   :  { %v2114_v46 = vmul.f32 %v1591_v12, %v904_v44 }
 0xd3f   :  { %v912_v48 = vrot.slane %v2114_v46, 6  ;;  %918 = vrot.lane.b32.xlu1 %v876_v24, %s1691_s9 }
 0xd41   :  { %913 = vrot.lane.b32.xlu0 %v912_v48, %s1690_s5 }
 0xdad   :  { %v2119_v49 = vpop.permute.xlu1 %908 }
 0xdb3   :  { %v914_v51 = vpop.permute.xlu0 %913 }
 0xdb4   :  { %v916_v53 = vsel %vm302_vm1, %v2119_v49, %v914_v51 }
 0xdb5   :  { %1500 = vmatmul.mubr.msk.f32.vlgmr.msra.gmra.mxu0 %vm58_vm0, %v916_v53 }
 0xdb6   :  { %1255 = vmatpush1.msra.mxu0 %v1760_v5  ;;  %1302 = vmatprep.mubr.f32.mxu0 %v1688_v6 }
 0xdb7   :  { %1256 = vmatprep.subr.mxu0 %v1770_v8 }
 0xdb8   :  { %1257 = vmatpush1.msra.mxu0 %v1779_v10 }
 0xdb9   :  { %1258 = vmatprep.subr.mxu0 %v1784_v11 }
 0xdba   :  { %1259 = vmatpush1.msra.mxu0 %v1793_v13 }
 0xdbb   :  { %1260 = vmatprep.subr.mxu0 %v1802_v15 }
 0xdbc   :  { %1261 = vmatpush1.msra.mxu0 %v1811_v17  ;;  %v919_v17 = vpop.permute.xlu1 %918 }
 0xdbd   :  { %1262 = vmatprep.subr.mxu0 %v1820_v19  ;;  %v922_v19 = vrot.slane %v900_v30, 6 }
 0xdbe   :  { %1263 = vmatpush1.msra.mxu0 %v1829_v21 }
 0xdbf   :  { %1264 = vmatprep.subr.mxu0 %v1838_v23  ;;  %v924_v23 = vsel %vm302_vm1, %v919_v17, %v922_v19 }
 0xdc0   :  { %1265 = vmatpush1.msra.mxu0 %v1847_v25  ;;  %v1015_v25 = vrot.slane %v924_v23, 6  ;;  %v1043_v54 = vrot.slane %v924_v23, 4 }
 0xdc1   :  { %1266 = vmatprep.subr.mxu0 %v1856_v27 }
 0xdc2   :  { %1267 = vmatpush1.msra.mxu0 %v1865_v29 }
 0xdc3   :  { %1268 = vmatprep.subr.mxu0 %v1874_v31 }
 0xdc4   :  { %1269 = vmatpush1.msra.mxu0 %v1883_v33 }
 0xe75   :  { %v994_v5 = vpop.f32.mrf.mxu0 }
 0xe76   :  { %v1000_v6 = vrot.slane %v994_v5, 6 }
 0xe77   :  { %v996_v8 = vpop.f32.mrf.mxu0 }
 0xe78   :  { %v1002_v10 = vadd.f32 %v1000_v6, %v1947_v50  ;;  %v1004_v11 = vrot.slane %v996_v8, 4 }
 0xe7a   :  { %1596 = vtanh.f32 %v1002_v10  ;;  %v1006_v13 = vadd.f32 %v1004_v11, %v1945_v47  ;;  %v1501_v27 = vmul.f32 -1.442695, %v1002_v10 }
 0xe7c   :  { %1598 = vtanh.f32 %v1006_v13  ;;  %v1502_v29 = vmul.f32 -1.442695, %v1006_v13 }
 0xe7d   :  { %1600 = vpow2.f32 %v1501_v27 }
 0xe7e   :  { %1602 = vpow2.f32 %v1502_v29 }
 0xe87   :  { %v1597_v15 = vpop.eup %1596 }
 0xe88   :  { %1021 = vrot.lane.b32.xlu1 %v1597_v15, %s1690_s5 }
 0xe89   :  { %v1599_v21 = vpop.eup %1598 }
 0xe8a   :  { %1047 = vrot.lane.b32.xlu0 %v1599_v21, %s1690_s5  ;;  %v1601_v31 = vpop.eup %1600 }
 0xe8b   :  { %v1603_v33 = vpop.eup %1602  ;;  %v1010_v55 = vadd.f32 1.0, %v1601_v31 }
 0xe8c   :  { %v1039_v56 = vadd.f32 1.0, %v1603_v33 }
 0xe8d   :  { %1604 = vrcp.f32 %v1010_v55 }
 0xe8e   :  { %1016 = vrot.lane.b32.xlu0 %v1015_v25, %s1689_s1  ;;  %1606 = vrcp.f32 %v1039_v56 }
 0xe9a   :  { %v1605_v57 = vpop.eup %1604 }
 0xe9b   :  { %v1607_v60 = vpop.eup %1606 }
 0xe9c   :  { %v1045_v1 = vmul.f32 %v1607_v60, %v1043_v54 }
 0xefa   :  { %v1022_v58 = vpop.permute.xlu1 %1021 }
 0xefb   :  { %v1024_v59 = vmul.f32 %v1605_v57, %v1022_v58 }
 0xefc   :  { %v1048_v3 = vpop.permute.xlu0 %1047 }
 0xefd   :  { %1026 = vrot.lane.b32.xlu0 %v1024_v59, %s1689_s1  ;;  %v1050_v61 = vmul.f32 %v1607_v60, %v1048_v3 }
 0xeff   :  { %1052 = vrot.lane.b32.xlu1 %v1050_v61, %s1689_s1 }
 0xf00   :  { %v1017_v62 = vpop.permute.xlu0 %1016 }
 0xf01   :  { %v1019_v52 = vmul.f32 %v1605_v57, %v1017_v62 }
 0xf6f   :  { %v1027_v63 = vpop.permute.xlu0 %1026 }
 0xf70   :  { %v1029_v0 = vadd.f32 %v1027_v63, %v1019_v52 }
 0xf71   :  { %v1053_v2 = vpop.permute.xlu1 %1052 }
 0xf72   :  { %1608 = vtanh.f32 %v1029_v0  ;;  %v1055_v4 = vadd.f32 %v1053_v2, %v1045_v1 }
 0xf74   :  { %1610 = vtanh.f32 %v1055_v4  ;;  %v1077_v53 = vrot.slane %v1055_v4, 2 }
 0xf7f   :  { %v1609_v7 = vpop.eup %1608 }
 0xf80   :  { %1032 = vrot.lane.b32.xlu0 %v1609_v7, %s1690_s5 }
 0xf81   :  { %v1611_v9 = vpop.eup %1610 }
 0xf82   :  { %1058 = vrot.lane.b32.xlu1 %v1611_v9, %s1690_s5 }
 0xff2   :  { %v1033_v12 = vpop.permute.xlu0 %1032 }
 0xff3   :  { %v1035_v14 = vmul.f32 %v1605_v57, %v1033_v12 }
 0xff4   :  { %v1059_v16 = vpop.permute.xlu1 %1058 }
 0xff5   :  { %1063 = vrot.lane.b32.xlu1 %v1035_v14, %s1689_s1  ;;  %v2151_v18 = vmul.f32 %v1607_v60, %v1059_v16 }
 0xff7   :  { %v1067_v20 = vrot.slane %v2151_v18, 2 }
 0xff9   :  { %1073 = vrot.lane.b32.xlu1 %v1029_v0, %s1691_s9  ;;  %1068 = vrot.lane.b32.xlu0 %v1067_v20, %s1690_s5 }
0x1067   :  { %v2156_v22 = vpop.permute.xlu1 %1063 }
0x106b   :  { %v1069_v24 = vpop.permute.xlu0 %1068  ;;  %v1074_v51 = vpop.permute.xlu1 %1073 }
0x106c   :  { %v1071_v26 = vsel %vm302_vm1, %v2156_v22, %v1069_v24  ;;  %v1079_v6 = vsel %vm302_vm1, %v1074_v51, %v1077_v53 }
0x106d   :  { %v1081_v28 = vrot.slane %v1071_v26, 2  ;;  %v1171_v8 = vrot.slane %v1079_v6, 6 }
0x106f   :  { %1503 = vmatmul.mubr.msk.f32.vlgmr.msra.gmra.mxu1 %vm58_vm0, %v1081_v28 }
0x112f   :  { %v1150_v30 = vpop.f32.mrf.mxu1 }
0x1130   :  { %v1156_v32 = vrot.slane %v1150_v30, 4 }
0x1131   :  { %v1152_v34 = vpop.f32.mrf.mxu1 }
0x1132   :  { %v1158_v35 = vadd.f32 %v1156_v32, %v1947_v50  ;;  %v1160_v38 = vrot.slane %v1152_v34, 6 }
0x1134   :  { %1612 = vtanh.f32 %v1158_v35  ;;  %v1162_v44 = vadd.f32 %v1160_v38, %v1945_v47  ;;  %v1504_v10 = vmul.f32 -1.442695, %v1158_v35 }
0x1136   :  { %1614 = vtanh.f32 %v1162_v44  ;;  %v1505_v11 = vmul.f32 -1.442695, %v1162_v44 }
0x1137   :  { %1616 = vpow2.f32 %v1504_v10 }
0x1138   :  { %1618 = vpow2.f32 %v1505_v11 }
0x1141   :  { %v1613_v48 = vpop.eup %1612 }
0x1142   :  { %1177 = vrot.lane.b32.xlu1 %v1613_v48, %s1690_s5 }
0x1143   :  { %v1615_v5 = vpop.eup %1614 }
0x1144   :  { %1201 = vrot.lane.b32.xlu0 %v1615_v5, %s1690_s5  ;;  %v1617_v13 = vpop.eup %1616 }
0x1145   :  { %v1619_v15 = vpop.eup %1618  ;;  %v1166_v17 = vadd.f32 1.0, %v1617_v13 }
0x1146   :  { %v1195_v19 = vadd.f32 1.0, %v1619_v15 }
0x1147   :  { %1620 = vrcp.f32 %v1166_v17 }
0x1148   :  { %1172 = vrot.lane.b32.xlu0 %v1171_v8, %s1689_s1  ;;  %1622 = vrcp.f32 %v1195_v19 }
0x1154   :  { %v1621_v21 = vpop.eup %1620 }
0x1155   :  { %v1623_v27 = vpop.eup %1622 }
0x1156   :  { %v1199_v58 = vmul.f32 %v1623_v27, %v1079_v6 }
0x11b4   :  { %v1178_v23 = vpop.permute.xlu1 %1177 }
0x11b5   :  { %v1180_v25 = vmul.f32 %v1621_v21, %v1178_v23 }
0x11b6   :  { %v1202_v29 = vpop.permute.xlu0 %1201 }
0x11b7   :  { %1182 = vrot.lane.b32.xlu0 %v1180_v25, %s1689_s1  ;;  %v1204_v31 = vmul.f32 %v1623_v27, %v1202_v29 }
0x11b9   :  { %1206 = vrot.lane.b32.xlu1 %v1204_v31, %s1689_s1 }
0x11ba   :  { %v1173_v33 = vpop.permute.xlu0 %1172 }
0x11bb   :  { %v1175_v55 = vmul.f32 %v1621_v21, %v1173_v33 }
0x1229   :  { %v1183_v56 = vpop.permute.xlu0 %1182 }
0x122a   :  { %v1185_v57 = vadd.f32 %v1183_v56, %v1175_v55 }
0x122b   :  { %v1207_v59 = vpop.permute.xlu1 %1206 }
0x122c   :  { %1624 = vtanh.f32 %v1185_v57  ;;  %v1209_v60 = vadd.f32 %v1207_v59, %v1199_v58 }
0x122e   :  { %1626 = vtanh.f32 %v1209_v60  ;;  %v1231_v26 = vrot.slane %v1209_v60, 6 }
0x1239   :  { %v1625_v3 = vpop.eup %1624 }
0x123a   :  { %1188 = vrot.lane.b32.xlu0 %v1625_v3, %s1690_s5 }
0x123b   :  { %v1627_v61 = vpop.eup %1626 }
0x123c   :  { %1212 = vrot.lane.b32.xlu1 %v1627_v61, %s1690_s5 }
0x12ac   :  { %v1189_v62 = vpop.permute.xlu0 %1188 }
0x12ad   :  { %v1191_v52 = vmul.f32 %v1621_v21, %v1189_v62 }
0x12ae   :  { %v1213_v54 = vpop.permute.xlu1 %1212 }
0x12af   :  { %1217 = vrot.lane.b32.xlu1 %v1191_v52, %s1689_s1  ;;  %v1215_v63 = vmul.f32 %v1623_v27, %v1213_v54 }
0x12b1   :  { %v1221_v0 = vrot.slane %v1215_v63, 6 }
0x12b3   :  { %1227 = vrot.lane.b32.xlu1 %v1185_v57, %s1691_s9  ;;  %1222 = vrot.lane.b32.xlu0 %v1221_v0, %s1690_s5 }
0x1321   :  { %v2174_v1 = vpop.permute.xlu1 %1217 }
0x1325   :  { %v1223_v2 = vpop.permute.xlu0 %1222  ;;  %v1228_v24 = vpop.permute.xlu1 %1227 }
0x1326   :  { %v1225_v4 = vsel %vm302_vm1, %v2174_v1, %v1223_v2  ;;  %v1233_v30 = vsel %vm302_vm1, %v1228_v24, %v1231_v26 }
0x1327   :  { %v1235_v7 = vrot.slane %v1225_v4, 4  ;;  %v1322_v34 = vrot.slane %v1233_v30, 6  ;;  %v1350_v13 = vrot.slane %v1233_v30, 4 }
0x1329   :  { %1506 = vmatmul.mubr.msk.f32.vlgmr.msra.gmra.mxu0 %vm58_vm0, %v1235_v7 }
0x13e9   :  { %v1304_v9 = vpop.f32.mrf.mxu0 }
0x13ea   :  { %v1310_v12 = vrot.slane %v1304_v9, 2 }
0x13eb   :  { %v1306_v14 = vpop.f32.mrf.mxu0 }
0x13ec   :  { %v1312_v16 = vadd.f32 %v1310_v12, %v1947_v50  ;;  %v1313_v20 = vadd.f32 %v1306_v14, %v1945_v47 }
0x13ee   :  { %1628 = vtanh.f32 %v1312_v16  ;;  %v1507_v35 = vmul.f32 -1.442695, %v1312_v16  ;;  %v1508_v38 = vmul.f32 -1.442695, %v1313_v20 }
0x13ef   :  { %1630 = vtanh.f32 %v1313_v20 }
0x13f0   :  { %1632 = vpow2.f32 %v1507_v35 }
0x13f1   :  { %1634 = vpow2.f32 %v1508_v38 }
0x13fb   :  { %v1629_v28 = vpop.eup %1628 }
0x13fc   :  { %v1631_v32 = vpop.eup %1630  ;;  %1328 = vrot.lane.b32.xlu0 %v1629_v28, %s1690_s5 }
0x13fd   :  { %1354 = vrot.lane.b32.xlu1 %v1631_v32, %s1690_s5  ;;  %v1633_v47 = vpop.eup %1632 }
0x13fe   :  { %v1635_v50 = vpop.eup %1634  ;;  %v1317_v44 = vadd.f32 1.0, %v1633_v47 }
0x13ff   :  { %v1346_v48 = vadd.f32 1.0, %v1635_v50 }
0x1400   :  { %1323 = vrot.lane.b32.xlu0 %v1322_v34, %s1689_s1  ;;  %1636 = vrcp.f32 %v1317_v44 }
0x1401   :  { %1638 = vrcp.f32 %v1346_v48 }
0x140d   :  { %v1637_v51 = vpop.eup %1636 }
0x140e   :  { %v1639_v5 = vpop.eup %1638 }
0x140f   :  { %v1352_v17 = vmul.f32 %v1639_v5, %v1350_v13 }
0x146e   :  { %v1329_v53 = vpop.permute.xlu0 %1328 }
0x146f   :  { %v1331_v6 = vmul.f32 %v1637_v51, %v1329_v53  ;;  %v1355_v8 = vpop.permute.xlu1 %1354 }
0x1470   :  { %v1357_v10 = vmul.f32 %v1639_v5, %v1355_v8 }
0x1471   :  { %1333 = vrot.lane.b32.xlu1 %v1331_v6, %s1689_s1 }
0x1472   :  { %1359 = vrot.lane.b32.xlu0 %v1357_v10, %s1689_s1  ;;  %v1324_v11 = vpop.permute.xlu0 %1323 }
0x1473   :  { %v1326_v15 = vmul.f32 %v1637_v51, %v1324_v11 }
0x14e3   :  { %v1334_v19 = vpop.permute.xlu1 %1333 }
0x14e4   :  { %v1360_v21 = vpop.permute.xlu0 %1359  ;;  %v1336_v23 = vadd.f32 %v1334_v19, %v1326_v15 }
0x14e5   :  { %v1362_v25 = vadd.f32 %v1360_v21, %v1352_v17 }
0x14e6   :  { %1640 = vtanh.f32 %v1336_v23 }
0x14e7   :  { %1642 = vtanh.f32 %v1362_v25  ;;  %v1384_v54 = vrot.slane %v1362_v25, 2 }
0x14f3   :  { %v1641_v27 = vpop.eup %1640 }
0x14f4   :  { %v1643_v29 = vpop.eup %1642  ;;  %1339 = vrot.lane.b32.xlu1 %v1641_v27, %s1690_s5 }
0x14f5   :  { %1365 = vrot.lane.b32.xlu0 %v1643_v29, %s1690_s5 }
0x14f8   :  { %1395 = vrot.lane.b32.xlu1 %v2151_v18, %s1690_s5 }
0x14f9   :  { %1391 = vrot.lane.b32.xlu0 %v1215_v63, %s1690_s5 }
0x14fc   :  { %1407 = vrot.lane.b32.xlu1 %v2039_v41, %s1690_s5 }
0x14fd   :  { %1399 = vrot.lane.b32.xlu0 %v2114_v46, %s1690_s5 }
0x1500   :  { %1415 = vrot.lane.b32.xlu1 %v1962_v36, %s1690_s5 }
0x1501   :  { %1411 = vrot.lane.b32.xlu0 %v2001_v37, %s1690_s5 }
0x1505   :  { %1380 = vrot.lane.b32.xlu0 %v1336_v23, %s1691_s9 }
0x1509   :  { %1403 = vrot.lane.b32.xlu0 %v2076_v42, %s1690_s5 }
0x1566   :  { %v1340_v18 = vpop.permute.xlu1 %1339 }
0x1567   :  { %v1366_v31 = vpop.permute.xlu0 %1365  ;;  %v1342_v33 = vmul.f32 %v1637_v51, %v1340_v18 }
0x1568   :  { %v1368_v55 = vmul.f32 %v1639_v5, %v1366_v31 }
0x1569   :  { %1370 = vrot.lane.b32.xlu1 %v1342_v33, %s1689_s1 }
0x156a   :  { %v1396_v41 = vpop.permute.xlu1 %1395  ;;  %v1374_v58 = vrot.slane %v1368_v55, 2 }
0x156b   :  { %v1392_v46 = vpop.permute.xlu0 %1391  ;;  %v1398_v36 = vsel %vm302_vm1, %v2044_v43, %v1396_v41 }
0x156c   :  { %v1394_v37 = vsel %vm302_vm1, %v2006_v39, %v1392_v46  ;;  %v1423_v56 = vrot.slane %v1398_v36, 4 }
0x156d   :  { %v1420_v57 = vrot.slane %v1394_v37, 2  ;;  %1387 = vrot.lane.b32.xlu1 %v1368_v55, %s1690_s5 }
0x156e   :  { %1440 = vst.msk [vmem:[#allocation2 + $0x4] sm:$0x3] %vm1437_vm2, %v1423_v56  ;;  %v1408_v42 = vpop.permute.xlu1 %1407 }
0x156f   :  { %1439 = vst.msk [vmem:[#allocation2 + $0x2] sm:$0x3] %vm1437_vm2, %v1420_v57  ;;  %v1400_v59 = vpop.permute.xlu0 %1399  ;;  %v1410_v60 = vsel %vm302_vm1, %v2156_v22, %v1408_v42 }
0x1570   :  { %v1402_v43 = vsel %vm302_vm1, %v2082_v45, %v1400_v59  ;;  %v1429_v3 = vrot.slane %v1410_v60, 2 }
0x1571   :  { %v1426_v61 = vrot.slane %v1402_v43, 6  ;;  %1375 = vrot.lane.b32.xlu1 %v1374_v58, %s1690_s5 }
0x1572   :  { %1443 = vst.msk [vmem:[#allocation2 + $0xa] sm:$0x3] %vm1437_vm2, %v1429_v3 }
0x1573   :  { %1441 = vst.msk [vmem:[#allocation2 + $0x6] sm:$0x3] %vm1437_vm2, %v1426_v61  ;;  %v1412_v39 = vpop.permute.xlu0 %1411 }
0x1574   :  { %v1414_v62 = vsel %vm302_vm1, %v2174_v1, %v1412_v39 }
0x1575   :  { %v1432_v52 = vrot.slane %v1414_v62, 4 }
0x1577   :  { %1444 = vst.msk [vmem:[#allocation2 + $0xc] sm:$0x3] %vm1437_vm2, %v1432_v52  ;;  %v1381_v45 = vpop.permute.xlu0 %1380 }
0x1578   :  { %v1386_v22 = vsel %vm302_vm1, %v1381_v45, %v1384_v54 }
0x1579   :  { %1448 = vst.msk [vmem:[#allocation4 - $0x6] sm:$0xc0] %vm1446_vm3, %v1386_v22 }
0x157a   :  { %1655 = shalt.err (!%p1652_p4)
}
0x157b   :  { %1472 = dma.vmem_to_hbm [thread:$0]  %s1470_s11, 32, %s2252_s8, [#allocation5]   ;;  %v1404_v63 = vpop.permute.xlu0 %1403  ;;  %v1416_v1 = vpop.permute.xlu1 %1415 }
0x157c   :  { %v1406_v0 = vsel %vm302_vm1, %v2119_v49, %v1404_v63  ;;  %s1693_s15 = smov [#allocation2]  }
0x157d   :  { %1442 = vst.msk [vmem:[#allocation2 + $0x8] sm:$0x3] %vm1437_vm2, %v1406_v0  ;;  %s1454_s16 = sshll.u32 %s1693_s15, 4  ;;  %s1455_s16 = int_to_ptr.vmem [resolvable:$true] %s1454_s16 }
0x157e   :  { %s1664_s8 = scalar_lea.vmem %s1455_s16, 256  ;;  %p1669_p6 = scmp.lt.s32.totalorder %s1455_s16, %s1455_s16 }
0x157f   :  { %p1665_p5 = scmp.ne.s32.totalorder %s1455_s16, %s1664_s8  ;;  %p1670_p7 = scmp.lt.s32.totalorder %s1664_s8, %s1664_s8 }
0x1581   :  { %p1671_p8 = por %p1670_p7, %p1669_p6 }
0x1583   :  { %p1672_p9 = pnand %p1671_p8, %p1665_p5 }
0x15db   :  { %v1371_v2 = vpop.permute.xlu1 %1370 }
0x15dc   :  { %v1418_v4 = vsel %vm302_vm1, %v1371_v2, %v1416_v1 }
0x15dd   :  { %v1435_v7 = vrot.slane %v1418_v4, 6 }
0x15df   :  { %1445 = vst.msk [vmem:[#allocation2 + $0xe] sm:$0x3] %vm1437_vm2, %v1435_v7  ;;  %v1388_v9 = vpop.permute.xlu1 %1387 }
0x15e0   :  { %v1390_v12 = vsel %vm302_vm1, %v1968_v40, %v1388_v9 }
0x15e1   :  { %1438 = vst.msk [vmem:[#allocation2] sm:$0x3] %vm1437_vm2, %v1390_v12 }
0x15e2   :  { %1675 = shalt.err (!%p1672_p9)
}
0x15e3   :  { %s1694_s17 = smov 2   ;;  %v1376_v49 = vpop.permute.xlu1 %1375 }
0x15e4   :  { %1460 = dma.vmem_to_hbm [thread:$0]  %s1455_s16, 256, %s2250_s6, [#allocation3], %s1689_s1, %s1689_s1, %s1694_s17   ;;  %v1378_v14 = vsel %vm302_vm1, %v1371_v2, %v1376_v49 }
0x15e5   :  { %1447 = vst.msk [vmem:[%s2251_s7 - $0x6] sm:$0xc0] %vm1446_vm3, %v1378_v14 }
0x15e6   :  { %1684 = dma.done.wait [#allocation3], 256  }
0x15e7   :  { %1685 = vsyncadd [#allocation3], 4294967040 }
0x15e8   :  { %1686 = dma.done.wait [#allocation5], 32  }
0x15e9   :  { %1687 = vsyncadd [#allocation5], 4294967264 }
0x15ea   :  { %1481 = vsyncpa [#allocation3], 1 }
0x15eb   :  { %1482 = vsyncpa [#allocation5], 1 }

// kernel: model_forward.5
= control target key start
LH: loop header
LB: loop body
LE: loop exit
PB: predicated region body
PF: predicated region fallthrough
CT: control target
= control target key end

     0   :  { %v409_v1 = vmov 0.0   ;;  %vm410_vm0 = vmmov 0   ;;  %s588_s0 = inlined_call_operand.vmem [shape: f32[8,2,32], index: 0, kind: input, shape index: {}]   ;;  %s589_s1 = inlined_call_operand.vmem [shape: f32[2,128], index: 1, kind: input, shape index: {}]   ;;  %s590_s2 = inlined_call_operand.vmem [shape: f32[32,128], index: 2, kind: input, shape index: {}]   ;;  %s591_s3 = inlined_call_operand.vmem [shape: f32[1,128], index: 3, kind: input, shape index: {}]   ;;  %s592_s4 = inlined_call_operand.vmem [shape: f32[128,8], index: 4, kind: input, shape index: {}]   ;;  %s593_s5 = inlined_call_operand.vmem [shape: f32[1,8], index: 5, kind: input, shape index: {}]   ;;  %s594_s6 = inlined_call_operand.vmem [shape: f32[2,8], index: 6, kind: input, shape index: {}]   ;;  %s595_s7 = inlined_call_operand.hbm [shape: f32[1,1], index: 7, kind: output, shape index: {}]  }
   0x1   :  { %v155_v0 = vld [vmem:[%s592_s4 + $0x78] sm:$0xff]  ;;  %337 = vmatprep.subr.mxu1 %v409_v1  ;;  %v154_v2 = vld [vmem:[%s592_s4 + $0x70] sm:$0xff]  ;;  %369 = vmatprep.mubr.msk.f32.mxu1 %vm410_vm0, %v409_v1  ;;  %v153_v3 = vld [vmem:[%s592_s4 + $0x68] sm:$0xff] }
   0x2   :  { %338 = vmatpush3.msra.mxu1 %v155_v0  ;;  %326 = vmatprep.subr.mxu0 %v409_v1  ;;  %v152_v4 = vld [vmem:[%s592_s4 + $0x60] sm:$0xff] }
   0x3   :  { %339 = vmatprep.subr.mxu1 %v409_v1  ;;  %334 = vmatprep.mubr.msk.f32.mxu0 %vm410_vm0, %v409_v1 }
   0x4   :  { %340 = vmatpush3.msra.mxu1 %v154_v2 }
   0x5   :  { %341 = vmatprep.subr.mxu1 %v409_v1 }
   0x6   :  { %342 = vmatpush3.msra.mxu1 %v153_v3 }
   0x7   :  { %12 = vsyncpa [#allocation3], 0  ;;  %343 = vmatprep.subr.mxu1 %v409_v1  ;;  %v151_v5 = vld [vmem:[%s592_s4 + $0x58] sm:$0xff]  ;;  %v150_v6 = vld [vmem:[%s592_s4 + $0x50] sm:$0xff]  ;;  %vm35_vm1 = vcmask 254976   ;;  %vm65_vm2 = vcmask 261120  }
   0x8   :  { %344 = vmatpush3.msra.mxu1 %v152_v4  ;;  %v149_v7 = vld [vmem:[%s592_s4 + $0x48] sm:$0xff]  ;;  %v148_v8 = vld [vmem:[%s592_s4 + $0x40] sm:$0xff]  ;;  %v147_v9 = vld [vmem:[%s592_s4 + $0x38] sm:$0xff]  ;;  %vm234_vm3 = vcmask 58368   ;;  %vm269_vm4 = vcmask 1041408   ;;  %vm253_vm5 = vcmask 1024  }
   0x9   :  { %345 = vmatprep.subr.mxu1 %v409_v1  ;;  %v146_v10 = vld [vmem:[%s592_s4 + $0x30] sm:$0xff]  ;;  %v145_v11 = vld [vmem:[%s592_s4 + $0x28] sm:$0xff]  ;;  %v144_v12 = vld [vmem:[%s592_s4 + $0x20] sm:$0xff]  ;;  %vm285_vm6 = vcmask 0  }
   0xa   :  { %346 = vmatpush3.msra.mxu1 %v151_v5  ;;  %v143_v13 = vld [vmem:[%s592_s4 + $0x18] sm:$0xff]  ;;  %v142_v14 = vld [vmem:[%s592_s4 + $0x10] sm:$0xff]  ;;  %v141_v15 = vld [vmem:[%s592_s4 + $0x8] sm:$0xff] }
   0xb   :  { %347 = vmatprep.subr.mxu1 %v409_v1  ;;  %v140_v16 = vld [vmem:[%s592_s4] sm:$0xff]  ;;  %v57_v18 = vld [vmem:[%s590_s2 + $0x18] sm:$0xff]  ;;  %v56_v19 = vld [vmem:[%s590_s2 + $0x10] sm:$0xff]  ;;  %s411_s4 = smov [#allocation2]  }
   0xc   :  { %348 = vmatpush3.msra.mxu1 %v150_v6  ;;  %v521_v17 = vld [vmem:[%s589_s1] sm:$0x3]  ;;  %327 = vmatpush3.msra.mxu0 %v57_v18  ;;  %v28_v21 = vld [vmem:[%s588_s0 + $0x2] sm:$0x3]  ;;  %v55_v22 = vld [vmem:[%s590_s2 + $0x8] sm:$0xff]  ;;  %s293_s16 = sshll.u32 %s411_s4, 4  ;;  %s294_s16 = int_to_ptr.vmem [resolvable:$true] %s293_s16 }
   0xd   :  { %349 = vmatprep.subr.mxu1 %v409_v1  ;;  %v27_v20 = vld [vmem:[%s588_s0] sm:$0x3]  ;;  %328 = vmatprep.subr.mxu0 %v409_v1  ;;  %v29_v23 = vld [vmem:[%s588_s0 + $0x4] sm:$0x3]  ;;  %v30_v24 = vld [vmem:[%s588_s0 + $0x6] sm:$0x3]  ;;  %p392_p1 = scmp.lt.s32.totalorder %s294_s16, %s294_s16 }
   0xe   :  { %350 = vmatpush3.msra.mxu1 %v149_v7  ;;  %329 = vmatpush3.msra.mxu0 %v56_v19  ;;  %v54_v25 = vld [vmem:[%s590_s2] sm:$0xff]  ;;  %v36_v26 = vsel %vm35_vm1, %v27_v20, 0.0  ;;  %v37_v27 = vsel %vm35_vm1, %v28_v21, 0.0  ;;  %v39_v28 = vsel %vm35_vm1, %v29_v23, 0.0  ;;  %v31_v29 = vld [vmem:[%s588_s0 + $0x8] sm:$0x3] }
   0xf   :  { %351 = vmatprep.subr.mxu1 %v409_v1  ;;  %330 = vmatprep.subr.mxu0 %v409_v1  ;;  %v38_v30 = vadd.f32 %v37_v27, %v36_v26  ;;  %v41_v31 = vsel %vm35_vm1, %v30_v24, 0.0  ;;  %v32_v32 = vld [vmem:[%s588_s0 + $0xa] sm:$0x3]  ;;  %v43_v34 = vsel %vm35_vm1, %v31_v29, 0.0  ;;  %v33_v35 = vld [vmem:[%s588_s0 + $0xc] sm:$0x3] }
  0x10   :  { %352 = vmatpush3.msra.mxu1 %v148_v8  ;;  %331 = vmatpush3.msra.mxu0 %v55_v22  ;;  %v45_v37 = vsel %vm35_vm1, %v32_v32, 0.0  ;;  %v34_v38 = vld [vmem:[%s588_s0 + $0xe] sm:$0x3]  ;;  %v47_v40 = vsel %vm35_vm1, %v33_v35, 0.0  ;;  %v303_v46 = vld [vmem:[%s593_s5] ss:$0 sm:$0xff] }
  0x11   :  { %353 = vmatprep.subr.mxu1 %v409_v1  ;;  %332 = vmatprep.subr.mxu0 %v409_v1  ;;  %v40_v33 = vadd.f32 %v39_v28, %v38_v30  ;;  %v49_v42 = vsel %vm35_vm1, %v34_v38, 0.0  ;;  %v247_v50 = vld [vmem:[%s594_s6] sm:$0x3]  ;;  %s387_s17 = scalar_lea.vmem %s294_s16, 16  ;;  %s391_s18 = scalar_lea.vmem %s294_s16, 32 }
  0x12   :  { %354 = vmatpush3.msra.mxu1 %v147_v9  ;;  %333 = vmatpush3.msra.mxu0 %v54_v25  ;;  %v301_v60 = vld [vmem:[%s591_s3] ss:$0 sm:$0xff]  ;;  %p388_p0 = scmp.ne.s32.totalorder %s294_s16, %s387_s17  ;;  %p393_p2 = scmp.lt.s32.totalorder %s391_s18, %s387_s17 }
  0x13   :  { %355 = vmatprep.subr.mxu1 %v409_v1  ;;  %v42_v36 = vadd.f32 %v41_v31, %v40_v33 }
  0x14   :  { %356 = vmatpush3.msra.mxu1 %v146_v10  ;;  %p394_p3 = por %p393_p2, %p392_p1 }
  0x15   :  { %357 = vmatprep.subr.mxu1 %v409_v1  ;;  %v44_v39 = vadd.f32 %v43_v34, %v42_v36 }
  0x16   :  { %358 = vmatpush3.msra.mxu1 %v145_v11  ;;  %p395_p4 = pnand %p394_p3, %p388_p0 }
  0x17   :  { %359 = vmatprep.subr.mxu1 %v409_v1  ;;  %v46_v41 = vadd.f32 %v45_v37, %v44_v39 }
  0x18   :  { %360 = vmatpush3.msra.mxu1 %v144_v12 }
  0x19   :  { %361 = vmatprep.subr.mxu1 %v409_v1  ;;  %v48_v43 = vadd.f32 %v47_v40, %v46_v41 }
  0x1a   :  { %362 = vmatpush3.msra.mxu1 %v143_v13 }
  0x1b   :  { %363 = vmatprep.subr.mxu1 %v409_v1  ;;  %v50_v44 = vadd.f32 %v49_v42, %v48_v43 }
  0x1c   :  { %364 = vmatpush3.msra.mxu1 %v142_v14 }
  0x1d   :  { %365 = vmatprep.subr.mxu1 %v409_v1  ;;  %v52_v45 = vmul.f32 0.125, %v50_v44 }
  0x1e   :  { %366 = vmatpush3.msra.mxu1 %v141_v15 }
  0x1f   :  { %367 = vmatprep.subr.mxu1 %v409_v1  ;;  %335 = vmatmul.mubr.msk.f32.vlgmr.msra.gmra.mxu0 %vm65_vm2, %v52_v45 }
  0x20   :  { %368 = vmatpush3.msra.mxu1 %v140_v16 }
  0x21   :  { %370 = vmatmul.mubr.f32.vlgmr.msra.gmra.mxu1 %v521_v17 }
  0xdf   :  { %v135_v55 = vpop.f32.mrf.mxu0 }
  0xe0   :  { %v136_v63 = vadd.f32 %v301_v60, %v135_v55 }
  0xe1   :  { %v229_v47 = vpop.f32.mrf.mxu1  ;;  %v336_v56 = vpop.f32.mrf.mxu0 }
  0xe2   :  { %v230_v48 = vadd.f32 %v303_v46, %v229_v47 }
  0xe3   :  { %v371_v49 = vpop.f32.mrf.mxu1 }
  0xe4   :  { %379 = vtanh.f32 %v230_v48 }
  0xf1   :  { %v380_v51 = vpop.eup %379 }
  0xf2   :  { %v235_v52 = vsel %vm234_vm3, %v380_v51, -inf  ;;  %v248_v53 = vmul.f32 %v380_v51, %v247_v50 }
  0xf3   :  { %236 = vmax.xlane.f32.xlu0 %v235_v52 }
  0xf4   :  { %v249_v54 = vsel %vm234_vm3, %v248_v53, 0.0 }
  0xf5   :  { %250 = vadd.xlane.f32.xlu1 %v249_v54 }
 0x17c   :  { %v237_v57 = vpop.xlane.xlu0 %236 }
 0x17d   :  { %v238_v58 = vsub.f32 %v380_v51, %v237_v57 }
 0x17e   :  { %v251_v8 = vpop.xlane.xlu1 %250 }
 0x17f   :  { %v239_v59 = vmul.f32 1.442695, %v238_v58 }
 0x181   :  { %381 = vpow2.f32 %v239_v59 }
 0x182   :  { %383 = vtanh.f32 %v136_v63 }
 0x18e   :  { %v382_v61 = vpop.eup %381 }
 0x18f   :  { %v241_v62 = vsel %vm234_vm3, %v382_v61, 0.0  ;;  %v384_v0 = vpop.eup %383 }
 0x190   :  { %242 = vadd.xlane.f32.xlu0 %v241_v62  ;;  %v267_v1 = vsub.f32 %v384_v0, %v521_v17 }
 0x192   :  { %v268_v2 = vmul.f32 %v267_v1, %v267_v1 }
 0x194   :  { %v270_v3 = vsel %vm269_vm4, %v268_v2, 0.0 }
 0x195   :  { %271 = vadd.xlane.f32.xlu0 %v270_v3 }
 0x219   :  { %v243_v4 = vpop.xlane.xlu0 %242 }
 0x21a   :  { %385 = vlog2.f32 %v243_v4 }
 0x21e   :  { %v272_v11 = vpop.xlane.xlu0 %271 }
 0x21f   :  { %v273_v12 = vrot.slane %v272_v11, 4 }
 0x221   :  { %v274_v13 = vadd.f32 %v273_v12, %v272_v11 }
 0x223   :  { %v275_v14 = vrot.slane %v274_v13, 2 }
 0x225   :  { %v276_v18 = vadd.f32 %v275_v14, %v274_v13 }
 0x227   :  { %v386_v5 = vpop.eup %385  ;;  %v277_v21 = vrot.slane %v276_v18, 1 }
 0x228   :  { %v245_v6 = vmul.f32 0.6931472, %v386_v5 }
 0x229   :  { %v278_v24 = vadd.f32 %v277_v21, %v276_v18 }
 0x22a   :  { %v246_v7 = vadd.f32 %v245_v6, %v237_v57 }
 0x22c   :  { %v252_v9 = vsub.f32 %v246_v7, %v251_v8 }
 0x22e   :  { %v254_v10 = vsel %vm253_vm5, %v252_v9, 0.0 }
 0x22f   :  { %255 = vadd.xlane.f32.xlu1 %v254_v10 }
 0x2b8   :  { %v256_v15 = vpop.xlane.xlu1 %255 }
 0x2b9   :  { %v257_v16 = vrot.slane %v256_v15, 4 }
 0x2bb   :  { %v258_v17 = vadd.f32 %v257_v16, %v256_v15 }
 0x2bd   :  { %v259_v19 = vrot.slane %v258_v17, 2 }
 0x2bf   :  { %v260_v20 = vadd.f32 %v259_v19, %v258_v17 }
 0x2c1   :  { %v261_v22 = vrot.slane %v260_v20, 1 }
 0x2c3   :  { %v262_v23 = vadd.f32 %v261_v22, %v260_v20 }
 0x2c5   :  { %372 = vpush %v262_v23 }
 0x2c6   :  { %374 = vpush %v278_v24 }
 0x2f6   :  { %s373_s3 = spop %372 }
 0x2f7   :  { %s266_s6 = smul.f32 0.5, %s373_s3  ;;  %s375_s14 = spop %374 }
 0x2f8   :  { %s282_s15 = smul.f32 0.00390625, %s375_s14 }
 0x2fa   :  { %s283_s1 = sadd.f32 %s282_s15, %s266_s6 }
 0x2fc   :  { %v284_v25 = vstv %s283_s1 }
 0x2fd   :  { %286 = vst.msk [vmem:[#allocation2] sm:$0x1] %vm285_vm6, %v284_v25 }
 0x2fe   :  { %398 = shalt.err (!%p395_p4)
}
 0x2ff   :  { %296 = dma.vmem_to_hbm [thread:$0]  %s294_s16, 16, %s595_s7, [#allocation3]  }
 0x300   :  { %407 = dma.done.wait [#allocation3], 16  }
 0x301   :  { %408 = vsyncadd [#allocation3], 4294967280 }
 0x302   :  { %300 = vsyncpa [#allocation3], 1 }

</bundles_post_ra>
